<compile_context>
chip_gen: v5e
topology: v5e:2x2
jax: 0.10.0
libtpu: 0.0.40
codegen_flags: <defaults>
</compile_context>

<pallas_src>
import functools

import jax
import jax.numpy as jnp
from jax.experimental import pallas as pl
from jax.experimental.pallas import tpu as pltpu

PAD = 32      # padded feature width (lanes) for every layer input/output (max true dim = 27)
PACK_W = 128  # packed state / output lane width -> lane-dense (unmasked) stores

# weight slab order: fc1, fc2, fc3, i2h (x rows), i2h (h rows), h2o
_W_FC1, _W_FC2, _W_FC3, _W_I2H_X, _W_I2H_H, _W_H2O = range(6)
# bias slab order: fc1, fc2, fc3, i2h, h2o
_B_FC1, _B_FC2, _B_FC3, _B_I2H, _B_H2O = range(5)


def _expm1(x):
    # expm1 via the tanh identity: e^x - 1 = tanh(x/2) * (e^x + 1).
    # Accurate near 0 (matches torch ELU's expm1 behaviour) and built only from
    # exp/tanh, which are guaranteed Mosaic-supported transcendentals (EUP).
    return jnp.tanh(0.5 * x) * (jnp.exp(x) + 1.0)


def _elu(x):
    # alpha = 1.0 ELU; the negative branch is clamped so the discarded side of the
    # where() can never overflow.
    return jnp.where(x > 0.0, x, _expm1(jnp.minimum(x, 0.0)))


def _sigmoid(x):
    # Numerically stable sigmoid on the EUP: sigmoid(x) = 0.5 * (1 + tanh(x/2)).
    return 0.5 * (jnp.tanh(0.5 * x) + 1.0)


def _odelstm_kernel(state_ref, w_ref, b_ref, dt_ref, out_ref, *, nhidden, n_steps):
    B = state_ref.shape[0]
    padw = w_ref.shape[2]  # 32

    # Unpack the [B, 128] state slab: [ x_obs | h | c | 0-pad ] at 32-lane offsets.
    # Pad lanes of h/c are zero on entry and stay zero through RK4 (padded weight
    # rows/cols and padded bias lanes are all zero).
    x_obs = state_ref[:, 0:padw]
    h = state_ref[:, padw:2 * padw]
    c = state_ref[:, 2 * padw:3 * padw]

    # Bias broadcasts hoisted once (used as the post-matmul add on every layer).
    b1, b2, b3, bi, bo = (jnp.broadcast_to(b_ref[s], (B, padw)) for s in range(5))

    def linear(x, w_idx, b_bcast):
        # One small MXU matmul per Linear; contraction is zero-padded to 32 so the
        # padding contributes nothing.  Weight tile is re-read from VMEM at each use
        # (vld slots are idle) to keep vreg pressure low across the unrolled loop.
        return jnp.dot(x, w_ref[w_idx], preferred_element_type=jnp.float32) + b_bcast

    def ode_func(hh):  # dh/dt = fc3(elu(fc2(elu(fc1(h)))))
        a = _elu(linear(hh, _W_FC1, b1))
        a = _elu(linear(a, _W_FC2, b2))
        return linear(a, _W_FC3, b3)

    # Fully-unrolled fixed-grid RK4 (torchdiffeq method='rk4', 3/8 rule); func ignores t.
    # n_steps is a static Python int, so dt_ref[i] is a static SMEM scalar read.
    for i in range(n_steps):
        dt = dt_ref[i]
        k1 = ode_func(h)
        k2 = ode_func(h + dt * (k1 * (1.0 / 3.0)))
        k3 = ode_func(h + dt * (k2 - k1 * (1.0 / 3.0)))
        k4 = ode_func(h + dt * (k1 - k2 + k3))
        h = h + dt * 0.125 * (k1 + 3.0 * (k2 + k3) + k4)

    # LSTM-style gates: the reference applies the SAME i2h Linear to the same cat(x, h)
    # for c_tilde, i, f and o, so all four gates are identical -> compute g once.
    # cat(x, h) @ Wi is split into x @ Wi_x + h @ Wi_h (two MXU dots, no lane shuffles).
    gate = (jnp.dot(x_obs, w_ref[_W_I2H_X], preferred_element_type=jnp.float32)
            + jnp.dot(h, w_ref[_W_I2H_H], preferred_element_type=jnp.float32)
            + bi)
    g = _sigmoid(gate)

    c_new = g * c + g * g            # f*c + i*c_tilde   with f == i == c_tilde == g
    h_new = g * jnp.tanh(c_new)
    out = linear(h_new, _W_H2O, bo)  # h2o pad rows are zero -> h_new pad lanes harmless

    # Zero the pad lanes of h_new/c_new (g = sigmoid(0) = 0.5 there) so the packed
    # output contains no garbage, then do ONE lane-dense [B, 128] store.
    lane = jax.lax.broadcasted_iota(jnp.int32, (B, padw), 1)
    valid = lane < nhidden
    h_st = jnp.where(valid, h_new, 0.0)
    c_st = jnp.where(valid, c_new, 0.0)
    zeros = jnp.zeros((B, out_ref.shape[1] - 3 * padw), jnp.float32)
    out_ref[...] = jnp.concatenate([out, h_st, c_st, zeros], axis=1)


def init_params(key, latent_dim=4, obs_dim=2, nhidden=25, ode_hidden=20, dtype=jnp.float32):
    """torch.nn.Linear-style U(-1/sqrt(fan_in), +) init; weights stored as [in, out]."""
    ks = jax.random.split(key, 10)

    def linear(kw, kb, fan_in, fan_out):
        bound = float(fan_in) ** -0.5
        w = jax.random.uniform(kw, (fan_in, fan_out), dtype, -bound, bound)
        b = jax.random.uniform(kb, (fan_out,), dtype, -bound, bound)
        return w, b

    ode_w1, ode_b1 = linear(ks[0], ks[1], nhidden, ode_hidden)
    ode_w2, ode_b2 = linear(ks[2], ks[3], ode_hidden, ode_hidden)
    ode_w3, ode_b3 = linear(ks[4], ks[5], ode_hidden, nhidden)
    i2h_w, i2h_b = linear(ks[6], ks[7], obs_dim + nhidden, nhidden)
    h2o_w, h2o_b = linear(ks[8], ks[9], nhidden, 2 * latent_dim)
    return dict(ode_w1=ode_w1, ode_b1=ode_b1, ode_w2=ode_w2, ode_b2=ode_b2,
                ode_w3=ode_w3, ode_b3=ode_b3, i2h_w=i2h_w, i2h_b=i2h_b,
                h2o_w=h2o_w, h2o_b=h2o_b)


def _pack_params(params, obs_dim):
    """Pad each weight to [PAD, PAD] / bias to [1, PAD] and stack -> 2 DMAs instead of 10.

    The i2h weight is split into its x-rows and h-rows so the kernel can implement
    cat(x, h) @ Wi as two MXU dots on the separately-packed x and h tiles.
    """
    i2h = params["i2h_w"].astype(jnp.float32)
    weights = [params["ode_w1"], params["ode_w2"], params["ode_w3"],
               i2h[:obs_dim], i2h[obs_dim:], params["h2o_w"]]
    biases = [params["ode_b1"], params["ode_b2"], params["ode_b3"],
              params["i2h_b"], params["h2o_b"]]

    wpack = jnp.zeros((len(weights), PAD, PAD), jnp.float32)
    for s, w in enumerate(weights):
        w = jnp.asarray(w, jnp.float32)
        wpack = wpack.at[s, :w.shape[0], :w.shape[1]].set(w)

    bpack = jnp.zeros((len(biases), 1, PAD), jnp.float32)
    for s, b in enumerate(biases):
        b = jnp.asarray(b, jnp.float32).reshape(1, -1)
        bpack = bpack.at[s, :, :b.shape[1]].set(b)
    return wpack, bpack


def _pack_state(x_obs, h0, c0):
    B = x_obs.shape[0]
    st = jnp.zeros((B, PACK_W), jnp.float32)
    st = st.at[:, :x_obs.shape[1]].set(x_obs)
    st = st.at[:, PAD:PAD + h0.shape[1]].set(h0)
    st = st.at[:, 2 * PAD:2 * PAD + c0.shape[1]].set(c0)
    return st


def recognition_odelstm_forward(params, x_obs, h0, c0, t):
    """Fused Pallas forward of RecognitionODELSTM.forward(x, h, c, t) -> (out, h, c)."""
    B, obs_dim = x_obs.shape
    nhidden = h0.shape[1]
    out_dim = params["h2o_w"].shape[1]
    n_steps = int(t.shape[0]) - 1

    dt = (t[1:] - t[:-1]).astype(jnp.float32)
    wpack, bpack = _pack_params(params, obs_dim)
    state = _pack_state(x_obs.astype(jnp.float32), h0.astype(jnp.float32),
                        c0.astype(jnp.float32))

    kernel = functools.partial(_odelstm_kernel, nhidden=nhidden, n_steps=n_steps)

    packed_out = pl.pallas_call(
        kernel,
        out_shape=jax.ShapeDtypeStruct((B, PACK_W), jnp.float32),
        in_specs=[
            pl.BlockSpec(state.shape, lambda: (0, 0)),           # packed [x | h | c]
            pl.BlockSpec(wpack.shape, lambda: (0, 0, 0)),        # packed weights (VMEM-resident)
            pl.BlockSpec(bpack.shape, lambda: (0, 0, 0)),        # packed biases
            pl.BlockSpec(memory_space=pltpu.MemorySpace.SMEM),   # dt values, scalar-read per step
        ],
        out_specs=pl.BlockSpec((B, PACK_W), lambda: (0, 0)),      # lane-dense packed output
    )(state, wpack, bpack, dt)

    out = packed_out[:, :out_dim]
    h_new = packed_out[:, PAD:PAD + nhidden]
    c_new = packed_out[:, 2 * PAD:2 * PAD + nhidden]
    return out, h_new, c_new


def recognition_odelstm_ref(params, x_obs, h0, c0, t):
    """Pure-JAX reference (f32 dots, same 3/8-rule RK4) for correctness checking."""
    mm = lambda a, b: jnp.dot(a, b, precision=jax.lax.Precision.HIGHEST)
    elu = lambda v: jnp.where(v > 0, v, jnp.expm1(jnp.minimum(v, 0.0)))

    def f(h):
        a = elu(mm(h, params["ode_w1"]) + params["ode_b1"])
        a = elu(mm(a, params["ode_w2"]) + params["ode_b2"])
        return mm(a, params["ode_w3"]) + params["ode_b3"]

    h = h0
    for i in range(t.shape[0] - 1):
        dt = t[i + 1] - t[i]
        k1 = f(h)
        k2 = f(h + dt * k1 / 3.0)
        k3 = f(h + dt * (k2 - k1 / 3.0))
        k4 = f(h + dt * (k1 - k2 + k3))
        h = h + dt * (k1 + 3.0 * (k2 + k3) + k4) / 8.0

    comb = jnp.concatenate([x_obs, h], axis=1)
    g = jax.nn.sigmoid(mm(comb, params["i2h_w"]) + params["i2h_b"])
    c = g * c0 + g * g
    h = g * jnp.tanh(c)
    out = mm(h, params["h2o_w"]) + params["h2o_b"]
    return out, h, c


if __name__ == "__main__":
    key = jax.random.PRNGKey(0)
    k_param, k_x, k_h, k_c = jax.random.split(key, 4)

    latent_dim, obs_dim, nhidden, ode_hidden = 4, 2, 25, 20
    batch, T = 8, 8

    params = init_params(k_param, latent_dim, obs_dim, nhidden, ode_hidden)
    x_obs = jax.random.normal(k_x, (batch, obs_dim), jnp.float32)
    h0 = 0.1 * jax.random.normal(k_h, (batch, nhidden), jnp.float32)
    c0 = 0.1 * jax.random.normal(k_c, (batch, nhidden), jnp.float32)
    t = jnp.linspace(0.0, 0.7, T).astype(jnp.float32)

    fwd = jax.jit(recognition_odelstm_forward)
    out, h1, c1 = jax.block_until_ready(fwd(params, x_obs, h0, c0, t))

    ref_out, ref_h, ref_c = jax.block_until_ready(
        recognition_odelstm_ref(params, x_obs, h0, c0, t))

    assert out.shape == (batch, 2 * latent_dim)
    assert h1.shape == (batch, nhidden) and c1.shape == (batch, nhidden)
    for got, want, name in ((out, ref_out, "out"), (h1, ref_h, "h"), (c1, ref_c, "c")):
        err = float(jnp.max(jnp.abs(got - want)))
        assert jnp.allclose(got, want, atol=1e-4, rtol=1e-4), \
            f"{name} mismatch vs JAX reference (max abs err {err})"
    print("KERNEL_OK")
</pallas_src>

<mosaic_0001>
module attributes {stable_mosaic.version = 11 : i64} {
  func.func @_odelstm_kernel(%arg0: memref<8x128xf32, #tpu.memory_space<vmem>>, %arg1: memref<6x32x32xf32, #tpu.memory_space<vmem>>, %arg2: memref<5x1x32xf32, #tpu.memory_space<vmem>>, %arg3: memref<7xf32, #tpu.memory_space<smem>>, %arg4: memref<8x128xf32, #tpu.memory_space<vmem>>) attributes {dimension_semantics = [], scalar_prefetch = 0 : i64, scratch_operands = 0 : i64, tpu.core_type = #tpu.core_type<tc>} {
    %c0 = arith.constant 0 : index
    %c0_0 = arith.constant 0 : index
    %0 = vector.load %arg0[%c0, %c0_0] : memref<8x128xf32, #tpu.memory_space<vmem>>, vector<8x32xf32>
    %c0_1 = arith.constant 0 : index
    %c32 = arith.constant 32 : index
    %1 = vector.load %arg0[%c0_1, %c32] : memref<8x128xf32, #tpu.memory_space<vmem>>, vector<8x32xf32>
    %c0_2 = arith.constant 0 : index
    %c64 = arith.constant 64 : index
    %2 = vector.load %arg0[%c0_2, %c64] : memref<8x128xf32, #tpu.memory_space<vmem>>, vector<8x32xf32>
    %c0_3 = arith.constant 0 : index
    %c0_4 = arith.constant 0 : index
    %c0_5 = arith.constant 0 : index
    %3 = vector.load %arg2[%c0_3, %c0_4, %c0_5] : memref<5x1x32xf32, #tpu.memory_space<vmem>>, vector<1x1x32xf32>
    %4 = vector.shape_cast %3 : vector<1x1x32xf32> to vector<1x32xf32>
    %5 = vector.shape_cast %4 : vector<1x32xf32> to vector<1x32xf32>
    %6 = vector.broadcast %5 : vector<1x32xf32> to vector<8x32xf32>
    %c1 = arith.constant 1 : index
    %c0_6 = arith.constant 0 : index
    %c0_7 = arith.constant 0 : index
    %7 = vector.load %arg2[%c1, %c0_6, %c0_7] : memref<5x1x32xf32, #tpu.memory_space<vmem>>, vector<1x1x32xf32>
    %8 = vector.shape_cast %7 : vector<1x1x32xf32> to vector<1x32xf32>
    %9 = vector.shape_cast %8 : vector<1x32xf32> to vector<1x32xf32>
    %10 = vector.broadcast %9 : vector<1x32xf32> to vector<8x32xf32>
    %c2 = arith.constant 2 : index
    %c0_8 = arith.constant 0 : index
    %c0_9 = arith.constant 0 : index
    %11 = vector.load %arg2[%c2, %c0_8, %c0_9] : memref<5x1x32xf32, #tpu.memory_space<vmem>>, vector<1x1x32xf32>
    %12 = vector.shape_cast %11 : vector<1x1x32xf32> to vector<1x32xf32>
    %13 = vector.shape_cast %12 : vector<1x32xf32> to vector<1x32xf32>
    %14 = vector.broadcast %13 : vector<1x32xf32> to vector<8x32xf32>
    %c3 = arith.constant 3 : index
    %c0_10 = arith.constant 0 : index
    %c0_11 = arith.constant 0 : index
    %15 = vector.load %arg2[%c3, %c0_10, %c0_11] : memref<5x1x32xf32, #tpu.memory_space<vmem>>, vector<1x1x32xf32>
    %16 = vector.shape_cast %15 : vector<1x1x32xf32> to vector<1x32xf32>
    %17 = vector.shape_cast %16 : vector<1x32xf32> to vector<1x32xf32>
    %18 = vector.broadcast %17 : vector<1x32xf32> to vector<8x32xf32>
    %c4 = arith.constant 4 : index
    %c0_12 = arith.constant 0 : index
    %c0_13 = arith.constant 0 : index
    %19 = vector.load %arg2[%c4, %c0_12, %c0_13] : memref<5x1x32xf32, #tpu.memory_space<vmem>>, vector<1x1x32xf32>
    %20 = vector.shape_cast %19 : vector<1x1x32xf32> to vector<1x32xf32>
    %21 = vector.shape_cast %20 : vector<1x32xf32> to vector<1x32xf32>
    %22 = vector.broadcast %21 : vector<1x32xf32> to vector<8x32xf32>
    %c0_14 = arith.constant 0 : index
    %23 = memref.load %arg3[%c0_14] : memref<7xf32, #tpu.memory_space<smem>>
    %c0_15 = arith.constant 0 : index
    %c0_16 = arith.constant 0 : index
    %c0_17 = arith.constant 0 : index
    %24 = vector.load %arg1[%c0_15, %c0_16, %c0_17] : memref<6x32x32xf32, #tpu.memory_space<vmem>>, vector<1x32x32xf32>
    %25 = vector.shape_cast %24 : vector<1x32x32xf32> to vector<32x32xf32>
    %cst = arith.constant dense<0.000000e+00> : vector<8x32xf32>
    %26 = tpu.matmul %1, %25, %cst {dimension_numbers = #tpu.dot_dimension_numbers<[1], [0], [0], [1], [0, 0, 1, 1], [], []>} : vector<8x32xf32>, vector<32x32xf32>, vector<8x32xf32> -> vector<8x32xf32>
    %27 = arith.addf %26, %6 : vector<8x32xf32>
    %cst_18 = arith.constant 0.000000e+00 : f32
    %28 = vector.broadcast %cst_18 : f32 to vector<8x32xf32>
    %29 = arith.cmpf ogt, %27, %28 : vector<8x32xf32>
    %cst_19 = arith.constant 0.000000e+00 : f32
    %30 = vector.broadcast %cst_19 : f32 to vector<8x32xf32>
    %31 = arith.minimumf %27, %30 : vector<8x32xf32>
    %cst_20 = arith.constant 5.000000e-01 : f32
    %32 = vector.broadcast %cst_20 : f32 to vector<8x32xf32>
    %33 = arith.mulf %32, %31 : vector<8x32xf32>
    %34 = math.tanh %33 : vector<8x32xf32>
    %35 = math.exp %31 : vector<8x32xf32>
    %cst_21 = arith.constant 1.000000e+00 : f32
    %36 = vector.broadcast %cst_21 : f32 to vector<8x32xf32>
    %37 = arith.addf %35, %36 : vector<8x32xf32>
    %38 = arith.mulf %34, %37 : vector<8x32xf32>
    %39 = arith.select %29, %27, %38 : vector<8x32xi1>, vector<8x32xf32>
    %c1_22 = arith.constant 1 : index
    %c0_23 = arith.constant 0 : index
    %c0_24 = arith.constant 0 : index
    %40 = vector.load %arg1[%c1_22, %c0_23, %c0_24] : memref<6x32x32xf32, #tpu.memory_space<vmem>>, vector<1x32x32xf32>
    %41 = vector.shape_cast %40 : vector<1x32x32xf32> to vector<32x32xf32>
    %cst_25 = arith.constant dense<0.000000e+00> : vector<8x32xf32>
    %42 = tpu.matmul %39, %41, %cst_25 {dimension_numbers = #tpu.dot_dimension_numbers<[1], [0], [0], [1], [0, 0, 1, 1], [], []>} : vector<8x32xf32>, vector<32x32xf32>, vector<8x32xf32> -> vector<8x32xf32>
    %43 = arith.addf %42, %10 : vector<8x32xf32>
    %cst_26 = arith.constant 0.000000e+00 : f32
    %44 = vector.broadcast %cst_26 : f32 to vector<8x32xf32>
    %45 = arith.cmpf ogt, %43, %44 : vector<8x32xf32>
    %cst_27 = arith.constant 0.000000e+00 : f32
    %46 = vector.broadcast %cst_27 : f32 to vector<8x32xf32>
    %47 = arith.minimumf %43, %46 : vector<8x32xf32>
    %cst_28 = arith.constant 5.000000e-01 : f32
    %48 = vector.broadcast %cst_28 : f32 to vector<8x32xf32>
    %49 = arith.mulf %48, %47 : vector<8x32xf32>
    %50 = math.tanh %49 : vector<8x32xf32>
    %51 = math.exp %47 : vector<8x32xf32>
    %cst_29 = arith.constant 1.000000e+00 : f32
    %52 = vector.broadcast %cst_29 : f32 to vector<8x32xf32>
    %53 = arith.addf %51, %52 : vector<8x32xf32>
    %54 = arith.mulf %50, %53 : vector<8x32xf32>
    %55 = arith.select %45, %43, %54 : vector<8x32xi1>, vector<8x32xf32>
    %c2_30 = arith.constant 2 : index
    %c0_31 = arith.constant 0 : index
    %c0_32 = arith.constant 0 : index
    %56 = vector.load %arg1[%c2_30, %c0_31, %c0_32] : memref<6x32x32xf32, #tpu.memory_space<vmem>>, vector<1x32x32xf32>
    %57 = vector.shape_cast %56 : vector<1x32x32xf32> to vector<32x32xf32>
    %cst_33 = arith.constant dense<0.000000e+00> : vector<8x32xf32>
    %58 = tpu.matmul %55, %57, %cst_33 {dimension_numbers = #tpu.dot_dimension_numbers<[1], [0], [0], [1], [0, 0, 1, 1], [], []>} : vector<8x32xf32>, vector<32x32xf32>, vector<8x32xf32> -> vector<8x32xf32>
    %59 = arith.addf %58, %14 : vector<8x32xf32>
    %cst_34 = arith.constant 0.333333343 : f32
    %60 = vector.broadcast %cst_34 : f32 to vector<8x32xf32>
    %61 = arith.mulf %59, %60 : vector<8x32xf32>
    %62 = vector.broadcast %23 : f32 to vector<8x32xf32>
    %63 = arith.mulf %62, %61 : vector<8x32xf32>
    %64 = arith.addf %1, %63 : vector<8x32xf32>
    %c0_35 = arith.constant 0 : index
    %c0_36 = arith.constant 0 : index
    %c0_37 = arith.constant 0 : index
    %65 = vector.load %arg1[%c0_35, %c0_36, %c0_37] : memref<6x32x32xf32, #tpu.memory_space<vmem>>, vector<1x32x32xf32>
    %66 = vector.shape_cast %65 : vector<1x32x32xf32> to vector<32x32xf32>
    %cst_38 = arith.constant dense<0.000000e+00> : vector<8x32xf32>
    %67 = tpu.matmul %64, %66, %cst_38 {dimension_numbers = #tpu.dot_dimension_numbers<[1], [0], [0], [1], [0, 0, 1, 1], [], []>} : vector<8x32xf32>, vector<32x32xf32>, vector<8x32xf32> -> vector<8x32xf32>
    %68 = arith.addf %67, %6 : vector<8x32xf32>
    %cst_39 = arith.constant 0.000000e+00 : f32
    %69 = vector.broadcast %cst_39 : f32 to vector<8x32xf32>
    %70 = arith.cmpf ogt, %68, %69 : vector<8x32xf32>
    %cst_40 = arith.constant 0.000000e+00 : f32
    %71 = vector.broadcast %cst_40 : f32 to vector<8x32xf32>
    %72 = arith.minimumf %68, %71 : vector<8x32xf32>
    %cst_41 = arith.constant 5.000000e-01 : f32
    %73 = vector.broadcast %cst_41 : f32 to vector<8x32xf32>
    %74 = arith.mulf %73, %72 : vector<8x32xf32>
    %75 = math.tanh %74 : vector<8x32xf32>
    %76 = math.exp %72 : vector<8x32xf32>
    %cst_42 = arith.constant 1.000000e+00 : f32
    %77 = vector.broadcast %cst_42 : f32 to vector<8x32xf32>
    %78 = arith.addf %76, %77 : vector<8x32xf32>
    %79 = arith.mulf %75, %78 : vector<8x32xf32>
    %80 = arith.select %70, %68, %79 : vector<8x32xi1>, vector<8x32xf32>
    %c1_43 = arith.constant 1 : index
    %c0_44 = arith.constant 0 : index
    %c0_45 = arith.constant 0 : index
    %81 = vector.load %arg1[%c1_43, %c0_44, %c0_45] : memref<6x32x32xf32, #tpu.memory_space<vmem>>, vector<1x32x32xf32>
    %82 = vector.shape_cast %81 : vector<1x32x32xf32> to vector<32x32xf32>
    %cst_46 = arith.constant dense<0.000000e+00> : vector<8x32xf32>
    %83 = tpu.matmul %80, %82, %cst_46 {dimension_numbers = #tpu.dot_dimension_numbers<[1], [0], [0], [1], [0, 0, 1, 1], [], []>} : vector<8x32xf32>, vector<32x32xf32>, vector<8x32xf32> -> vector<8x32xf32>
    %84 = arith.addf %83, %10 : vector<8x32xf32>
    %cst_47 = arith.constant 0.000000e+00 : f32
    %85 = vector.broadcast %cst_47 : f32 to vector<8x32xf32>
    %86 = arith.cmpf ogt, %84, %85 : vector<8x32xf32>
    %cst_48 = arith.constant 0.000000e+00 : f32
    %87 = vector.broadcast %cst_48 : f32 to vector<8x32xf32>
    %88 = arith.minimumf %84, %87 : vector<8x32xf32>
    %cst_49 = arith.constant 5.000000e-01 : f32
    %89 = vector.broadcast %cst_49 : f32 to vector<8x32xf32>
    %90 = arith.mulf %89, %88 : vector<8x32xf32>
    %91 = math.tanh %90 : vector<8x32xf32>
    %92 = math.exp %88 : vector<8x32xf32>
    %cst_50 = arith.constant 1.000000e+00 : f32
    %93 = vector.broadcast %cst_50 : f32 to vector<8x32xf32>
    %94 = arith.addf %92, %93 : vector<8x32xf32>
    %95 = arith.mulf %91, %94 : vector<8x32xf32>
    %96 = arith.select %86, %84, %95 : vector<8x32xi1>, vector<8x32xf32>
    %c2_51 = arith.constant 2 : index
    %c0_52 = arith.constant 0 : index
    %c0_53 = arith.constant 0 : index
    %97 = vector.load %arg1[%c2_51, %c0_52, %c0_53] : memref<6x32x32xf32, #tpu.memory_space<vmem>>, vector<1x32x32xf32>
    %98 = vector.shape_cast %97 : vector<1x32x32xf32> to vector<32x32xf32>
    %cst_54 = arith.constant dense<0.000000e+00> : vector<8x32xf32>
    %99 = tpu.matmul %96, %98, %cst_54 {dimension_numbers = #tpu.dot_dimension_numbers<[1], [0], [0], [1], [0, 0, 1, 1], [], []>} : vector<8x32xf32>, vector<32x32xf32>, vector<8x32xf32> -> vector<8x32xf32>
    %100 = arith.addf %99, %14 : vector<8x32xf32>
    %cst_55 = arith.constant 0.333333343 : f32
    %101 = vector.broadcast %cst_55 : f32 to vector<8x32xf32>
    %102 = arith.mulf %59, %101 : vector<8x32xf32>
    %103 = arith.subf %100, %102 : vector<8x32xf32>
    %104 = vector.broadcast %23 : f32 to vector<8x32xf32>
    %105 = arith.mulf %104, %103 : vector<8x32xf32>
    %106 = arith.addf %1, %105 : vector<8x32xf32>
    %c0_56 = arith.constant 0 : index
    %c0_57 = arith.constant 0 : index
    %c0_58 = arith.constant 0 : index
    %107 = vector.load %arg1[%c0_56, %c0_57, %c0_58] : memref<6x32x32xf32, #tpu.memory_space<vmem>>, vector<1x32x32xf32>
    %108 = vector.shape_cast %107 : vector<1x32x32xf32> to vector<32x32xf32>
    %cst_59 = arith.constant dense<0.000000e+00> : vector<8x32xf32>
    %109 = tpu.matmul %106, %108, %cst_59 {dimension_numbers = #tpu.dot_dimension_numbers<[1], [0], [0], [1], [0, 0, 1, 1], [], []>} : vector<8x32xf32>, vector<32x32xf32>, vector<8x32xf32> -> vector<8x32xf32>
    %110 = arith.addf %109, %6 : vector<8x32xf32>
    %cst_60 = arith.constant 0.000000e+00 : f32
    %111 = vector.broadcast %cst_60 : f32 to vector<8x32xf32>
    %112 = arith.cmpf ogt, %110, %111 : vector<8x32xf32>
    %cst_61 = arith.constant 0.000000e+00 : f32
    %113 = vector.broadcast %cst_61 : f32 to vector<8x32xf32>
    %114 = arith.minimumf %110, %113 : vector<8x32xf32>
    %cst_62 = arith.constant 5.000000e-01 : f32
    %115 = vector.broadcast %cst_62 : f32 to vector<8x32xf32>
    %116 = arith.mulf %115, %114 : vector<8x32xf32>
    %117 = math.tanh %116 : vector<8x32xf32>
    %118 = math.exp %114 : vector<8x32xf32>
    %cst_63 = arith.constant 1.000000e+00 : f32
    %119 = vector.broadcast %cst_63 : f32 to vector<8x32xf32>
    %120 = arith.addf %118, %119 : vector<8x32xf32>
    %121 = arith.mulf %117, %120 : vector<8x32xf32>
    %122 = arith.select %112, %110, %121 : vector<8x32xi1>, vector<8x32xf32>
    %c1_64 = arith.constant 1 : index
    %c0_65 = arith.constant 0 : index
    %c0_66 = arith.constant 0 : index
    %123 = vector.load %arg1[%c1_64, %c0_65, %c0_66] : memref<6x32x32xf32, #tpu.memory_space<vmem>>, vector<1x32x32xf32>
    %124 = vector.shape_cast %123 : vector<1x32x32xf32> to vector<32x32xf32>
    %cst_67 = arith.constant dense<0.000000e+00> : vector<8x32xf32>
    %125 = tpu.matmul %122, %124, %cst_67 {dimension_numbers = #tpu.dot_dimension_numbers<[1], [0], [0], [1], [0, 0, 1, 1], [], []>} : vector<8x32xf32>, vector<32x32xf32>, vector<8x32xf32> -> vector<8x32xf32>
    %126 = arith.addf %125, %10 : vector<8x32xf32>
    %cst_68 = arith.constant 0.000000e+00 : f32
    %127 = vector.broadcast %cst_68 : f32 to vector<8x32xf32>
    %128 = arith.cmpf ogt, %126, %127 : vector<8x32xf32>
    %cst_69 = arith.constant 0.000000e+00 : f32
    %129 = vector.broadcast %cst_69 : f32 to vector<8x32xf32>
    %130 = arith.minimumf %126, %129 : vector<8x32xf32>
    %cst_70 = arith.constant 5.000000e-01 : f32
    %131 = vector.broadcast %cst_70 : f32 to vector<8x32xf32>
    %132 = arith.mulf %131, %130 : vector<8x32xf32>
    %133 = math.tanh %132 : vector<8x32xf32>
    %134 = math.exp %130 : vector<8x32xf32>
    %cst_71 = arith.constant 1.000000e+00 : f32
    %135 = vector.broadcast %cst_71 : f32 to vector<8x32xf32>
    %136 = arith.addf %134, %135 : vector<8x32xf32>
    %137 = arith.mulf %133, %136 : vector<8x32xf32>
    %138 = arith.select %128, %126, %137 : vector<8x32xi1>, vector<8x32xf32>
    %c2_72 = arith.constant 2 : index
    %c0_73 = arith.constant 0 : index
    %c0_74 = arith.constant 0 : index
    %139 = vector.load %arg1[%c2_72, %c0_73, %c0_74] : memref<6x32x32xf32, #tpu.memory_space<vmem>>, vector<1x32x32xf32>
    %140 = vector.shape_cast %139 : vector<1x32x32xf32> to vector<32x32xf32>
    %cst_75 = arith.constant dense<0.000000e+00> : vector<8x32xf32>
    %141 = tpu.matmul %138, %140, %cst_75 {dimension_numbers = #tpu.dot_dimension_numbers<[1], [0], [0], [1], [0, 0, 1, 1], [], []>} : vector<8x32xf32>, vector<32x32xf32>, vector<8x32xf32> -> vector<8x32xf32>
    %142 = arith.addf %141, %14 : vector<8x32xf32>
    %143 = arith.subf %59, %100 : vector<8x32xf32>
    %144 = arith.addf %143, %142 : vector<8x32xf32>
    %145 = vector.broadcast %23 : f32 to vector<8x32xf32>
    %146 = arith.mulf %145, %144 : vector<8x32xf32>
    %147 = arith.addf %1, %146 : vector<8x32xf32>
    %c0_76 = arith.constant 0 : index
    %c0_77 = arith.constant 0 : index
    %c0_78 = arith.constant 0 : index
    %148 = vector.load %arg1[%c0_76, %c0_77, %c0_78] : memref<6x32x32xf32, #tpu.memory_space<vmem>>, vector<1x32x32xf32>
    %149 = vector.shape_cast %148 : vector<1x32x32xf32> to vector<32x32xf32>
    %cst_79 = arith.constant dense<0.000000e+00> : vector<8x32xf32>
    %150 = tpu.matmul %147, %149, %cst_79 {dimension_numbers = #tpu.dot_dimension_numbers<[1], [0], [0], [1], [0, 0, 1, 1], [], []>} : vector<8x32xf32>, vector<32x32xf32>, vector<8x32xf32> -> vector<8x32xf32>
    %151 = arith.addf %150, %6 : vector<8x32xf32>
    %cst_80 = arith.constant 0.000000e+00 : f32
    %152 = vector.broadcast %cst_80 : f32 to vector<8x32xf32>
    %153 = arith.cmpf ogt, %151, %152 : vector<8x32xf32>
    %cst_81 = arith.constant 0.000000e+00 : f32
    %154 = vector.broadcast %cst_81 : f32 to vector<8x32xf32>
    %155 = arith.minimumf %151, %154 : vector<8x32xf32>
    %cst_82 = arith.constant 5.000000e-01 : f32
    %156 = vector.broadcast %cst_82 : f32 to vector<8x32xf32>
    %157 = arith.mulf %156, %155 : vector<8x32xf32>
    %158 = math.tanh %157 : vector<8x32xf32>
    %159 = math.exp %155 : vector<8x32xf32>
    %cst_83 = arith.constant 1.000000e+00 : f32
    %160 = vector.broadcast %cst_83 : f32 to vector<8x32xf32>
    %161 = arith.addf %159, %160 : vector<8x32xf32>
    %162 = arith.mulf %158, %161 : vector<8x32xf32>
    %163 = arith.select %153, %151, %162 : vector<8x32xi1>, vector<8x32xf32>
    %c1_84 = arith.constant 1 : index
    %c0_85 = arith.constant 0 : index
    %c0_86 = arith.constant 0 : index
    %164 = vector.load %arg1[%c1_84, %c0_85, %c0_86] : memref<6x32x32xf32, #tpu.memory_space<vmem>>, vector<1x32x32xf32>
    %165 = vector.shape_cast %164 : vector<1x32x32xf32> to vector<32x32xf32>
    %cst_87 = arith.constant dense<0.000000e+00> : vector<8x32xf32>
    %166 = tpu.matmul %163, %165, %cst_87 {dimension_numbers = #tpu.dot_dimension_numbers<[1], [0], [0], [1], [0, 0, 1, 1], [], []>} : vector<8x32xf32>, vector<32x32xf32>, vector<8x32xf32> -> vector<8x32xf32>
    %167 = arith.addf %166, %10 : vector<8x32xf32>
    %cst_88 = arith.constant 0.000000e+00 : f32
    %168 = vector.broadcast %cst_88 : f32 to vector<8x32xf32>
    %169 = arith.cmpf ogt, %167, %168 : vector<8x32xf32>
    %cst_89 = arith.constant 0.000000e+00 : f32
    %170 = vector.broadcast %cst_89 : f32 to vector<8x32xf32>
    %171 = arith.minimumf %167, %170 : vector<8x32xf32>
    %cst_90 = arith.constant 5.000000e-01 : f32
    %172 = vector.broadcast %cst_90 : f32 to vector<8x32xf32>
    %173 = arith.mulf %172, %171 : vector<8x32xf32>
    %174 = math.tanh %173 : vector<8x32xf32>
    %175 = math.exp %171 : vector<8x32xf32>
    %cst_91 = arith.constant 1.000000e+00 : f32
    %176 = vector.broadcast %cst_91 : f32 to vector<8x32xf32>
    %177 = arith.addf %175, %176 : vector<8x32xf32>
    %178 = arith.mulf %174, %177 : vector<8x32xf32>
    %179 = arith.select %169, %167, %178 : vector<8x32xi1>, vector<8x32xf32>
    %c2_92 = arith.constant 2 : index
    %c0_93 = arith.constant 0 : index
    %c0_94 = arith.constant 0 : index
    %180 = vector.load %arg1[%c2_92, %c0_93, %c0_94] : memref<6x32x32xf32, #tpu.memory_space<vmem>>, vector<1x32x32xf32>
    %181 = vector.shape_cast %180 : vector<1x32x32xf32> to vector<32x32xf32>
    %cst_95 = arith.constant dense<0.000000e+00> : vector<8x32xf32>
    %182 = tpu.matmul %179, %181, %cst_95 {dimension_numbers = #tpu.dot_dimension_numbers<[1], [0], [0], [1], [0, 0, 1, 1], [], []>} : vector<8x32xf32>, vector<32x32xf32>, vector<8x32xf32> -> vector<8x32xf32>
    %183 = arith.addf %182, %14 : vector<8x32xf32>
    %cst_96 = arith.constant 1.250000e-01 : f32
    %184 = arith.mulf %23, %cst_96 : f32
    %185 = arith.addf %100, %142 : vector<8x32xf32>
    %cst_97 = arith.constant 3.000000e+00 : f32
    %186 = vector.broadcast %cst_97 : f32 to vector<8x32xf32>
    %187 = arith.mulf %186, %185 : vector<8x32xf32>
    %188 = arith.addf %59, %187 : vector<8x32xf32>
    %189 = arith.addf %188, %183 : vector<8x32xf32>
    %190 = vector.broadcast %184 : f32 to vector<8x32xf32>
    %191 = arith.mulf %190, %189 : vector<8x32xf32>
    %192 = arith.addf %1, %191 : vector<8x32xf32>
    %c1_98 = arith.constant 1 : index
    %193 = memref.load %arg3[%c1_98] : memref<7xf32, #tpu.memory_space<smem>>
    %c0_99 = arith.constant 0 : index
    %c0_100 = arith.constant 0 : index
    %c0_101 = arith.constant 0 : index
    %194 = vector.load %arg1[%c0_99, %c0_100, %c0_101] : memref<6x32x32xf32, #tpu.memory_space<vmem>>, vector<1x32x32xf32>
    %195 = vector.shape_cast %194 : vector<1x32x32xf32> to vector<32x32xf32>
    %cst_102 = arith.constant dense<0.000000e+00> : vector<8x32xf32>
    %196 = tpu.matmul %192, %195, %cst_102 {dimension_numbers = #tpu.dot_dimension_numbers<[1], [0], [0], [1], [0, 0, 1, 1], [], []>} : vector<8x32xf32>, vector<32x32xf32>, vector<8x32xf32> -> vector<8x32xf32>
    %197 = arith.addf %196, %6 : vector<8x32xf32>
    %cst_103 = arith.constant 0.000000e+00 : f32
    %198 = vector.broadcast %cst_103 : f32 to vector<8x32xf32>
    %199 = arith.cmpf ogt, %197, %198 : vector<8x32xf32>
    %cst_104 = arith.constant 0.000000e+00 : f32
    %200 = vector.broadcast %cst_104 : f32 to vector<8x32xf32>
    %201 = arith.minimumf %197, %200 : vector<8x32xf32>
    %cst_105 = arith.constant 5.000000e-01 : f32
    %202 = vector.broadcast %cst_105 : f32 to vector<8x32xf32>
    %203 = arith.mulf %202, %201 : vector<8x32xf32>
    %204 = math.tanh %203 : vector<8x32xf32>
    %205 = math.exp %201 : vector<8x32xf32>
    %cst_106 = arith.constant 1.000000e+00 : f32
    %206 = vector.broadcast %cst_106 : f32 to vector<8x32xf32>
    %207 = arith.addf %205, %206 : vector<8x32xf32>
    %208 = arith.mulf %204, %207 : vector<8x32xf32>
    %209 = arith.select %199, %197, %208 : vector<8x32xi1>, vector<8x32xf32>
    %c1_107 = arith.constant 1 : index
    %c0_108 = arith.constant 0 : index
    %c0_109 = arith.constant 0 : index
    %210 = vector.load %arg1[%c1_107, %c0_108, %c0_109] : memref<6x32x32xf32, #tpu.memory_space<vmem>>, vector<1x32x32xf32>
    %211 = vector.shape_cast %210 : vector<1x32x32xf32> to vector<32x32xf32>
    %cst_110 = arith.constant dense<0.000000e+00> : vector<8x32xf32>
    %212 = tpu.matmul %209, %211, %cst_110 {dimension_numbers = #tpu.dot_dimension_numbers<[1], [0], [0], [1], [0, 0, 1, 1], [], []>} : vector<8x32xf32>, vector<32x32xf32>, vector<8x32xf32> -> vector<8x32xf32>
    %213 = arith.addf %212, %10 : vector<8x32xf32>
    %cst_111 = arith.constant 0.000000e+00 : f32
    %214 = vector.broadcast %cst_111 : f32 to vector<8x32xf32>
    %215 = arith.cmpf ogt, %213, %214 : vector<8x32xf32>
    %cst_112 = arith.constant 0.000000e+00 : f32
    %216 = vector.broadcast %cst_112 : f32 to vector<8x32xf32>
    %217 = arith.minimumf %213, %216 : vector<8x32xf32>
    %cst_113 = arith.constant 5.000000e-01 : f32
    %218 = vector.broadcast %cst_113 : f32 to vector<8x32xf32>
    %219 = arith.mulf %218, %217 : vector<8x32xf32>
    %220 = math.tanh %219 : vector<8x32xf32>
    %221 = math.exp %217 : vector<8x32xf32>
    %cst_114 = arith.constant 1.000000e+00 : f32
    %222 = vector.broadcast %cst_114 : f32 to vector<8x32xf32>
    %223 = arith.addf %221, %222 : vector<8x32xf32>
    %224 = arith.mulf %220, %223 : vector<8x32xf32>
    %225 = arith.select %215, %213, %224 : vector<8x32xi1>, vector<8x32xf32>
    %c2_115 = arith.constant 2 : index
    %c0_116 = arith.constant 0 : index
    %c0_117 = arith.constant 0 : index
    %226 = vector.load %arg1[%c2_115, %c0_116, %c0_117] : memref<6x32x32xf32, #tpu.memory_space<vmem>>, vector<1x32x32xf32>
    %227 = vector.shape_cast %226 : vector<1x32x32xf32> to vector<32x32xf32>
    %cst_118 = arith.constant dense<0.000000e+00> : vector<8x32xf32>
    %228 = tpu.matmul %225, %227, %cst_118 {dimension_numbers = #tpu.dot_dimension_numbers<[1], [0], [0], [1], [0, 0, 1, 1], [], []>} : vector<8x32xf32>, vector<32x32xf32>, vector<8x32xf32> -> vector<8x32xf32>
    %229 = arith.addf %228, %14 : vector<8x32xf32>
    %cst_119 = arith.constant 0.333333343 : f32
    %230 = vector.broadcast %cst_119 : f32 to vector<8x32xf32>
    %231 = arith.mulf %229, %230 : vector<8x32xf32>
    %232 = vector.broadcast %193 : f32 to vector<8x32xf32>
    %233 = arith.mulf %232, %231 : vector<8x32xf32>
    %234 = arith.addf %192, %233 : vector<8x32xf32>
    %c0_120 = arith.constant 0 : index
    %c0_121 = arith.constant 0 : index
    %c0_122 = arith.constant 0 : index
    %235 = vector.load %arg1[%c0_120, %c0_121, %c0_122] : memref<6x32x32xf32, #tpu.memory_space<vmem>>, vector<1x32x32xf32>
    %236 = vector.shape_cast %235 : vector<1x32x32xf32> to vector<32x32xf32>
    %cst_123 = arith.constant dense<0.000000e+00> : vector<8x32xf32>
    %237 = tpu.matmul %234, %236, %cst_123 {dimension_numbers = #tpu.dot_dimension_numbers<[1], [0], [0], [1], [0, 0, 1, 1], [], []>} : vector<8x32xf32>, vector<32x32xf32>, vector<8x32xf32> -> vector<8x32xf32>
    %238 = arith.addf %237, %6 : vector<8x32xf32>
    %cst_124 = arith.constant 0.000000e+00 : f32
    %239 = vector.broadcast %cst_124 : f32 to vector<8x32xf32>
    %240 = arith.cmpf ogt, %238, %239 : vector<8x32xf32>
    %cst_125 = arith.constant 0.000000e+00 : f32
    %241 = vector.broadcast %cst_125 : f32 to vector<8x32xf32>
    %242 = arith.minimumf %238, %241 : vector<8x32xf32>
    %cst_126 = arith.constant 5.000000e-01 : f32
    %243 = vector.broadcast %cst_126 : f32 to vector<8x32xf32>
    %244 = arith.mulf %243, %242 : vector<8x32xf32>
    %245 = math.tanh %244 : vector<8x32xf32>
    %246 = math.exp %242 : vector<8x32xf32>
    %cst_127 = arith.constant 1.000000e+00 : f32
    %247 = vector.broadcast %cst_127 : f32 to vector<8x32xf32>
    %248 = arith.addf %246, %247 : vector<8x32xf32>
    %249 = arith.mulf %245, %248 : vector<8x32xf32>
    %250 = arith.select %240, %238, %249 : vector<8x32xi1>, vector<8x32xf32>
    %c1_128 = arith.constant 1 : index
    %c0_129 = arith.constant 0 : index
    %c0_130 = arith.constant 0 : index
    %251 = vector.load %arg1[%c1_128, %c0_129, %c0_130] : memref<6x32x32xf32, #tpu.memory_space<vmem>>, vector<1x32x32xf32>
    %252 = vector.shape_cast %251 : vector<1x32x32xf32> to vector<32x32xf32>
    %cst_131 = arith.constant dense<0.000000e+00> : vector<8x32xf32>
    %253 = tpu.matmul %250, %252, %cst_131 {dimension_numbers = #tpu.dot_dimension_numbers<[1], [0], [0], [1], [0, 0, 1, 1], [], []>} : vector<8x32xf32>, vector<32x32xf32>, vector<8x32xf32> -> vector<8x32xf32>
    %254 = arith.addf %253, %10 : vector<8x32xf32>
    %cst_132 = arith.constant 0.000000e+00 : f32
    %255 = vector.broadcast %cst_132 : f32 to vector<8x32xf32>
    %256 = arith.cmpf ogt, %254, %255 : vector<8x32xf32>
    %cst_133 = arith.constant 0.000000e+00 : f32
    %257 = vector.broadcast %cst_133 : f32 to vector<8x32xf32>
    %258 = arith.minimumf %254, %257 : vector<8x32xf32>
    %cst_134 = arith.constant 5.000000e-01 : f32
    %259 = vector.broadcast %cst_134 : f32 to vector<8x32xf32>
    %260 = arith.mulf %259, %258 : vector<8x32xf32>
    %261 = math.tanh %260 : vector<8x32xf32>
    %262 = math.exp %258 : vector<8x32xf32>
    %cst_135 = arith.constant 1.000000e+00 : f32
    %263 = vector.broadcast %cst_135 : f32 to vector<8x32xf32>
    %264 = arith.addf %262, %263 : vector<8x32xf32>
    %265 = arith.mulf %261, %264 : vector<8x32xf32>
    %266 = arith.select %256, %254, %265 : vector<8x32xi1>, vector<8x32xf32>
    %c2_136 = arith.constant 2 : index
    %c0_137 = arith.constant 0 : index
    %c0_138 = arith.constant 0 : index
    %267 = vector.load %arg1[%c2_136, %c0_137, %c0_138] : memref<6x32x32xf32, #tpu.memory_space<vmem>>, vector<1x32x32xf32>
    %268 = vector.shape_cast %267 : vector<1x32x32xf32> to vector<32x32xf32>
    %cst_139 = arith.constant dense<0.000000e+00> : vector<8x32xf32>
    %269 = tpu.matmul %266, %268, %cst_139 {dimension_numbers = #tpu.dot_dimension_numbers<[1], [0], [0], [1], [0, 0, 1, 1], [], []>} : vector<8x32xf32>, vector<32x32xf32>, vector<8x32xf32> -> vector<8x32xf32>
    %270 = arith.addf %269, %14 : vector<8x32xf32>
    %cst_140 = arith.constant 0.333333343 : f32
    %271 = vector.broadcast %cst_140 : f32 to vector<8x32xf32>
    %272 = arith.mulf %229, %271 : vector<8x32xf32>
    %273 = arith.subf %270, %272 : vector<8x32xf32>
    %274 = vector.broadcast %193 : f32 to vector<8x32xf32>
    %275 = arith.mulf %274, %273 : vector<8x32xf32>
    %276 = arith.addf %192, %275 : vector<8x32xf32>
    %c0_141 = arith.constant 0 : index
    %c0_142 = arith.constant 0 : index
    %c0_143 = arith.constant 0 : index
    %277 = vector.load %arg1[%c0_141, %c0_142, %c0_143] : memref<6x32x32xf32, #tpu.memory_space<vmem>>, vector<1x32x32xf32>
    %278 = vector.shape_cast %277 : vector<1x32x32xf32> to vector<32x32xf32>
    %cst_144 = arith.constant dense<0.000000e+00> : vector<8x32xf32>
    %279 = tpu.matmul %276, %278, %cst_144 {dimension_numbers = #tpu.dot_dimension_numbers<[1], [0], [0], [1], [0, 0, 1, 1], [], []>} : vector<8x32xf32>, vector<32x32xf32>, vector<8x32xf32> -> vector<8x32xf32>
    %280 = arith.addf %279, %6 : vector<8x32xf32>
    %cst_145 = arith.constant 0.000000e+00 : f32
    %281 = vector.broadcast %cst_145 : f32 to vector<8x32xf32>
    %282 = arith.cmpf ogt, %280, %281 : vector<8x32xf32>
    %cst_146 = arith.constant 0.000000e+00 : f32
    %283 = vector.broadcast %cst_146 : f32 to vector<8x32xf32>
    %284 = arith.minimumf %280, %283 : vector<8x32xf32>
    %cst_147 = arith.constant 5.000000e-01 : f32
    %285 = vector.broadcast %cst_147 : f32 to vector<8x32xf32>
    %286 = arith.mulf %285, %284 : vector<8x32xf32>
    %287 = math.tanh %286 : vector<8x32xf32>
    %288 = math.exp %284 : vector<8x32xf32>
    %cst_148 = arith.constant 1.000000e+00 : f32
    %289 = vector.broadcast %cst_148 : f32 to vector<8x32xf32>
    %290 = arith.addf %288, %289 : vector<8x32xf32>
    %291 = arith.mulf %287, %290 : vector<8x32xf32>
    %292 = arith.select %282, %280, %291 : vector<8x32xi1>, vector<8x32xf32>
    %c1_149 = arith.constant 1 : index
    %c0_150 = arith.constant 0 : index
    %c0_151 = arith.constant 0 : index
    %293 = vector.load %arg1[%c1_149, %c0_150, %c0_151] : memref<6x32x32xf32, #tpu.memory_space<vmem>>, vector<1x32x32xf32>
    %294 = vector.shape_cast %293 : vector<1x32x32xf32> to vector<32x32xf32>
    %cst_152 = arith.constant dense<0.000000e+00> : vector<8x32xf32>
    %295 = tpu.matmul %292, %294, %cst_152 {dimension_numbers = #tpu.dot_dimension_numbers<[1], [0], [0], [1], [0, 0, 1, 1], [], []>} : vector<8x32xf32>, vector<32x32xf32>, vector<8x32xf32> -> vector<8x32xf32>
    %296 = arith.addf %295, %10 : vector<8x32xf32>
    %cst_153 = arith.constant 0.000000e+00 : f32
    %297 = vector.broadcast %cst_153 : f32 to vector<8x32xf32>
    %298 = arith.cmpf ogt, %296, %297 : vector<8x32xf32>
    %cst_154 = arith.constant 0.000000e+00 : f32
    %299 = vector.broadcast %cst_154 : f32 to vector<8x32xf32>
    %300 = arith.minimumf %296, %299 : vector<8x32xf32>
    %cst_155 = arith.constant 5.000000e-01 : f32
    %301 = vector.broadcast %cst_155 : f32 to vector<8x32xf32>
    %302 = arith.mulf %301, %300 : vector<8x32xf32>
    %303 = math.tanh %302 : vector<8x32xf32>
    %304 = math.exp %300 : vector<8x32xf32>
    %cst_156 = arith.constant 1.000000e+00 : f32
    %305 = vector.broadcast %cst_156 : f32 to vector<8x32xf32>
    %306 = arith.addf %304, %305 : vector<8x32xf32>
    %307 = arith.mulf %303, %306 : vector<8x32xf32>
    %308 = arith.select %298, %296, %307 : vector<8x32xi1>, vector<8x32xf32>
    %c2_157 = arith.constant 2 : index
    %c0_158 = arith.constant 0 : index
    %c0_159 = arith.constant 0 : index
    %309 = vector.load %arg1[%c2_157, %c0_158, %c0_159] : memref<6x32x32xf32, #tpu.memory_space<vmem>>, vector<1x32x32xf32>
    %310 = vector.shape_cast %309 : vector<1x32x32xf32> to vector<32x32xf32>
    %cst_160 = arith.constant dense<0.000000e+00> : vector<8x32xf32>
    %311 = tpu.matmul %308, %310, %cst_160 {dimension_numbers = #tpu.dot_dimension_numbers<[1], [0], [0], [1], [0, 0, 1, 1], [], []>} : vector<8x32xf32>, vector<32x32xf32>, vector<8x32xf32> -> vector<8x32xf32>
    %312 = arith.addf %311, %14 : vector<8x32xf32>
    %313 = arith.subf %229, %270 : vector<8x32xf32>
    %314 = arith.addf %313, %312 : vector<8x32xf32>
    %315 = vector.broadcast %193 : f32 to vector<8x32xf32>
    %316 = arith.mulf %315, %314 : vector<8x32xf32>
    %317 = arith.addf %192, %316 : vector<8x32xf32>
    %c0_161 = arith.constant 0 : index
    %c0_162 = arith.constant 0 : index
    %c0_163 = arith.constant 0 : index
    %318 = vector.load %arg1[%c0_161, %c0_162, %c0_163] : memref<6x32x32xf32, #tpu.memory_space<vmem>>, vector<1x32x32xf32>
    %319 = vector.shape_cast %318 : vector<1x32x32xf32> to vector<32x32xf32>
    %cst_164 = arith.constant dense<0.000000e+00> : vector<8x32xf32>
    %320 = tpu.matmul %317, %319, %cst_164 {dimension_numbers = #tpu.dot_dimension_numbers<[1], [0], [0], [1], [0, 0, 1, 1], [], []>} : vector<8x32xf32>, vector<32x32xf32>, vector<8x32xf32> -> vector<8x32xf32>
    %321 = arith.addf %320, %6 : vector<8x32xf32>
    %cst_165 = arith.constant 0.000000e+00 : f32
    %322 = vector.broadcast %cst_165 : f32 to vector<8x32xf32>
    %323 = arith.cmpf ogt, %321, %322 : vector<8x32xf32>
    %cst_166 = arith.constant 0.000000e+00 : f32
    %324 = vector.broadcast %cst_166 : f32 to vector<8x32xf32>
    %325 = arith.minimumf %321, %324 : vector<8x32xf32>
    %cst_167 = arith.constant 5.000000e-01 : f32
    %326 = vector.broadcast %cst_167 : f32 to vector<8x32xf32>
    %327 = arith.mulf %326, %325 : vector<8x32xf32>
    %328 = math.tanh %327 : vector<8x32xf32>
    %329 = math.exp %325 : vector<8x32xf32>
    %cst_168 = arith.constant 1.000000e+00 : f32
    %330 = vector.broadcast %cst_168 : f32 to vector<8x32xf32>
    %331 = arith.addf %329, %330 : vector<8x32xf32>
    %332 = arith.mulf %328, %331 : vector<8x32xf32>
    %333 = arith.select %323, %321, %332 : vector<8x32xi1>, vector<8x32xf32>
    %c1_169 = arith.constant 1 : index
    %c0_170 = arith.constant 0 : index
    %c0_171 = arith.constant 0 : index
    %334 = vector.load %arg1[%c1_169, %c0_170, %c0_171] : memref<6x32x32xf32, #tpu.memory_space<vmem>>, vector<1x32x32xf32>
    %335 = vector.shape_cast %334 : vector<1x32x32xf32> to vector<32x32xf32>
    %cst_172 = arith.constant dense<0.000000e+00> : vector<8x32xf32>
    %336 = tpu.matmul %333, %335, %cst_172 {dimension_numbers = #tpu.dot_dimension_numbers<[1], [0], [0], [1], [0, 0, 1, 1], [], []>} : vector<8x32xf32>, vector<32x32xf32>, vector<8x32xf32> -> vector<8x32xf32>
    %337 = arith.addf %336, %10 : vector<8x32xf32>
    %cst_173 = arith.constant 0.000000e+00 : f32
    %338 = vector.broadcast %cst_173 : f32 to vector<8x32xf32>
    %339 = arith.cmpf ogt, %337, %338 : vector<8x32xf32>
    %cst_174 = arith.constant 0.000000e+00 : f32
    %340 = vector.broadcast %cst_174 : f32 to vector<8x32xf32>
    %341 = arith.minimumf %337, %340 : vector<8x32xf32>
    %cst_175 = arith.constant 5.000000e-01 : f32
    %342 = vector.broadcast %cst_175 : f32 to vector<8x32xf32>
    %343 = arith.mulf %342, %341 : vector<8x32xf32>
    %344 = math.tanh %343 : vector<8x32xf32>
    %345 = math.exp %341 : vector<8x32xf32>
    %cst_176 = arith.constant 1.000000e+00 : f32
    %346 = vector.broadcast %cst_176 : f32 to vector<8x32xf32>
    %347 = arith.addf %345, %346 : vector<8x32xf32>
    %348 = arith.mulf %344, %347 : vector<8x32xf32>
    %349 = arith.select %339, %337, %348 : vector<8x32xi1>, vector<8x32xf32>
    %c2_177 = arith.constant 2 : index
    %c0_178 = arith.constant 0 : index
    %c0_179 = arith.constant 0 : index
    %350 = vector.load %arg1[%c2_177, %c0_178, %c0_179] : memref<6x32x32xf32, #tpu.memory_space<vmem>>, vector<1x32x32xf32>
    %351 = vector.shape_cast %350 : vector<1x32x32xf32> to vector<32x32xf32>
    %cst_180 = arith.constant dense<0.000000e+00> : vector<8x32xf32>
    %352 = tpu.matmul %349, %351, %cst_180 {dimension_numbers = #tpu.dot_dimension_numbers<[1], [0], [0], [1], [0, 0, 1, 1], [], []>} : vector<8x32xf32>, vector<32x32xf32>, vector<8x32xf32> -> vector<8x32xf32>
    %353 = arith.addf %352, %14 : vector<8x32xf32>
    %cst_181 = arith.constant 1.250000e-01 : f32
    %354 = arith.mulf %193, %cst_181 : f32
    %355 = arith.addf %270, %312 : vector<8x32xf32>
    %cst_182 = arith.constant 3.000000e+00 : f32
    %356 = vector.broadcast %cst_182 : f32 to vector<8x32xf32>
    %357 = arith.mulf %356, %355 : vector<8x32xf32>
    %358 = arith.addf %229, %357 : vector<8x32xf32>
    %359 = arith.addf %358, %353 : vector<8x32xf32>
    %360 = vector.broadcast %354 : f32 to vector<8x32xf32>
    %361 = arith.mulf %360, %359 : vector<8x32xf32>
    %362 = arith.addf %192, %361 : vector<8x32xf32>
    %c2_183 = arith.constant 2 : index
    %363 = memref.load %arg3[%c2_183] : memref<7xf32, #tpu.memory_space<smem>>
    %c0_184 = arith.constant 0 : index
    %c0_185 = arith.constant 0 : index
    %c0_186 = arith.constant 0 : index
    %364 = vector.load %arg1[%c0_184, %c0_185, %c0_186] : memref<6x32x32xf32, #tpu.memory_space<vmem>>, vector<1x32x32xf32>
    %365 = vector.shape_cast %364 : vector<1x32x32xf32> to vector<32x32xf32>
    %cst_187 = arith.constant dense<0.000000e+00> : vector<8x32xf32>
    %366 = tpu.matmul %362, %365, %cst_187 {dimension_numbers = #tpu.dot_dimension_numbers<[1], [0], [0], [1], [0, 0, 1, 1], [], []>} : vector<8x32xf32>, vector<32x32xf32>, vector<8x32xf32> -> vector<8x32xf32>
    %367 = arith.addf %366, %6 : vector<8x32xf32>
    %cst_188 = arith.constant 0.000000e+00 : f32
    %368 = vector.broadcast %cst_188 : f32 to vector<8x32xf32>
    %369 = arith.cmpf ogt, %367, %368 : vector<8x32xf32>
    %cst_189 = arith.constant 0.000000e+00 : f32
    %370 = vector.broadcast %cst_189 : f32 to vector<8x32xf32>
    %371 = arith.minimumf %367, %370 : vector<8x32xf32>
    %cst_190 = arith.constant 5.000000e-01 : f32
    %372 = vector.broadcast %cst_190 : f32 to vector<8x32xf32>
    %373 = arith.mulf %372, %371 : vector<8x32xf32>
    %374 = math.tanh %373 : vector<8x32xf32>
    %375 = math.exp %371 : vector<8x32xf32>
    %cst_191 = arith.constant 1.000000e+00 : f32
    %376 = vector.broadcast %cst_191 : f32 to vector<8x32xf32>
    %377 = arith.addf %375, %376 : vector<8x32xf32>
    %378 = arith.mulf %374, %377 : vector<8x32xf32>
    %379 = arith.select %369, %367, %378 : vector<8x32xi1>, vector<8x32xf32>
    %c1_192 = arith.constant 1 : index
    %c0_193 = arith.constant 0 : index
    %c0_194 = arith.constant 0 : index
    %380 = vector.load %arg1[%c1_192, %c0_193, %c0_194] : memref<6x32x32xf32, #tpu.memory_space<vmem>>, vector<1x32x32xf32>
    %381 = vector.shape_cast %380 : vector<1x32x32xf32> to vector<32x32xf32>
    %cst_195 = arith.constant dense<0.000000e+00> : vector<8x32xf32>
    %382 = tpu.matmul %379, %381, %cst_195 {dimension_numbers = #tpu.dot_dimension_numbers<[1], [0], [0], [1], [0, 0, 1, 1], [], []>} : vector<8x32xf32>, vector<32x32xf32>, vector<8x32xf32> -> vector<8x32xf32>
    %383 = arith.addf %382, %10 : vector<8x32xf32>
    %cst_196 = arith.constant 0.000000e+00 : f32
    %384 = vector.broadcast %cst_196 : f32 to vector<8x32xf32>
    %385 = arith.cmpf ogt, %383, %384 : vector<8x32xf32>
    %cst_197 = arith.constant 0.000000e+00 : f32
    %386 = vector.broadcast %cst_197 : f32 to vector<8x32xf32>
    %387 = arith.minimumf %383, %386 : vector<8x32xf32>
    %cst_198 = arith.constant 5.000000e-01 : f32
    %388 = vector.broadcast %cst_198 : f32 to vector<8x32xf32>
    %389 = arith.mulf %388, %387 : vector<8x32xf32>
    %390 = math.tanh %389 : vector<8x32xf32>
    %391 = math.exp %387 : vector<8x32xf32>
    %cst_199 = arith.constant 1.000000e+00 : f32
    %392 = vector.broadcast %cst_199 : f32 to vector<8x32xf32>
    %393 = arith.addf %391, %392 : vector<8x32xf32>
    %394 = arith.mulf %390, %393 : vector<8x32xf32>
    %395 = arith.select %385, %383, %394 : vector<8x32xi1>, vector<8x32xf32>
    %c2_200 = arith.constant 2 : index
    %c0_201 = arith.constant 0 : index
    %c0_202 = arith.constant 0 : index
    %396 = vector.load %arg1[%c2_200, %c0_201, %c0_202] : memref<6x32x32xf32, #tpu.memory_space<vmem>>, vector<1x32x32xf32>
    %397 = vector.shape_cast %396 : vector<1x32x32xf32> to vector<32x32xf32>
    %cst_203 = arith.constant dense<0.000000e+00> : vector<8x32xf32>
    %398 = tpu.matmul %395, %397, %cst_203 {dimension_numbers = #tpu.dot_dimension_numbers<[1], [0], [0], [1], [0, 0, 1, 1], [], []>} : vector<8x32xf32>, vector<32x32xf32>, vector<8x32xf32> -> vector<8x32xf32>
    %399 = arith.addf %398, %14 : vector<8x32xf32>
    %cst_204 = arith.constant 0.333333343 : f32
    %400 = vector.broadcast %cst_204 : f32 to vector<8x32xf32>
    %401 = arith.mulf %399, %400 : vector<8x32xf32>
    %402 = vector.broadcast %363 : f32 to vector<8x32xf32>
    %403 = arith.mulf %402, %401 : vector<8x32xf32>
    %404 = arith.addf %362, %403 : vector<8x32xf32>
    %c0_205 = arith.constant 0 : index
    %c0_206 = arith.constant 0 : index
    %c0_207 = arith.constant 0 : index
    %405 = vector.load %arg1[%c0_205, %c0_206, %c0_207] : memref<6x32x32xf32, #tpu.memory_space<vmem>>, vector<1x32x32xf32>
    %406 = vector.shape_cast %405 : vector<1x32x32xf32> to vector<32x32xf32>
    %cst_208 = arith.constant dense<0.000000e+00> : vector<8x32xf32>
    %407 = tpu.matmul %404, %406, %cst_208 {dimension_numbers = #tpu.dot_dimension_numbers<[1], [0], [0], [1], [0, 0, 1, 1], [], []>} : vector<8x32xf32>, vector<32x32xf32>, vector<8x32xf32> -> vector<8x32xf32>
    %408 = arith.addf %407, %6 : vector<8x32xf32>
    %cst_209 = arith.constant 0.000000e+00 : f32
    %409 = vector.broadcast %cst_209 : f32 to vector<8x32xf32>
    %410 = arith.cmpf ogt, %408, %409 : vector<8x32xf32>
    %cst_210 = arith.constant 0.000000e+00 : f32
    %411 = vector.broadcast %cst_210 : f32 to vector<8x32xf32>
    %412 = arith.minimumf %408, %411 : vector<8x32xf32>
    %cst_211 = arith.constant 5.000000e-01 : f32
    %413 = vector.broadcast %cst_211 : f32 to vector<8x32xf32>
    %414 = arith.mulf %413, %412 : vector<8x32xf32>
    %415 = math.tanh %414 : vector<8x32xf32>
    %416 = math.exp %412 : vector<8x32xf32>
    %cst_212 = arith.constant 1.000000e+00 : f32
    %417 = vector.broadcast %cst_212 : f32 to vector<8x32xf32>
    %418 = arith.addf %416, %417 : vector<8x32xf32>
    %419 = arith.mulf %415, %418 : vector<8x32xf32>
    %420 = arith.select %410, %408, %419 : vector<8x32xi1>, vector<8x32xf32>
    %c1_213 = arith.constant 1 : index
    %c0_214 = arith.constant 0 : index
    %c0_215 = arith.constant 0 : index
    %421 = vector.load %arg1[%c1_213, %c0_214, %c0_215] : memref<6x32x32xf32, #tpu.memory_space<vmem>>, vector<1x32x32xf32>
    %422 = vector.shape_cast %421 : vector<1x32x32xf32> to vector<32x32xf32>
    %cst_216 = arith.constant dense<0.000000e+00> : vector<8x32xf32>
    %423 = tpu.matmul %420, %422, %cst_216 {dimension_numbers = #tpu.dot_dimension_numbers<[1], [0], [0], [1], [0, 0, 1, 1], [], []>} : vector<8x32xf32>, vector<32x32xf32>, vector<8x32xf32> -> vector<8x32xf32>
    %424 = arith.addf %423, %10 : vector<8x32xf32>
    %cst_217 = arith.constant 0.000000e+00 : f32
    %425 = vector.broadcast %cst_217 : f32 to vector<8x32xf32>
    %426 = arith.cmpf ogt, %424, %425 : vector<8x32xf32>
    %cst_218 = arith.constant 0.000000e+00 : f32
    %427 = vector.broadcast %cst_218 : f32 to vector<8x32xf32>
    %428 = arith.minimumf %424, %427 : vector<8x32xf32>
    %cst_219 = arith.constant 5.000000e-01 : f32
    %429 = vector.broadcast %cst_219 : f32 to vector<8x32xf32>
    %430 = arith.mulf %429, %428 : vector<8x32xf32>
    %431 = math.tanh %430 : vector<8x32xf32>
    %432 = math.exp %428 : vector<8x32xf32>
    %cst_220 = arith.constant 1.000000e+00 : f32
    %433 = vector.broadcast %cst_220 : f32 to vector<8x32xf32>
    %434 = arith.addf %432, %433 : vector<8x32xf32>
    %435 = arith.mulf %431, %434 : vector<8x32xf32>
    %436 = arith.select %426, %424, %435 : vector<8x32xi1>, vector<8x32xf32>
    %c2_221 = arith.constant 2 : index
    %c0_222 = arith.constant 0 : index
    %c0_223 = arith.constant 0 : index
    %437 = vector.load %arg1[%c2_221, %c0_222, %c0_223] : memref<6x32x32xf32, #tpu.memory_space<vmem>>, vector<1x32x32xf32>
    %438 = vector.shape_cast %437 : vector<1x32x32xf32> to vector<32x32xf32>
    %cst_224 = arith.constant dense<0.000000e+00> : vector<8x32xf32>
    %439 = tpu.matmul %436, %438, %cst_224 {dimension_numbers = #tpu.dot_dimension_numbers<[1], [0], [0], [1], [0, 0, 1, 1], [], []>} : vector<8x32xf32>, vector<32x32xf32>, vector<8x32xf32> -> vector<8x32xf32>
    %440 = arith.addf %439, %14 : vector<8x32xf32>
    %cst_225 = arith.constant 0.333333343 : f32
    %441 = vector.broadcast %cst_225 : f32 to vector<8x32xf32>
    %442 = arith.mulf %399, %441 : vector<8x32xf32>
    %443 = arith.subf %440, %442 : vector<8x32xf32>
    %444 = vector.broadcast %363 : f32 to vector<8x32xf32>
    %445 = arith.mulf %444, %443 : vector<8x32xf32>
    %446 = arith.addf %362, %445 : vector<8x32xf32>
    %c0_226 = arith.constant 0 : index
    %c0_227 = arith.constant 0 : index
    %c0_228 = arith.constant 0 : index
    %447 = vector.load %arg1[%c0_226, %c0_227, %c0_228] : memref<6x32x32xf32, #tpu.memory_space<vmem>>, vector<1x32x32xf32>
    %448 = vector.shape_cast %447 : vector<1x32x32xf32> to vector<32x32xf32>
    %cst_229 = arith.constant dense<0.000000e+00> : vector<8x32xf32>
    %449 = tpu.matmul %446, %448, %cst_229 {dimension_numbers = #tpu.dot_dimension_numbers<[1], [0], [0], [1], [0, 0, 1, 1], [], []>} : vector<8x32xf32>, vector<32x32xf32>, vector<8x32xf32> -> vector<8x32xf32>
    %450 = arith.addf %449, %6 : vector<8x32xf32>
    %cst_230 = arith.constant 0.000000e+00 : f32
    %451 = vector.broadcast %cst_230 : f32 to vector<8x32xf32>
    %452 = arith.cmpf ogt, %450, %451 : vector<8x32xf32>
    %cst_231 = arith.constant 0.000000e+00 : f32
    %453 = vector.broadcast %cst_231 : f32 to vector<8x32xf32>
    %454 = arith.minimumf %450, %453 : vector<8x32xf32>
    %cst_232 = arith.constant 5.000000e-01 : f32
    %455 = vector.broadcast %cst_232 : f32 to vector<8x32xf32>
    %456 = arith.mulf %455, %454 : vector<8x32xf32>
    %457 = math.tanh %456 : vector<8x32xf32>
    %458 = math.exp %454 : vector<8x32xf32>
    %cst_233 = arith.constant 1.000000e+00 : f32
    %459 = vector.broadcast %cst_233 : f32 to vector<8x32xf32>
    %460 = arith.addf %458, %459 : vector<8x32xf32>
    %461 = arith.mulf %457, %460 : vector<8x32xf32>
    %462 = arith.select %452, %450, %461 : vector<8x32xi1>, vector<8x32xf32>
    %c1_234 = arith.constant 1 : index
    %c0_235 = arith.constant 0 : index
    %c0_236 = arith.constant 0 : index
    %463 = vector.load %arg1[%c1_234, %c0_235, %c0_236] : memref<6x32x32xf32, #tpu.memory_space<vmem>>, vector<1x32x32xf32>
    %464 = vector.shape_cast %463 : vector<1x32x32xf32> to vector<32x32xf32>
    %cst_237 = arith.constant dense<0.000000e+00> : vector<8x32xf32>
    %465 = tpu.matmul %462, %464, %cst_237 {dimension_numbers = #tpu.dot_dimension_numbers<[1], [0], [0], [1], [0, 0, 1, 1], [], []>} : vector<8x32xf32>, vector<32x32xf32>, vector<8x32xf32> -> vector<8x32xf32>
    %466 = arith.addf %465, %10 : vector<8x32xf32>
    %cst_238 = arith.constant 0.000000e+00 : f32
    %467 = vector.broadcast %cst_238 : f32 to vector<8x32xf32>
    %468 = arith.cmpf ogt, %466, %467 : vector<8x32xf32>
    %cst_239 = arith.constant 0.000000e+00 : f32
    %469 = vector.broadcast %cst_239 : f32 to vector<8x32xf32>
    %470 = arith.minimumf %466, %469 : vector<8x32xf32>
    %cst_240 = arith.constant 5.000000e-01 : f32
    %471 = vector.broadcast %cst_240 : f32 to vector<8x32xf32>
    %472 = arith.mulf %471, %470 : vector<8x32xf32>
    %473 = math.tanh %472 : vector<8x32xf32>
    %474 = math.exp %470 : vector<8x32xf32>
    %cst_241 = arith.constant 1.000000e+00 : f32
    %475 = vector.broadcast %cst_241 : f32 to vector<8x32xf32>
    %476 = arith.addf %474, %475 : vector<8x32xf32>
    %477 = arith.mulf %473, %476 : vector<8x32xf32>
    %478 = arith.select %468, %466, %477 : vector<8x32xi1>, vector<8x32xf32>
    %c2_242 = arith.constant 2 : index
    %c0_243 = arith.constant 0 : index
    %c0_244 = arith.constant 0 : index
    %479 = vector.load %arg1[%c2_242, %c0_243, %c0_244] : memref<6x32x32xf32, #tpu.memory_space<vmem>>, vector<1x32x32xf32>
    %480 = vector.shape_cast %479 : vector<1x32x32xf32> to vector<32x32xf32>
    %cst_245 = arith.constant dense<0.000000e+00> : vector<8x32xf32>
    %481 = tpu.matmul %478, %480, %cst_245 {dimension_numbers = #tpu.dot_dimension_numbers<[1], [0], [0], [1], [0, 0, 1, 1], [], []>} : vector<8x32xf32>, vector<32x32xf32>, vector<8x32xf32> -> vector<8x32xf32>
    %482 = arith.addf %481, %14 : vector<8x32xf32>
    %483 = arith.subf %399, %440 : vector<8x32xf32>
    %484 = arith.addf %483, %482 : vector<8x32xf32>
    %485 = vector.broadcast %363 : f32 to vector<8x32xf32>
    %486 = arith.mulf %485, %484 : vector<8x32xf32>
    %487 = arith.addf %362, %486 : vector<8x32xf32>
    %c0_246 = arith.constant 0 : index
    %c0_247 = arith.constant 0 : index
    %c0_248 = arith.constant 0 : index
    %488 = vector.load %arg1[%c0_246, %c0_247, %c0_248] : memref<6x32x32xf32, #tpu.memory_space<vmem>>, vector<1x32x32xf32>
    %489 = vector.shape_cast %488 : vector<1x32x32xf32> to vector<32x32xf32>
    %cst_249 = arith.constant dense<0.000000e+00> : vector<8x32xf32>
    %490 = tpu.matmul %487, %489, %cst_249 {dimension_numbers = #tpu.dot_dimension_numbers<[1], [0], [0], [1], [0, 0, 1, 1], [], []>} : vector<8x32xf32>, vector<32x32xf32>, vector<8x32xf32> -> vector<8x32xf32>
    %491 = arith.addf %490, %6 : vector<8x32xf32>
    %cst_250 = arith.constant 0.000000e+00 : f32
    %492 = vector.broadcast %cst_250 : f32 to vector<8x32xf32>
    %493 = arith.cmpf ogt, %491, %492 : vector<8x32xf32>
    %cst_251 = arith.constant 0.000000e+00 : f32
    %494 = vector.broadcast %cst_251 : f32 to vector<8x32xf32>
    %495 = arith.minimumf %491, %494 : vector<8x32xf32>
    %cst_252 = arith.constant 5.000000e-01 : f32
    %496 = vector.broadcast %cst_252 : f32 to vector<8x32xf32>
    %497 = arith.mulf %496, %495 : vector<8x32xf32>
    %498 = math.tanh %497 : vector<8x32xf32>
    %499 = math.exp %495 : vector<8x32xf32>
    %cst_253 = arith.constant 1.000000e+00 : f32
    %500 = vector.broadcast %cst_253 : f32 to vector<8x32xf32>
    %501 = arith.addf %499, %500 : vector<8x32xf32>
    %502 = arith.mulf %498, %501 : vector<8x32xf32>
    %503 = arith.select %493, %491, %502 : vector<8x32xi1>, vector<8x32xf32>
    %c1_254 = arith.constant 1 : index
    %c0_255 = arith.constant 0 : index
    %c0_256 = arith.constant 0 : index
    %504 = vector.load %arg1[%c1_254, %c0_255, %c0_256] : memref<6x32x32xf32, #tpu.memory_space<vmem>>, vector<1x32x32xf32>
    %505 = vector.shape_cast %504 : vector<1x32x32xf32> to vector<32x32xf32>
    %cst_257 = arith.constant dense<0.000000e+00> : vector<8x32xf32>
    %506 = tpu.matmul %503, %505, %cst_257 {dimension_numbers = #tpu.dot_dimension_numbers<[1], [0], [0], [1], [0, 0, 1, 1], [], []>} : vector<8x32xf32>, vector<32x32xf32>, vector<8x32xf32> -> vector<8x32xf32>
    %507 = arith.addf %506, %10 : vector<8x32xf32>
    %cst_258 = arith.constant 0.000000e+00 : f32
    %508 = vector.broadcast %cst_258 : f32 to vector<8x32xf32>
    %509 = arith.cmpf ogt, %507, %508 : vector<8x32xf32>
    %cst_259 = arith.constant 0.000000e+00 : f32
    %510 = vector.broadcast %cst_259 : f32 to vector<8x32xf32>
    %511 = arith.minimumf %507, %510 : vector<8x32xf32>
    %cst_260 = arith.constant 5.000000e-01 : f32
    %512 = vector.broadcast %cst_260 : f32 to vector<8x32xf32>
    %513 = arith.mulf %512, %511 : vector<8x32xf32>
    %514 = math.tanh %513 : vector<8x32xf32>
    %515 = math.exp %511 : vector<8x32xf32>
    %cst_261 = arith.constant 1.000000e+00 : f32
    %516 = vector.broadcast %cst_261 : f32 to vector<8x32xf32>
    %517 = arith.addf %515, %516 : vector<8x32xf32>
    %518 = arith.mulf %514, %517 : vector<8x32xf32>
    %519 = arith.select %509, %507, %518 : vector<8x32xi1>, vector<8x32xf32>
    %c2_262 = arith.constant 2 : index
    %c0_263 = arith.constant 0 : index
    %c0_264 = arith.constant 0 : index
    %520 = vector.load %arg1[%c2_262, %c0_263, %c0_264] : memref<6x32x32xf32, #tpu.memory_space<vmem>>, vector<1x32x32xf32>
    %521 = vector.shape_cast %520 : vector<1x32x32xf32> to vector<32x32xf32>
    %cst_265 = arith.constant dense<0.000000e+00> : vector<8x32xf32>
    %522 = tpu.matmul %519, %521, %cst_265 {dimension_numbers = #tpu.dot_dimension_numbers<[1], [0], [0], [1], [0, 0, 1, 1], [], []>} : vector<8x32xf32>, vector<32x32xf32>, vector<8x32xf32> -> vector<8x32xf32>
    %523 = arith.addf %522, %14 : vector<8x32xf32>
    %cst_266 = arith.constant 1.250000e-01 : f32
    %524 = arith.mulf %363, %cst_266 : f32
    %525 = arith.addf %440, %482 : vector<8x32xf32>
    %cst_267 = arith.constant 3.000000e+00 : f32
    %526 = vector.broadcast %cst_267 : f32 to vector<8x32xf32>
    %527 = arith.mulf %526, %525 : vector<8x32xf32>
    %528 = arith.addf %399, %527 : vector<8x32xf32>
    %529 = arith.addf %528, %523 : vector<8x32xf32>
    %530 = vector.broadcast %524 : f32 to vector<8x32xf32>
    %531 = arith.mulf %530, %529 : vector<8x32xf32>
    %532 = arith.addf %362, %531 : vector<8x32xf32>
    %c3_268 = arith.constant 3 : index
    %533 = memref.load %arg3[%c3_268] : memref<7xf32, #tpu.memory_space<smem>>
    %c0_269 = arith.constant 0 : index
    %c0_270 = arith.constant 0 : index
    %c0_271 = arith.constant 0 : index
    %534 = vector.load %arg1[%c0_269, %c0_270, %c0_271] : memref<6x32x32xf32, #tpu.memory_space<vmem>>, vector<1x32x32xf32>
    %535 = vector.shape_cast %534 : vector<1x32x32xf32> to vector<32x32xf32>
    %cst_272 = arith.constant dense<0.000000e+00> : vector<8x32xf32>
    %536 = tpu.matmul %532, %535, %cst_272 {dimension_numbers = #tpu.dot_dimension_numbers<[1], [0], [0], [1], [0, 0, 1, 1], [], []>} : vector<8x32xf32>, vector<32x32xf32>, vector<8x32xf32> -> vector<8x32xf32>
    %537 = arith.addf %536, %6 : vector<8x32xf32>
    %cst_273 = arith.constant 0.000000e+00 : f32
    %538 = vector.broadcast %cst_273 : f32 to vector<8x32xf32>
    %539 = arith.cmpf ogt, %537, %538 : vector<8x32xf32>
    %cst_274 = arith.constant 0.000000e+00 : f32
    %540 = vector.broadcast %cst_274 : f32 to vector<8x32xf32>
    %541 = arith.minimumf %537, %540 : vector<8x32xf32>
    %cst_275 = arith.constant 5.000000e-01 : f32
    %542 = vector.broadcast %cst_275 : f32 to vector<8x32xf32>
    %543 = arith.mulf %542, %541 : vector<8x32xf32>
    %544 = math.tanh %543 : vector<8x32xf32>
    %545 = math.exp %541 : vector<8x32xf32>
    %cst_276 = arith.constant 1.000000e+00 : f32
    %546 = vector.broadcast %cst_276 : f32 to vector<8x32xf32>
    %547 = arith.addf %545, %546 : vector<8x32xf32>
    %548 = arith.mulf %544, %547 : vector<8x32xf32>
    %549 = arith.select %539, %537, %548 : vector<8x32xi1>, vector<8x32xf32>
    %c1_277 = arith.constant 1 : index
    %c0_278 = arith.constant 0 : index
    %c0_279 = arith.constant 0 : index
    %550 = vector.load %arg1[%c1_277, %c0_278, %c0_279] : memref<6x32x32xf32, #tpu.memory_space<vmem>>, vector<1x32x32xf32>
    %551 = vector.shape_cast %550 : vector<1x32x32xf32> to vector<32x32xf32>
    %cst_280 = arith.constant dense<0.000000e+00> : vector<8x32xf32>
    %552 = tpu.matmul %549, %551, %cst_280 {dimension_numbers = #tpu.dot_dimension_numbers<[1], [0], [0], [1], [0, 0, 1, 1], [], []>} : vector<8x32xf32>, vector<32x32xf32>, vector<8x32xf32> -> vector<8x32xf32>
    %553 = arith.addf %552, %10 : vector<8x32xf32>
    %cst_281 = arith.constant 0.000000e+00 : f32
    %554 = vector.broadcast %cst_281 : f32 to vector<8x32xf32>
    %555 = arith.cmpf ogt, %553, %554 : vector<8x32xf32>
    %cst_282 = arith.constant 0.000000e+00 : f32
    %556 = vector.broadcast %cst_282 : f32 to vector<8x32xf32>
    %557 = arith.minimumf %553, %556 : vector<8x32xf32>
    %cst_283 = arith.constant 5.000000e-01 : f32
    %558 = vector.broadcast %cst_283 : f32 to vector<8x32xf32>
    %559 = arith.mulf %558, %557 : vector<8x32xf32>
    %560 = math.tanh %559 : vector<8x32xf32>
    %561 = math.exp %557 : vector<8x32xf32>
    %cst_284 = arith.constant 1.000000e+00 : f32
    %562 = vector.broadcast %cst_284 : f32 to vector<8x32xf32>
    %563 = arith.addf %561, %562 : vector<8x32xf32>
    %564 = arith.mulf %560, %563 : vector<8x32xf32>
    %565 = arith.select %555, %553, %564 : vector<8x32xi1>, vector<8x32xf32>
    %c2_285 = arith.constant 2 : index
    %c0_286 = arith.constant 0 : index
    %c0_287 = arith.constant 0 : index
    %566 = vector.load %arg1[%c2_285, %c0_286, %c0_287] : memref<6x32x32xf32, #tpu.memory_space<vmem>>, vector<1x32x32xf32>
    %567 = vector.shape_cast %566 : vector<1x32x32xf32> to vector<32x32xf32>
    %cst_288 = arith.constant dense<0.000000e+00> : vector<8x32xf32>
    %568 = tpu.matmul %565, %567, %cst_288 {dimension_numbers = #tpu.dot_dimension_numbers<[1], [0], [0], [1], [0, 0, 1, 1], [], []>} : vector<8x32xf32>, vector<32x32xf32>, vector<8x32xf32> -> vector<8x32xf32>
    %569 = arith.addf %568, %14 : vector<8x32xf32>
    %cst_289 = arith.constant 0.333333343 : f32
    %570 = vector.broadcast %cst_289 : f32 to vector<8x32xf32>
    %571 = arith.mulf %569, %570 : vector<8x32xf32>
    %572 = vector.broadcast %533 : f32 to vector<8x32xf32>
    %573 = arith.mulf %572, %571 : vector<8x32xf32>
    %574 = arith.addf %532, %573 : vector<8x32xf32>
    %c0_290 = arith.constant 0 : index
    %c0_291 = arith.constant 0 : index
    %c0_292 = arith.constant 0 : index
    %575 = vector.load %arg1[%c0_290, %c0_291, %c0_292] : memref<6x32x32xf32, #tpu.memory_space<vmem>>, vector<1x32x32xf32>
    %576 = vector.shape_cast %575 : vector<1x32x32xf32> to vector<32x32xf32>
    %cst_293 = arith.constant dense<0.000000e+00> : vector<8x32xf32>
    %577 = tpu.matmul %574, %576, %cst_293 {dimension_numbers = #tpu.dot_dimension_numbers<[1], [0], [0], [1], [0, 0, 1, 1], [], []>} : vector<8x32xf32>, vector<32x32xf32>, vector<8x32xf32> -> vector<8x32xf32>
    %578 = arith.addf %577, %6 : vector<8x32xf32>
    %cst_294 = arith.constant 0.000000e+00 : f32
    %579 = vector.broadcast %cst_294 : f32 to vector<8x32xf32>
    %580 = arith.cmpf ogt, %578, %579 : vector<8x32xf32>
    %cst_295 = arith.constant 0.000000e+00 : f32
    %581 = vector.broadcast %cst_295 : f32 to vector<8x32xf32>
    %582 = arith.minimumf %578, %581 : vector<8x32xf32>
    %cst_296 = arith.constant 5.000000e-01 : f32
    %583 = vector.broadcast %cst_296 : f32 to vector<8x32xf32>
    %584 = arith.mulf %583, %582 : vector<8x32xf32>
    %585 = math.tanh %584 : vector<8x32xf32>
    %586 = math.exp %582 : vector<8x32xf32>
    %cst_297 = arith.constant 1.000000e+00 : f32
    %587 = vector.broadcast %cst_297 : f32 to vector<8x32xf32>
    %588 = arith.addf %586, %587 : vector<8x32xf32>
    %589 = arith.mulf %585, %588 : vector<8x32xf32>
    %590 = arith.select %580, %578, %589 : vector<8x32xi1>, vector<8x32xf32>
    %c1_298 = arith.constant 1 : index
    %c0_299 = arith.constant 0 : index
    %c0_300 = arith.constant 0 : index
    %591 = vector.load %arg1[%c1_298, %c0_299, %c0_300] : memref<6x32x32xf32, #tpu.memory_space<vmem>>, vector<1x32x32xf32>
    %592 = vector.shape_cast %591 : vector<1x32x32xf32> to vector<32x32xf32>
    %cst_301 = arith.constant dense<0.000000e+00> : vector<8x32xf32>
    %593 = tpu.matmul %590, %592, %cst_301 {dimension_numbers = #tpu.dot_dimension_numbers<[1], [0], [0], [1], [0, 0, 1, 1], [], []>} : vector<8x32xf32>, vector<32x32xf32>, vector<8x32xf32> -> vector<8x32xf32>
    %594 = arith.addf %593, %10 : vector<8x32xf32>
    %cst_302 = arith.constant 0.000000e+00 : f32
    %595 = vector.broadcast %cst_302 : f32 to vector<8x32xf32>
    %596 = arith.cmpf ogt, %594, %595 : vector<8x32xf32>
    %cst_303 = arith.constant 0.000000e+00 : f32
    %597 = vector.broadcast %cst_303 : f32 to vector<8x32xf32>
    %598 = arith.minimumf %594, %597 : vector<8x32xf32>
    %cst_304 = arith.constant 5.000000e-01 : f32
    %599 = vector.broadcast %cst_304 : f32 to vector<8x32xf32>
    %600 = arith.mulf %599, %598 : vector<8x32xf32>
    %601 = math.tanh %600 : vector<8x32xf32>
    %602 = math.exp %598 : vector<8x32xf32>
    %cst_305 = arith.constant 1.000000e+00 : f32
    %603 = vector.broadcast %cst_305 : f32 to vector<8x32xf32>
    %604 = arith.addf %602, %603 : vector<8x32xf32>
    %605 = arith.mulf %601, %604 : vector<8x32xf32>
    %606 = arith.select %596, %594, %605 : vector<8x32xi1>, vector<8x32xf32>
    %c2_306 = arith.constant 2 : index
    %c0_307 = arith.constant 0 : index
    %c0_308 = arith.constant 0 : index
    %607 = vector.load %arg1[%c2_306, %c0_307, %c0_308] : memref<6x32x32xf32, #tpu.memory_space<vmem>>, vector<1x32x32xf32>
    %608 = vector.shape_cast %607 : vector<1x32x32xf32> to vector<32x32xf32>
    %cst_309 = arith.constant dense<0.000000e+00> : vector<8x32xf32>
    %609 = tpu.matmul %606, %608, %cst_309 {dimension_numbers = #tpu.dot_dimension_numbers<[1], [0], [0], [1], [0, 0, 1, 1], [], []>} : vector<8x32xf32>, vector<32x32xf32>, vector<8x32xf32> -> vector<8x32xf32>
    %610 = arith.addf %609, %14 : vector<8x32xf32>
    %cst_310 = arith.constant 0.333333343 : f32
    %611 = vector.broadcast %cst_310 : f32 to vector<8x32xf32>
    %612 = arith.mulf %569, %611 : vector<8x32xf32>
    %613 = arith.subf %610, %612 : vector<8x32xf32>
    %614 = vector.broadcast %533 : f32 to vector<8x32xf32>
    %615 = arith.mulf %614, %613 : vector<8x32xf32>
    %616 = arith.addf %532, %615 : vector<8x32xf32>
    %c0_311 = arith.constant 0 : index
    %c0_312 = arith.constant 0 : index
    %c0_313 = arith.constant 0 : index
    %617 = vector.load %arg1[%c0_311, %c0_312, %c0_313] : memref<6x32x32xf32, #tpu.memory_space<vmem>>, vector<1x32x32xf32>
    %618 = vector.shape_cast %617 : vector<1x32x32xf32> to vector<32x32xf32>
    %cst_314 = arith.constant dense<0.000000e+00> : vector<8x32xf32>
    %619 = tpu.matmul %616, %618, %cst_314 {dimension_numbers = #tpu.dot_dimension_numbers<[1], [0], [0], [1], [0, 0, 1, 1], [], []>} : vector<8x32xf32>, vector<32x32xf32>, vector<8x32xf32> -> vector<8x32xf32>
    %620 = arith.addf %619, %6 : vector<8x32xf32>
    %cst_315 = arith.constant 0.000000e+00 : f32
    %621 = vector.broadcast %cst_315 : f32 to vector<8x32xf32>
    %622 = arith.cmpf ogt, %620, %621 : vector<8x32xf32>
    %cst_316 = arith.constant 0.000000e+00 : f32
    %623 = vector.broadcast %cst_316 : f32 to vector<8x32xf32>
    %624 = arith.minimumf %620, %623 : vector<8x32xf32>
    %cst_317 = arith.constant 5.000000e-01 : f32
    %625 = vector.broadcast %cst_317 : f32 to vector<8x32xf32>
    %626 = arith.mulf %625, %624 : vector<8x32xf32>
    %627 = math.tanh %626 : vector<8x32xf32>
    %628 = math.exp %624 : vector<8x32xf32>
    %cst_318 = arith.constant 1.000000e+00 : f32
    %629 = vector.broadcast %cst_318 : f32 to vector<8x32xf32>
    %630 = arith.addf %628, %629 : vector<8x32xf32>
    %631 = arith.mulf %627, %630 : vector<8x32xf32>
    %632 = arith.select %622, %620, %631 : vector<8x32xi1>, vector<8x32xf32>
    %c1_319 = arith.constant 1 : index
    %c0_320 = arith.constant 0 : index
    %c0_321 = arith.constant 0 : index
    %633 = vector.load %arg1[%c1_319, %c0_320, %c0_321] : memref<6x32x32xf32, #tpu.memory_space<vmem>>, vector<1x32x32xf32>
    %634 = vector.shape_cast %633 : vector<1x32x32xf32> to vector<32x32xf32>
    %cst_322 = arith.constant dense<0.000000e+00> : vector<8x32xf32>
    %635 = tpu.matmul %632, %634, %cst_322 {dimension_numbers = #tpu.dot_dimension_numbers<[1], [0], [0], [1], [0, 0, 1, 1], [], []>} : vector<8x32xf32>, vector<32x32xf32>, vector<8x32xf32> -> vector<8x32xf32>
    %636 = arith.addf %635, %10 : vector<8x32xf32>
    %cst_323 = arith.constant 0.000000e+00 : f32
    %637 = vector.broadcast %cst_323 : f32 to vector<8x32xf32>
    %638 = arith.cmpf ogt, %636, %637 : vector<8x32xf32>
    %cst_324 = arith.constant 0.000000e+00 : f32
    %639 = vector.broadcast %cst_324 : f32 to vector<8x32xf32>
    %640 = arith.minimumf %636, %639 : vector<8x32xf32>
    %cst_325 = arith.constant 5.000000e-01 : f32
    %641 = vector.broadcast %cst_325 : f32 to vector<8x32xf32>
    %642 = arith.mulf %641, %640 : vector<8x32xf32>
    %643 = math.tanh %642 : vector<8x32xf32>
    %644 = math.exp %640 : vector<8x32xf32>
    %cst_326 = arith.constant 1.000000e+00 : f32
    %645 = vector.broadcast %cst_326 : f32 to vector<8x32xf32>
    %646 = arith.addf %644, %645 : vector<8x32xf32>
    %647 = arith.mulf %643, %646 : vector<8x32xf32>
    %648 = arith.select %638, %636, %647 : vector<8x32xi1>, vector<8x32xf32>
    %c2_327 = arith.constant 2 : index
    %c0_328 = arith.constant 0 : index
    %c0_329 = arith.constant 0 : index
    %649 = vector.load %arg1[%c2_327, %c0_328, %c0_329] : memref<6x32x32xf32, #tpu.memory_space<vmem>>, vector<1x32x32xf32>
    %650 = vector.shape_cast %649 : vector<1x32x32xf32> to vector<32x32xf32>
    %cst_330 = arith.constant dense<0.000000e+00> : vector<8x32xf32>
    %651 = tpu.matmul %648, %650, %cst_330 {dimension_numbers = #tpu.dot_dimension_numbers<[1], [0], [0], [1], [0, 0, 1, 1], [], []>} : vector<8x32xf32>, vector<32x32xf32>, vector<8x32xf32> -> vector<8x32xf32>
    %652 = arith.addf %651, %14 : vector<8x32xf32>
    %653 = arith.subf %569, %610 : vector<8x32xf32>
    %654 = arith.addf %653, %652 : vector<8x32xf32>
    %655 = vector.broadcast %533 : f32 to vector<8x32xf32>
    %656 = arith.mulf %655, %654 : vector<8x32xf32>
    %657 = arith.addf %532, %656 : vector<8x32xf32>
    %c0_331 = arith.constant 0 : index
    %c0_332 = arith.constant 0 : index
    %c0_333 = arith.constant 0 : index
    %658 = vector.load %arg1[%c0_331, %c0_332, %c0_333] : memref<6x32x32xf32, #tpu.memory_space<vmem>>, vector<1x32x32xf32>
    %659 = vector.shape_cast %658 : vector<1x32x32xf32> to vector<32x32xf32>
    %cst_334 = arith.constant dense<0.000000e+00> : vector<8x32xf32>
    %660 = tpu.matmul %657, %659, %cst_334 {dimension_numbers = #tpu.dot_dimension_numbers<[1], [0], [0], [1], [0, 0, 1, 1], [], []>} : vector<8x32xf32>, vector<32x32xf32>, vector<8x32xf32> -> vector<8x32xf32>
    %661 = arith.addf %660, %6 : vector<8x32xf32>
    %cst_335 = arith.constant 0.000000e+00 : f32
    %662 = vector.broadcast %cst_335 : f32 to vector<8x32xf32>
    %663 = arith.cmpf ogt, %661, %662 : vector<8x32xf32>
    %cst_336 = arith.constant 0.000000e+00 : f32
    %664 = vector.broadcast %cst_336 : f32 to vector<8x32xf32>
    %665 = arith.minimumf %661, %664 : vector<8x32xf32>
    %cst_337 = arith.constant 5.000000e-01 : f32
    %666 = vector.broadcast %cst_337 : f32 to vector<8x32xf32>
    %667 = arith.mulf %666, %665 : vector<8x32xf32>
    %668 = math.tanh %667 : vector<8x32xf32>
    %669 = math.exp %665 : vector<8x32xf32>
    %cst_338 = arith.constant 1.000000e+00 : f32
    %670 = vector.broadcast %cst_338 : f32 to vector<8x32xf32>
    %671 = arith.addf %669, %670 : vector<8x32xf32>
    %672 = arith.mulf %668, %671 : vector<8x32xf32>
    %673 = arith.select %663, %661, %672 : vector<8x32xi1>, vector<8x32xf32>
    %c1_339 = arith.constant 1 : index
    %c0_340 = arith.constant 0 : index
    %c0_341 = arith.constant 0 : index
    %674 = vector.load %arg1[%c1_339, %c0_340, %c0_341] : memref<6x32x32xf32, #tpu.memory_space<vmem>>, vector<1x32x32xf32>
    %675 = vector.shape_cast %674 : vector<1x32x32xf32> to vector<32x32xf32>
    %cst_342 = arith.constant dense<0.000000e+00> : vector<8x32xf32>
    %676 = tpu.matmul %673, %675, %cst_342 {dimension_numbers = #tpu.dot_dimension_numbers<[1], [0], [0], [1], [0, 0, 1, 1], [], []>} : vector<8x32xf32>, vector<32x32xf32>, vector<8x32xf32> -> vector<8x32xf32>
    %677 = arith.addf %676, %10 : vector<8x32xf32>
    %cst_343 = arith.constant 0.000000e+00 : f32
    %678 = vector.broadcast %cst_343 : f32 to vector<8x32xf32>
    %679 = arith.cmpf ogt, %677, %678 : vector<8x32xf32>
    %cst_344 = arith.constant 0.000000e+00 : f32
    %680 = vector.broadcast %cst_344 : f32 to vector<8x32xf32>
    %681 = arith.minimumf %677, %680 : vector<8x32xf32>
    %cst_345 = arith.constant 5.000000e-01 : f32
    %682 = vector.broadcast %cst_345 : f32 to vector<8x32xf32>
    %683 = arith.mulf %682, %681 : vector<8x32xf32>
    %684 = math.tanh %683 : vector<8x32xf32>
    %685 = math.exp %681 : vector<8x32xf32>
    %cst_346 = arith.constant 1.000000e+00 : f32
    %686 = vector.broadcast %cst_346 : f32 to vector<8x32xf32>
    %687 = arith.addf %685, %686 : vector<8x32xf32>
    %688 = arith.mulf %684, %687 : vector<8x32xf32>
    %689 = arith.select %679, %677, %688 : vector<8x32xi1>, vector<8x32xf32>
    %c2_347 = arith.constant 2 : index
    %c0_348 = arith.constant 0 : index
    %c0_349 = arith.constant 0 : index
    %690 = vector.load %arg1[%c2_347, %c0_348, %c0_349] : memref<6x32x32xf32, #tpu.memory_space<vmem>>, vector<1x32x32xf32>
    %691 = vector.shape_cast %690 : vector<1x32x32xf32> to vector<32x32xf32>
    %cst_350 = arith.constant dense<0.000000e+00> : vector<8x32xf32>
    %692 = tpu.matmul %689, %691, %cst_350 {dimension_numbers = #tpu.dot_dimension_numbers<[1], [0], [0], [1], [0, 0, 1, 1], [], []>} : vector<8x32xf32>, vector<32x32xf32>, vector<8x32xf32> -> vector<8x32xf32>
    %693 = arith.addf %692, %14 : vector<8x32xf32>
    %cst_351 = arith.constant 1.250000e-01 : f32
    %694 = arith.mulf %533, %cst_351 : f32
    %695 = arith.addf %610, %652 : vector<8x32xf32>
    %cst_352 = arith.constant 3.000000e+00 : f32
    %696 = vector.broadcast %cst_352 : f32 to vector<8x32xf32>
    %697 = arith.mulf %696, %695 : vector<8x32xf32>
    %698 = arith.addf %569, %697 : vector<8x32xf32>
    %699 = arith.addf %698, %693 : vector<8x32xf32>
    %700 = vector.broadcast %694 : f32 to vector<8x32xf32>
    %701 = arith.mulf %700, %699 : vector<8x32xf32>
    %702 = arith.addf %532, %701 : vector<8x32xf32>
    %c4_353 = arith.constant 4 : index
    %703 = memref.load %arg3[%c4_353] : memref<7xf32, #tpu.memory_space<smem>>
    %c0_354 = arith.constant 0 : index
    %c0_355 = arith.constant 0 : index
    %c0_356 = arith.constant 0 : index
    %704 = vector.load %arg1[%c0_354, %c0_355, %c0_356] : memref<6x32x32xf32, #tpu.memory_space<vmem>>, vector<1x32x32xf32>
    %705 = vector.shape_cast %704 : vector<1x32x32xf32> to vector<32x32xf32>
    %cst_357 = arith.constant dense<0.000000e+00> : vector<8x32xf32>
    %706 = tpu.matmul %702, %705, %cst_357 {dimension_numbers = #tpu.dot_dimension_numbers<[1], [0], [0], [1], [0, 0, 1, 1], [], []>} : vector<8x32xf32>, vector<32x32xf32>, vector<8x32xf32> -> vector<8x32xf32>
    %707 = arith.addf %706, %6 : vector<8x32xf32>
    %cst_358 = arith.constant 0.000000e+00 : f32
    %708 = vector.broadcast %cst_358 : f32 to vector<8x32xf32>
    %709 = arith.cmpf ogt, %707, %708 : vector<8x32xf32>
    %cst_359 = arith.constant 0.000000e+00 : f32
    %710 = vector.broadcast %cst_359 : f32 to vector<8x32xf32>
    %711 = arith.minimumf %707, %710 : vector<8x32xf32>
    %cst_360 = arith.constant 5.000000e-01 : f32
    %712 = vector.broadcast %cst_360 : f32 to vector<8x32xf32>
    %713 = arith.mulf %712, %711 : vector<8x32xf32>
    %714 = math.tanh %713 : vector<8x32xf32>
    %715 = math.exp %711 : vector<8x32xf32>
    %cst_361 = arith.constant 1.000000e+00 : f32
    %716 = vector.broadcast %cst_361 : f32 to vector<8x32xf32>
    %717 = arith.addf %715, %716 : vector<8x32xf32>
    %718 = arith.mulf %714, %717 : vector<8x32xf32>
    %719 = arith.select %709, %707, %718 : vector<8x32xi1>, vector<8x32xf32>
    %c1_362 = arith.constant 1 : index
    %c0_363 = arith.constant 0 : index
    %c0_364 = arith.constant 0 : index
    %720 = vector.load %arg1[%c1_362, %c0_363, %c0_364] : memref<6x32x32xf32, #tpu.memory_space<vmem>>, vector<1x32x32xf32>
    %721 = vector.shape_cast %720 : vector<1x32x32xf32> to vector<32x32xf32>
    %cst_365 = arith.constant dense<0.000000e+00> : vector<8x32xf32>
    %722 = tpu.matmul %719, %721, %cst_365 {dimension_numbers = #tpu.dot_dimension_numbers<[1], [0], [0], [1], [0, 0, 1, 1], [], []>} : vector<8x32xf32>, vector<32x32xf32>, vector<8x32xf32> -> vector<8x32xf32>
    %723 = arith.addf %722, %10 : vector<8x32xf32>
    %cst_366 = arith.constant 0.000000e+00 : f32
    %724 = vector.broadcast %cst_366 : f32 to vector<8x32xf32>
    %725 = arith.cmpf ogt, %723, %724 : vector<8x32xf32>
    %cst_367 = arith.constant 0.000000e+00 : f32
    %726 = vector.broadcast %cst_367 : f32 to vector<8x32xf32>
    %727 = arith.minimumf %723, %726 : vector<8x32xf32>
    %cst_368 = arith.constant 5.000000e-01 : f32
    %728 = vector.broadcast %cst_368 : f32 to vector<8x32xf32>
    %729 = arith.mulf %728, %727 : vector<8x32xf32>
    %730 = math.tanh %729 : vector<8x32xf32>
    %731 = math.exp %727 : vector<8x32xf32>
    %cst_369 = arith.constant 1.000000e+00 : f32
    %732 = vector.broadcast %cst_369 : f32 to vector<8x32xf32>
    %733 = arith.addf %731, %732 : vector<8x32xf32>
    %734 = arith.mulf %730, %733 : vector<8x32xf32>
    %735 = arith.select %725, %723, %734 : vector<8x32xi1>, vector<8x32xf32>
    %c2_370 = arith.constant 2 : index
    %c0_371 = arith.constant 0 : index
    %c0_372 = arith.constant 0 : index
    %736 = vector.load %arg1[%c2_370, %c0_371, %c0_372] : memref<6x32x32xf32, #tpu.memory_space<vmem>>, vector<1x32x32xf32>
    %737 = vector.shape_cast %736 : vector<1x32x32xf32> to vector<32x32xf32>
    %cst_373 = arith.constant dense<0.000000e+00> : vector<8x32xf32>
    %738 = tpu.matmul %735, %737, %cst_373 {dimension_numbers = #tpu.dot_dimension_numbers<[1], [0], [0], [1], [0, 0, 1, 1], [], []>} : vector<8x32xf32>, vector<32x32xf32>, vector<8x32xf32> -> vector<8x32xf32>
    %739 = arith.addf %738, %14 : vector<8x32xf32>
    %cst_374 = arith.constant 0.333333343 : f32
    %740 = vector.broadcast %cst_374 : f32 to vector<8x32xf32>
    %741 = arith.mulf %739, %740 : vector<8x32xf32>
    %742 = vector.broadcast %703 : f32 to vector<8x32xf32>
    %743 = arith.mulf %742, %741 : vector<8x32xf32>
    %744 = arith.addf %702, %743 : vector<8x32xf32>
    %c0_375 = arith.constant 0 : index
    %c0_376 = arith.constant 0 : index
    %c0_377 = arith.constant 0 : index
    %745 = vector.load %arg1[%c0_375, %c0_376, %c0_377] : memref<6x32x32xf32, #tpu.memory_space<vmem>>, vector<1x32x32xf32>
    %746 = vector.shape_cast %745 : vector<1x32x32xf32> to vector<32x32xf32>
    %cst_378 = arith.constant dense<0.000000e+00> : vector<8x32xf32>
    %747 = tpu.matmul %744, %746, %cst_378 {dimension_numbers = #tpu.dot_dimension_numbers<[1], [0], [0], [1], [0, 0, 1, 1], [], []>} : vector<8x32xf32>, vector<32x32xf32>, vector<8x32xf32> -> vector<8x32xf32>
    %748 = arith.addf %747, %6 : vector<8x32xf32>
    %cst_379 = arith.constant 0.000000e+00 : f32
    %749 = vector.broadcast %cst_379 : f32 to vector<8x32xf32>
    %750 = arith.cmpf ogt, %748, %749 : vector<8x32xf32>
    %cst_380 = arith.constant 0.000000e+00 : f32
    %751 = vector.broadcast %cst_380 : f32 to vector<8x32xf32>
    %752 = arith.minimumf %748, %751 : vector<8x32xf32>
    %cst_381 = arith.constant 5.000000e-01 : f32
    %753 = vector.broadcast %cst_381 : f32 to vector<8x32xf32>
    %754 = arith.mulf %753, %752 : vector<8x32xf32>
    %755 = math.tanh %754 : vector<8x32xf32>
    %756 = math.exp %752 : vector<8x32xf32>
    %cst_382 = arith.constant 1.000000e+00 : f32
    %757 = vector.broadcast %cst_382 : f32 to vector<8x32xf32>
    %758 = arith.addf %756, %757 : vector<8x32xf32>
    %759 = arith.mulf %755, %758 : vector<8x32xf32>
    %760 = arith.select %750, %748, %759 : vector<8x32xi1>, vector<8x32xf32>
    %c1_383 = arith.constant 1 : index
    %c0_384 = arith.constant 0 : index
    %c0_385 = arith.constant 0 : index
    %761 = vector.load %arg1[%c1_383, %c0_384, %c0_385] : memref<6x32x32xf32, #tpu.memory_space<vmem>>, vector<1x32x32xf32>
    %762 = vector.shape_cast %761 : vector<1x32x32xf32> to vector<32x32xf32>
    %cst_386 = arith.constant dense<0.000000e+00> : vector<8x32xf32>
    %763 = tpu.matmul %760, %762, %cst_386 {dimension_numbers = #tpu.dot_dimension_numbers<[1], [0], [0], [1], [0, 0, 1, 1], [], []>} : vector<8x32xf32>, vector<32x32xf32>, vector<8x32xf32> -> vector<8x32xf32>
    %764 = arith.addf %763, %10 : vector<8x32xf32>
    %cst_387 = arith.constant 0.000000e+00 : f32
    %765 = vector.broadcast %cst_387 : f32 to vector<8x32xf32>
    %766 = arith.cmpf ogt, %764, %765 : vector<8x32xf32>
    %cst_388 = arith.constant 0.000000e+00 : f32
    %767 = vector.broadcast %cst_388 : f32 to vector<8x32xf32>
    %768 = arith.minimumf %764, %767 : vector<8x32xf32>
    %cst_389 = arith.constant 5.000000e-01 : f32
    %769 = vector.broadcast %cst_389 : f32 to vector<8x32xf32>
    %770 = arith.mulf %769, %768 : vector<8x32xf32>
    %771 = math.tanh %770 : vector<8x32xf32>
    %772 = math.exp %768 : vector<8x32xf32>
    %cst_390 = arith.constant 1.000000e+00 : f32
    %773 = vector.broadcast %cst_390 : f32 to vector<8x32xf32>
    %774 = arith.addf %772, %773 : vector<8x32xf32>
    %775 = arith.mulf %771, %774 : vector<8x32xf32>
    %776 = arith.select %766, %764, %775 : vector<8x32xi1>, vector<8x32xf32>
    %c2_391 = arith.constant 2 : index
    %c0_392 = arith.constant 0 : index
    %c0_393 = arith.constant 0 : index
    %777 = vector.load %arg1[%c2_391, %c0_392, %c0_393] : memref<6x32x32xf32, #tpu.memory_space<vmem>>, vector<1x32x32xf32>
    %778 = vector.shape_cast %777 : vector<1x32x32xf32> to vector<32x32xf32>
    %cst_394 = arith.constant dense<0.000000e+00> : vector<8x32xf32>
    %779 = tpu.matmul %776, %778, %cst_394 {dimension_numbers = #tpu.dot_dimension_numbers<[1], [0], [0], [1], [0, 0, 1, 1], [], []>} : vector<8x32xf32>, vector<32x32xf32>, vector<8x32xf32> -> vector<8x32xf32>
    %780 = arith.addf %779, %14 : vector<8x32xf32>
    %cst_395 = arith.constant 0.333333343 : f32
    %781 = vector.broadcast %cst_395 : f32 to vector<8x32xf32>
    %782 = arith.mulf %739, %781 : vector<8x32xf32>
    %783 = arith.subf %780, %782 : vector<8x32xf32>
    %784 = vector.broadcast %703 : f32 to vector<8x32xf32>
    %785 = arith.mulf %784, %783 : vector<8x32xf32>
    %786 = arith.addf %702, %785 : vector<8x32xf32>
    %c0_396 = arith.constant 0 : index
    %c0_397 = arith.constant 0 : index
    %c0_398 = arith.constant 0 : index
    %787 = vector.load %arg1[%c0_396, %c0_397, %c0_398] : memref<6x32x32xf32, #tpu.memory_space<vmem>>, vector<1x32x32xf32>
    %788 = vector.shape_cast %787 : vector<1x32x32xf32> to vector<32x32xf32>
    %cst_399 = arith.constant dense<0.000000e+00> : vector<8x32xf32>
    %789 = tpu.matmul %786, %788, %cst_399 {dimension_numbers = #tpu.dot_dimension_numbers<[1], [0], [0], [1], [0, 0, 1, 1], [], []>} : vector<8x32xf32>, vector<32x32xf32>, vector<8x32xf32> -> vector<8x32xf32>
    %790 = arith.addf %789, %6 : vector<8x32xf32>
    %cst_400 = arith.constant 0.000000e+00 : f32
    %791 = vector.broadcast %cst_400 : f32 to vector<8x32xf32>
    %792 = arith.cmpf ogt, %790, %791 : vector<8x32xf32>
    %cst_401 = arith.constant 0.000000e+00 : f32
    %793 = vector.broadcast %cst_401 : f32 to vector<8x32xf32>
    %794 = arith.minimumf %790, %793 : vector<8x32xf32>
    %cst_402 = arith.constant 5.000000e-01 : f32
    %795 = vector.broadcast %cst_402 : f32 to vector<8x32xf32>
    %796 = arith.mulf %795, %794 : vector<8x32xf32>
    %797 = math.tanh %796 : vector<8x32xf32>
    %798 = math.exp %794 : vector<8x32xf32>
    %cst_403 = arith.constant 1.000000e+00 : f32
    %799 = vector.broadcast %cst_403 : f32 to vector<8x32xf32>
    %800 = arith.addf %798, %799 : vector<8x32xf32>
    %801 = arith.mulf %797, %800 : vector<8x32xf32>
    %802 = arith.select %792, %790, %801 : vector<8x32xi1>, vector<8x32xf32>
    %c1_404 = arith.constant 1 : index
    %c0_405 = arith.constant 0 : index
    %c0_406 = arith.constant 0 : index
    %803 = vector.load %arg1[%c1_404, %c0_405, %c0_406] : memref<6x32x32xf32, #tpu.memory_space<vmem>>, vector<1x32x32xf32>
    %804 = vector.shape_cast %803 : vector<1x32x32xf32> to vector<32x32xf32>
    %cst_407 = arith.constant dense<0.000000e+00> : vector<8x32xf32>
    %805 = tpu.matmul %802, %804, %cst_407 {dimension_numbers = #tpu.dot_dimension_numbers<[1], [0], [0], [1], [0, 0, 1, 1], [], []>} : vector<8x32xf32>, vector<32x32xf32>, vector<8x32xf32> -> vector<8x32xf32>
    %806 = arith.addf %805, %10 : vector<8x32xf32>
    %cst_408 = arith.constant 0.000000e+00 : f32
    %807 = vector.broadcast %cst_408 : f32 to vector<8x32xf32>
    %808 = arith.cmpf ogt, %806, %807 : vector<8x32xf32>
    %cst_409 = arith.constant 0.000000e+00 : f32
    %809 = vector.broadcast %cst_409 : f32 to vector<8x32xf32>
    %810 = arith.minimumf %806, %809 : vector<8x32xf32>
    %cst_410 = arith.constant 5.000000e-01 : f32
    %811 = vector.broadcast %cst_410 : f32 to vector<8x32xf32>
    %812 = arith.mulf %811, %810 : vector<8x32xf32>
    %813 = math.tanh %812 : vector<8x32xf32>
    %814 = math.exp %810 : vector<8x32xf32>
    %cst_411 = arith.constant 1.000000e+00 : f32
    %815 = vector.broadcast %cst_411 : f32 to vector<8x32xf32>
    %816 = arith.addf %814, %815 : vector<8x32xf32>
    %817 = arith.mulf %813, %816 : vector<8x32xf32>
    %818 = arith.select %808, %806, %817 : vector<8x32xi1>, vector<8x32xf32>
    %c2_412 = arith.constant 2 : index
    %c0_413 = arith.constant 0 : index
    %c0_414 = arith.constant 0 : index
    %819 = vector.load %arg1[%c2_412, %c0_413, %c0_414] : memref<6x32x32xf32, #tpu.memory_space<vmem>>, vector<1x32x32xf32>
    %820 = vector.shape_cast %819 : vector<1x32x32xf32> to vector<32x32xf32>
    %cst_415 = arith.constant dense<0.000000e+00> : vector<8x32xf32>
    %821 = tpu.matmul %818, %820, %cst_415 {dimension_numbers = #tpu.dot_dimension_numbers<[1], [0], [0], [1], [0, 0, 1, 1], [], []>} : vector<8x32xf32>, vector<32x32xf32>, vector<8x32xf32> -> vector<8x32xf32>
    %822 = arith.addf %821, %14 : vector<8x32xf32>
    %823 = arith.subf %739, %780 : vector<8x32xf32>
    %824 = arith.addf %823, %822 : vector<8x32xf32>
    %825 = vector.broadcast %703 : f32 to vector<8x32xf32>
    %826 = arith.mulf %825, %824 : vector<8x32xf32>
    %827 = arith.addf %702, %826 : vector<8x32xf32>
    %c0_416 = arith.constant 0 : index
    %c0_417 = arith.constant 0 : index
    %c0_418 = arith.constant 0 : index
    %828 = vector.load %arg1[%c0_416, %c0_417, %c0_418] : memref<6x32x32xf32, #tpu.memory_space<vmem>>, vector<1x32x32xf32>
    %829 = vector.shape_cast %828 : vector<1x32x32xf32> to vector<32x32xf32>
    %cst_419 = arith.constant dense<0.000000e+00> : vector<8x32xf32>
    %830 = tpu.matmul %827, %829, %cst_419 {dimension_numbers = #tpu.dot_dimension_numbers<[1], [0], [0], [1], [0, 0, 1, 1], [], []>} : vector<8x32xf32>, vector<32x32xf32>, vector<8x32xf32> -> vector<8x32xf32>
    %831 = arith.addf %830, %6 : vector<8x32xf32>
    %cst_420 = arith.constant 0.000000e+00 : f32
    %832 = vector.broadcast %cst_420 : f32 to vector<8x32xf32>
    %833 = arith.cmpf ogt, %831, %832 : vector<8x32xf32>
    %cst_421 = arith.constant 0.000000e+00 : f32
    %834 = vector.broadcast %cst_421 : f32 to vector<8x32xf32>
    %835 = arith.minimumf %831, %834 : vector<8x32xf32>
    %cst_422 = arith.constant 5.000000e-01 : f32
    %836 = vector.broadcast %cst_422 : f32 to vector<8x32xf32>
    %837 = arith.mulf %836, %835 : vector<8x32xf32>
    %838 = math.tanh %837 : vector<8x32xf32>
    %839 = math.exp %835 : vector<8x32xf32>
    %cst_423 = arith.constant 1.000000e+00 : f32
    %840 = vector.broadcast %cst_423 : f32 to vector<8x32xf32>
    %841 = arith.addf %839, %840 : vector<8x32xf32>
    %842 = arith.mulf %838, %841 : vector<8x32xf32>
    %843 = arith.select %833, %831, %842 : vector<8x32xi1>, vector<8x32xf32>
    %c1_424 = arith.constant 1 : index
    %c0_425 = arith.constant 0 : index
    %c0_426 = arith.constant 0 : index
    %844 = vector.load %arg1[%c1_424, %c0_425, %c0_426] : memref<6x32x32xf32, #tpu.memory_space<vmem>>, vector<1x32x32xf32>
    %845 = vector.shape_cast %844 : vector<1x32x32xf32> to vector<32x32xf32>
    %cst_427 = arith.constant dense<0.000000e+00> : vector<8x32xf32>
    %846 = tpu.matmul %843, %845, %cst_427 {dimension_numbers = #tpu.dot_dimension_numbers<[1], [0], [0], [1], [0, 0, 1, 1], [], []>} : vector<8x32xf32>, vector<32x32xf32>, vector<8x32xf32> -> vector<8x32xf32>
    %847 = arith.addf %846, %10 : vector<8x32xf32>
    %cst_428 = arith.constant 0.000000e+00 : f32
    %848 = vector.broadcast %cst_428 : f32 to vector<8x32xf32>
    %849 = arith.cmpf ogt, %847, %848 : vector<8x32xf32>
    %cst_429 = arith.constant 0.000000e+00 : f32
    %850 = vector.broadcast %cst_429 : f32 to vector<8x32xf32>
    %851 = arith.minimumf %847, %850 : vector<8x32xf32>
    %cst_430 = arith.constant 5.000000e-01 : f32
    %852 = vector.broadcast %cst_430 : f32 to vector<8x32xf32>
    %853 = arith.mulf %852, %851 : vector<8x32xf32>
    %854 = math.tanh %853 : vector<8x32xf32>
    %855 = math.exp %851 : vector<8x32xf32>
    %cst_431 = arith.constant 1.000000e+00 : f32
    %856 = vector.broadcast %cst_431 : f32 to vector<8x32xf32>
    %857 = arith.addf %855, %856 : vector<8x32xf32>
    %858 = arith.mulf %854, %857 : vector<8x32xf32>
    %859 = arith.select %849, %847, %858 : vector<8x32xi1>, vector<8x32xf32>
    %c2_432 = arith.constant 2 : index
    %c0_433 = arith.constant 0 : index
    %c0_434 = arith.constant 0 : index
    %860 = vector.load %arg1[%c2_432, %c0_433, %c0_434] : memref<6x32x32xf32, #tpu.memory_space<vmem>>, vector<1x32x32xf32>
    %861 = vector.shape_cast %860 : vector<1x32x32xf32> to vector<32x32xf32>
    %cst_435 = arith.constant dense<0.000000e+00> : vector<8x32xf32>
    %862 = tpu.matmul %859, %861, %cst_435 {dimension_numbers = #tpu.dot_dimension_numbers<[1], [0], [0], [1], [0, 0, 1, 1], [], []>} : vector<8x32xf32>, vector<32x32xf32>, vector<8x32xf32> -> vector<8x32xf32>
    %863 = arith.addf %862, %14 : vector<8x32xf32>
    %cst_436 = arith.constant 1.250000e-01 : f32
    %864 = arith.mulf %703, %cst_436 : f32
    %865 = arith.addf %780, %822 : vector<8x32xf32>
    %cst_437 = arith.constant 3.000000e+00 : f32
    %866 = vector.broadcast %cst_437 : f32 to vector<8x32xf32>
    %867 = arith.mulf %866, %865 : vector<8x32xf32>
    %868 = arith.addf %739, %867 : vector<8x32xf32>
    %869 = arith.addf %868, %863 : vector<8x32xf32>
    %870 = vector.broadcast %864 : f32 to vector<8x32xf32>
    %871 = arith.mulf %870, %869 : vector<8x32xf32>
    %872 = arith.addf %702, %871 : vector<8x32xf32>
    %c5 = arith.constant 5 : index
    %873 = memref.load %arg3[%c5] : memref<7xf32, #tpu.memory_space<smem>>
    %c0_438 = arith.constant 0 : index
    %c0_439 = arith.constant 0 : index
    %c0_440 = arith.constant 0 : index
    %874 = vector.load %arg1[%c0_438, %c0_439, %c0_440] : memref<6x32x32xf32, #tpu.memory_space<vmem>>, vector<1x32x32xf32>
    %875 = vector.shape_cast %874 : vector<1x32x32xf32> to vector<32x32xf32>
    %cst_441 = arith.constant dense<0.000000e+00> : vector<8x32xf32>
    %876 = tpu.matmul %872, %875, %cst_441 {dimension_numbers = #tpu.dot_dimension_numbers<[1], [0], [0], [1], [0, 0, 1, 1], [], []>} : vector<8x32xf32>, vector<32x32xf32>, vector<8x32xf32> -> vector<8x32xf32>
    %877 = arith.addf %876, %6 : vector<8x32xf32>
    %cst_442 = arith.constant 0.000000e+00 : f32
    %878 = vector.broadcast %cst_442 : f32 to vector<8x32xf32>
    %879 = arith.cmpf ogt, %877, %878 : vector<8x32xf32>
    %cst_443 = arith.constant 0.000000e+00 : f32
    %880 = vector.broadcast %cst_443 : f32 to vector<8x32xf32>
    %881 = arith.minimumf %877, %880 : vector<8x32xf32>
    %cst_444 = arith.constant 5.000000e-01 : f32
    %882 = vector.broadcast %cst_444 : f32 to vector<8x32xf32>
    %883 = arith.mulf %882, %881 : vector<8x32xf32>
    %884 = math.tanh %883 : vector<8x32xf32>
    %885 = math.exp %881 : vector<8x32xf32>
    %cst_445 = arith.constant 1.000000e+00 : f32
    %886 = vector.broadcast %cst_445 : f32 to vector<8x32xf32>
    %887 = arith.addf %885, %886 : vector<8x32xf32>
    %888 = arith.mulf %884, %887 : vector<8x32xf32>
    %889 = arith.select %879, %877, %888 : vector<8x32xi1>, vector<8x32xf32>
    %c1_446 = arith.constant 1 : index
    %c0_447 = arith.constant 0 : index
    %c0_448 = arith.constant 0 : index
    %890 = vector.load %arg1[%c1_446, %c0_447, %c0_448] : memref<6x32x32xf32, #tpu.memory_space<vmem>>, vector<1x32x32xf32>
    %891 = vector.shape_cast %890 : vector<1x32x32xf32> to vector<32x32xf32>
    %cst_449 = arith.constant dense<0.000000e+00> : vector<8x32xf32>
    %892 = tpu.matmul %889, %891, %cst_449 {dimension_numbers = #tpu.dot_dimension_numbers<[1], [0], [0], [1], [0, 0, 1, 1], [], []>} : vector<8x32xf32>, vector<32x32xf32>, vector<8x32xf32> -> vector<8x32xf32>
    %893 = arith.addf %892, %10 : vector<8x32xf32>
    %cst_450 = arith.constant 0.000000e+00 : f32
    %894 = vector.broadcast %cst_450 : f32 to vector<8x32xf32>
    %895 = arith.cmpf ogt, %893, %894 : vector<8x32xf32>
    %cst_451 = arith.constant 0.000000e+00 : f32
    %896 = vector.broadcast %cst_451 : f32 to vector<8x32xf32>
    %897 = arith.minimumf %893, %896 : vector<8x32xf32>
    %cst_452 = arith.constant 5.000000e-01 : f32
    %898 = vector.broadcast %cst_452 : f32 to vector<8x32xf32>
    %899 = arith.mulf %898, %897 : vector<8x32xf32>
    %900 = math.tanh %899 : vector<8x32xf32>
    %901 = math.exp %897 : vector<8x32xf32>
    %cst_453 = arith.constant 1.000000e+00 : f32
    %902 = vector.broadcast %cst_453 : f32 to vector<8x32xf32>
    %903 = arith.addf %901, %902 : vector<8x32xf32>
    %904 = arith.mulf %900, %903 : vector<8x32xf32>
    %905 = arith.select %895, %893, %904 : vector<8x32xi1>, vector<8x32xf32>
    %c2_454 = arith.constant 2 : index
    %c0_455 = arith.constant 0 : index
    %c0_456 = arith.constant 0 : index
    %906 = vector.load %arg1[%c2_454, %c0_455, %c0_456] : memref<6x32x32xf32, #tpu.memory_space<vmem>>, vector<1x32x32xf32>
    %907 = vector.shape_cast %906 : vector<1x32x32xf32> to vector<32x32xf32>
    %cst_457 = arith.constant dense<0.000000e+00> : vector<8x32xf32>
    %908 = tpu.matmul %905, %907, %cst_457 {dimension_numbers = #tpu.dot_dimension_numbers<[1], [0], [0], [1], [0, 0, 1, 1], [], []>} : vector<8x32xf32>, vector<32x32xf32>, vector<8x32xf32> -> vector<8x32xf32>
    %909 = arith.addf %908, %14 : vector<8x32xf32>
    %cst_458 = arith.constant 0.333333343 : f32
    %910 = vector.broadcast %cst_458 : f32 to vector<8x32xf32>
    %911 = arith.mulf %909, %910 : vector<8x32xf32>
    %912 = vector.broadcast %873 : f32 to vector<8x32xf32>
    %913 = arith.mulf %912, %911 : vector<8x32xf32>
    %914 = arith.addf %872, %913 : vector<8x32xf32>
    %c0_459 = arith.constant 0 : index
    %c0_460 = arith.constant 0 : index
    %c0_461 = arith.constant 0 : index
    %915 = vector.load %arg1[%c0_459, %c0_460, %c0_461] : memref<6x32x32xf32, #tpu.memory_space<vmem>>, vector<1x32x32xf32>
    %916 = vector.shape_cast %915 : vector<1x32x32xf32> to vector<32x32xf32>
    %cst_462 = arith.constant dense<0.000000e+00> : vector<8x32xf32>
    %917 = tpu.matmul %914, %916, %cst_462 {dimension_numbers = #tpu.dot_dimension_numbers<[1], [0], [0], [1], [0, 0, 1, 1], [], []>} : vector<8x32xf32>, vector<32x32xf32>, vector<8x32xf32> -> vector<8x32xf32>
    %918 = arith.addf %917, %6 : vector<8x32xf32>
    %cst_463 = arith.constant 0.000000e+00 : f32
    %919 = vector.broadcast %cst_463 : f32 to vector<8x32xf32>
    %920 = arith.cmpf ogt, %918, %919 : vector<8x32xf32>
    %cst_464 = arith.constant 0.000000e+00 : f32
    %921 = vector.broadcast %cst_464 : f32 to vector<8x32xf32>
    %922 = arith.minimumf %918, %921 : vector<8x32xf32>
    %cst_465 = arith.constant 5.000000e-01 : f32
    %923 = vector.broadcast %cst_465 : f32 to vector<8x32xf32>
    %924 = arith.mulf %923, %922 : vector<8x32xf32>
    %925 = math.tanh %924 : vector<8x32xf32>
    %926 = math.exp %922 : vector<8x32xf32>
    %cst_466 = arith.constant 1.000000e+00 : f32
    %927 = vector.broadcast %cst_466 : f32 to vector<8x32xf32>
    %928 = arith.addf %926, %927 : vector<8x32xf32>
    %929 = arith.mulf %925, %928 : vector<8x32xf32>
    %930 = arith.select %920, %918, %929 : vector<8x32xi1>, vector<8x32xf32>
    %c1_467 = arith.constant 1 : index
    %c0_468 = arith.constant 0 : index
    %c0_469 = arith.constant 0 : index
    %931 = vector.load %arg1[%c1_467, %c0_468, %c0_469] : memref<6x32x32xf32, #tpu.memory_space<vmem>>, vector<1x32x32xf32>
    %932 = vector.shape_cast %931 : vector<1x32x32xf32> to vector<32x32xf32>
    %cst_470 = arith.constant dense<0.000000e+00> : vector<8x32xf32>
    %933 = tpu.matmul %930, %932, %cst_470 {dimension_numbers = #tpu.dot_dimension_numbers<[1], [0], [0], [1], [0, 0, 1, 1], [], []>} : vector<8x32xf32>, vector<32x32xf32>, vector<8x32xf32> -> vector<8x32xf32>
    %934 = arith.addf %933, %10 : vector<8x32xf32>
    %cst_471 = arith.constant 0.000000e+00 : f32
    %935 = vector.broadcast %cst_471 : f32 to vector<8x32xf32>
    %936 = arith.cmpf ogt, %934, %935 : vector<8x32xf32>
    %cst_472 = arith.constant 0.000000e+00 : f32
    %937 = vector.broadcast %cst_472 : f32 to vector<8x32xf32>
    %938 = arith.minimumf %934, %937 : vector<8x32xf32>
    %cst_473 = arith.constant 5.000000e-01 : f32
    %939 = vector.broadcast %cst_473 : f32 to vector<8x32xf32>
    %940 = arith.mulf %939, %938 : vector<8x32xf32>
    %941 = math.tanh %940 : vector<8x32xf32>
    %942 = math.exp %938 : vector<8x32xf32>
    %cst_474 = arith.constant 1.000000e+00 : f32
    %943 = vector.broadcast %cst_474 : f32 to vector<8x32xf32>
    %944 = arith.addf %942, %943 : vector<8x32xf32>
    %945 = arith.mulf %941, %944 : vector<8x32xf32>
    %946 = arith.select %936, %934, %945 : vector<8x32xi1>, vector<8x32xf32>
    %c2_475 = arith.constant 2 : index
    %c0_476 = arith.constant 0 : index
    %c0_477 = arith.constant 0 : index
    %947 = vector.load %arg1[%c2_475, %c0_476, %c0_477] : memref<6x32x32xf32, #tpu.memory_space<vmem>>, vector<1x32x32xf32>
    %948 = vector.shape_cast %947 : vector<1x32x32xf32> to vector<32x32xf32>
    %cst_478 = arith.constant dense<0.000000e+00> : vector<8x32xf32>
    %949 = tpu.matmul %946, %948, %cst_478 {dimension_numbers = #tpu.dot_dimension_numbers<[1], [0], [0], [1], [0, 0, 1, 1], [], []>} : vector<8x32xf32>, vector<32x32xf32>, vector<8x32xf32> -> vector<8x32xf32>
    %950 = arith.addf %949, %14 : vector<8x32xf32>
    %cst_479 = arith.constant 0.333333343 : f32
    %951 = vector.broadcast %cst_479 : f32 to vector<8x32xf32>
    %952 = arith.mulf %909, %951 : vector<8x32xf32>
    %953 = arith.subf %950, %952 : vector<8x32xf32>
    %954 = vector.broadcast %873 : f32 to vector<8x32xf32>
    %955 = arith.mulf %954, %953 : vector<8x32xf32>
    %956 = arith.addf %872, %955 : vector<8x32xf32>
    %c0_480 = arith.constant 0 : index
    %c0_481 = arith.constant 0 : index
    %c0_482 = arith.constant 0 : index
    %957 = vector.load %arg1[%c0_480, %c0_481, %c0_482] : memref<6x32x32xf32, #tpu.memory_space<vmem>>, vector<1x32x32xf32>
    %958 = vector.shape_cast %957 : vector<1x32x32xf32> to vector<32x32xf32>
    %cst_483 = arith.constant dense<0.000000e+00> : vector<8x32xf32>
    %959 = tpu.matmul %956, %958, %cst_483 {dimension_numbers = #tpu.dot_dimension_numbers<[1], [0], [0], [1], [0, 0, 1, 1], [], []>} : vector<8x32xf32>, vector<32x32xf32>, vector<8x32xf32> -> vector<8x32xf32>
    %960 = arith.addf %959, %6 : vector<8x32xf32>
    %cst_484 = arith.constant 0.000000e+00 : f32
    %961 = vector.broadcast %cst_484 : f32 to vector<8x32xf32>
    %962 = arith.cmpf ogt, %960, %961 : vector<8x32xf32>
    %cst_485 = arith.constant 0.000000e+00 : f32
    %963 = vector.broadcast %cst_485 : f32 to vector<8x32xf32>
    %964 = arith.minimumf %960, %963 : vector<8x32xf32>
    %cst_486 = arith.constant 5.000000e-01 : f32
    %965 = vector.broadcast %cst_486 : f32 to vector<8x32xf32>
    %966 = arith.mulf %965, %964 : vector<8x32xf32>
    %967 = math.tanh %966 : vector<8x32xf32>
    %968 = math.exp %964 : vector<8x32xf32>
    %cst_487 = arith.constant 1.000000e+00 : f32
    %969 = vector.broadcast %cst_487 : f32 to vector<8x32xf32>
    %970 = arith.addf %968, %969 : vector<8x32xf32>
    %971 = arith.mulf %967, %970 : vector<8x32xf32>
    %972 = arith.select %962, %960, %971 : vector<8x32xi1>, vector<8x32xf32>
    %c1_488 = arith.constant 1 : index
    %c0_489 = arith.constant 0 : index
    %c0_490 = arith.constant 0 : index
    %973 = vector.load %arg1[%c1_488, %c0_489, %c0_490] : memref<6x32x32xf32, #tpu.memory_space<vmem>>, vector<1x32x32xf32>
    %974 = vector.shape_cast %973 : vector<1x32x32xf32> to vector<32x32xf32>
    %cst_491 = arith.constant dense<0.000000e+00> : vector<8x32xf32>
    %975 = tpu.matmul %972, %974, %cst_491 {dimension_numbers = #tpu.dot_dimension_numbers<[1], [0], [0], [1], [0, 0, 1, 1], [], []>} : vector<8x32xf32>, vector<32x32xf32>, vector<8x32xf32> -> vector<8x32xf32>
    %976 = arith.addf %975, %10 : vector<8x32xf32>
    %cst_492 = arith.constant 0.000000e+00 : f32
    %977 = vector.broadcast %cst_492 : f32 to vector<8x32xf32>
    %978 = arith.cmpf ogt, %976, %977 : vector<8x32xf32>
    %cst_493 = arith.constant 0.000000e+00 : f32
    %979 = vector.broadcast %cst_493 : f32 to vector<8x32xf32>
    %980 = arith.minimumf %976, %979 : vector<8x32xf32>
    %cst_494 = arith.constant 5.000000e-01 : f32
    %981 = vector.broadcast %cst_494 : f32 to vector<8x32xf32>
    %982 = arith.mulf %981, %980 : vector<8x32xf32>
    %983 = math.tanh %982 : vector<8x32xf32>
    %984 = math.exp %980 : vector<8x32xf32>
    %cst_495 = arith.constant 1.000000e+00 : f32
    %985 = vector.broadcast %cst_495 : f32 to vector<8x32xf32>
    %986 = arith.addf %984, %985 : vector<8x32xf32>
    %987 = arith.mulf %983, %986 : vector<8x32xf32>
    %988 = arith.select %978, %976, %987 : vector<8x32xi1>, vector<8x32xf32>
    %c2_496 = arith.constant 2 : index
    %c0_497 = arith.constant 0 : index
    %c0_498 = arith.constant 0 : index
    %989 = vector.load %arg1[%c2_496, %c0_497, %c0_498] : memref<6x32x32xf32, #tpu.memory_space<vmem>>, vector<1x32x32xf32>
    %990 = vector.shape_cast %989 : vector<1x32x32xf32> to vector<32x32xf32>
    %cst_499 = arith.constant dense<0.000000e+00> : vector<8x32xf32>
    %991 = tpu.matmul %988, %990, %cst_499 {dimension_numbers = #tpu.dot_dimension_numbers<[1], [0], [0], [1], [0, 0, 1, 1], [], []>} : vector<8x32xf32>, vector<32x32xf32>, vector<8x32xf32> -> vector<8x32xf32>
    %992 = arith.addf %991, %14 : vector<8x32xf32>
    %993 = arith.subf %909, %950 : vector<8x32xf32>
    %994 = arith.addf %993, %992 : vector<8x32xf32>
    %995 = vector.broadcast %873 : f32 to vector<8x32xf32>
    %996 = arith.mulf %995, %994 : vector<8x32xf32>
    %997 = arith.addf %872, %996 : vector<8x32xf32>
    %c0_500 = arith.constant 0 : index
    %c0_501 = arith.constant 0 : index
    %c0_502 = arith.constant 0 : index
    %998 = vector.load %arg1[%c0_500, %c0_501, %c0_502] : memref<6x32x32xf32, #tpu.memory_space<vmem>>, vector<1x32x32xf32>
    %999 = vector.shape_cast %998 : vector<1x32x32xf32> to vector<32x32xf32>
    %cst_503 = arith.constant dense<0.000000e+00> : vector<8x32xf32>
    %1000 = tpu.matmul %997, %999, %cst_503 {dimension_numbers = #tpu.dot_dimension_numbers<[1], [0], [0], [1], [0, 0, 1, 1], [], []>} : vector<8x32xf32>, vector<32x32xf32>, vector<8x32xf32> -> vector<8x32xf32>
    %1001 = arith.addf %1000, %6 : vector<8x32xf32>
    %cst_504 = arith.constant 0.000000e+00 : f32
    %1002 = vector.broadcast %cst_504 : f32 to vector<8x32xf32>
    %1003 = arith.cmpf ogt, %1001, %1002 : vector<8x32xf32>
    %cst_505 = arith.constant 0.000000e+00 : f32
    %1004 = vector.broadcast %cst_505 : f32 to vector<8x32xf32>
    %1005 = arith.minimumf %1001, %1004 : vector<8x32xf32>
    %cst_506 = arith.constant 5.000000e-01 : f32
    %1006 = vector.broadcast %cst_506 : f32 to vector<8x32xf32>
    %1007 = arith.mulf %1006, %1005 : vector<8x32xf32>
    %1008 = math.tanh %1007 : vector<8x32xf32>
    %1009 = math.exp %1005 : vector<8x32xf32>
    %cst_507 = arith.constant 1.000000e+00 : f32
    %1010 = vector.broadcast %cst_507 : f32 to vector<8x32xf32>
    %1011 = arith.addf %1009, %1010 : vector<8x32xf32>
    %1012 = arith.mulf %1008, %1011 : vector<8x32xf32>
    %1013 = arith.select %1003, %1001, %1012 : vector<8x32xi1>, vector<8x32xf32>
    %c1_508 = arith.constant 1 : index
    %c0_509 = arith.constant 0 : index
    %c0_510 = arith.constant 0 : index
    %1014 = vector.load %arg1[%c1_508, %c0_509, %c0_510] : memref<6x32x32xf32, #tpu.memory_space<vmem>>, vector<1x32x32xf32>
    %1015 = vector.shape_cast %1014 : vector<1x32x32xf32> to vector<32x32xf32>
    %cst_511 = arith.constant dense<0.000000e+00> : vector<8x32xf32>
    %1016 = tpu.matmul %1013, %1015, %cst_511 {dimension_numbers = #tpu.dot_dimension_numbers<[1], [0], [0], [1], [0, 0, 1, 1], [], []>} : vector<8x32xf32>, vector<32x32xf32>, vector<8x32xf32> -> vector<8x32xf32>
    %1017 = arith.addf %1016, %10 : vector<8x32xf32>
    %cst_512 = arith.constant 0.000000e+00 : f32
    %1018 = vector.broadcast %cst_512 : f32 to vector<8x32xf32>
    %1019 = arith.cmpf ogt, %1017, %1018 : vector<8x32xf32>
    %cst_513 = arith.constant 0.000000e+00 : f32
    %1020 = vector.broadcast %cst_513 : f32 to vector<8x32xf32>
    %1021 = arith.minimumf %1017, %1020 : vector<8x32xf32>
    %cst_514 = arith.constant 5.000000e-01 : f32
    %1022 = vector.broadcast %cst_514 : f32 to vector<8x32xf32>
    %1023 = arith.mulf %1022, %1021 : vector<8x32xf32>
    %1024 = math.tanh %1023 : vector<8x32xf32>
    %1025 = math.exp %1021 : vector<8x32xf32>
    %cst_515 = arith.constant 1.000000e+00 : f32
    %1026 = vector.broadcast %cst_515 : f32 to vector<8x32xf32>
    %1027 = arith.addf %1025, %1026 : vector<8x32xf32>
    %1028 = arith.mulf %1024, %1027 : vector<8x32xf32>
    %1029 = arith.select %1019, %1017, %1028 : vector<8x32xi1>, vector<8x32xf32>
    %c2_516 = arith.constant 2 : index
    %c0_517 = arith.constant 0 : index
    %c0_518 = arith.constant 0 : index
    %1030 = vector.load %arg1[%c2_516, %c0_517, %c0_518] : memref<6x32x32xf32, #tpu.memory_space<vmem>>, vector<1x32x32xf32>
    %1031 = vector.shape_cast %1030 : vector<1x32x32xf32> to vector<32x32xf32>
    %cst_519 = arith.constant dense<0.000000e+00> : vector<8x32xf32>
    %1032 = tpu.matmul %1029, %1031, %cst_519 {dimension_numbers = #tpu.dot_dimension_numbers<[1], [0], [0], [1], [0, 0, 1, 1], [], []>} : vector<8x32xf32>, vector<32x32xf32>, vector<8x32xf32> -> vector<8x32xf32>
    %1033 = arith.addf %1032, %14 : vector<8x32xf32>
    %cst_520 = arith.constant 1.250000e-01 : f32
    %1034 = arith.mulf %873, %cst_520 : f32
    %1035 = arith.addf %950, %992 : vector<8x32xf32>
    %cst_521 = arith.constant 3.000000e+00 : f32
    %1036 = vector.broadcast %cst_521 : f32 to vector<8x32xf32>
    %1037 = arith.mulf %1036, %1035 : vector<8x32xf32>
    %1038 = arith.addf %909, %1037 : vector<8x32xf32>
    %1039 = arith.addf %1038, %1033 : vector<8x32xf32>
    %1040 = vector.broadcast %1034 : f32 to vector<8x32xf32>
    %1041 = arith.mulf %1040, %1039 : vector<8x32xf32>
    %1042 = arith.addf %872, %1041 : vector<8x32xf32>
    %c6 = arith.constant 6 : index
    %1043 = memref.load %arg3[%c6] : memref<7xf32, #tpu.memory_space<smem>>
    %c0_522 = arith.constant 0 : index
    %c0_523 = arith.constant 0 : index
    %c0_524 = arith.constant 0 : index
    %1044 = vector.load %arg1[%c0_522, %c0_523, %c0_524] : memref<6x32x32xf32, #tpu.memory_space<vmem>>, vector<1x32x32xf32>
    %1045 = vector.shape_cast %1044 : vector<1x32x32xf32> to vector<32x32xf32>
    %cst_525 = arith.constant dense<0.000000e+00> : vector<8x32xf32>
    %1046 = tpu.matmul %1042, %1045, %cst_525 {dimension_numbers = #tpu.dot_dimension_numbers<[1], [0], [0], [1], [0, 0, 1, 1], [], []>} : vector<8x32xf32>, vector<32x32xf32>, vector<8x32xf32> -> vector<8x32xf32>
    %1047 = arith.addf %1046, %6 : vector<8x32xf32>
    %cst_526 = arith.constant 0.000000e+00 : f32
    %1048 = vector.broadcast %cst_526 : f32 to vector<8x32xf32>
    %1049 = arith.cmpf ogt, %1047, %1048 : vector<8x32xf32>
    %cst_527 = arith.constant 0.000000e+00 : f32
    %1050 = vector.broadcast %cst_527 : f32 to vector<8x32xf32>
    %1051 = arith.minimumf %1047, %1050 : vector<8x32xf32>
    %cst_528 = arith.constant 5.000000e-01 : f32
    %1052 = vector.broadcast %cst_528 : f32 to vector<8x32xf32>
    %1053 = arith.mulf %1052, %1051 : vector<8x32xf32>
    %1054 = math.tanh %1053 : vector<8x32xf32>
    %1055 = math.exp %1051 : vector<8x32xf32>
    %cst_529 = arith.constant 1.000000e+00 : f32
    %1056 = vector.broadcast %cst_529 : f32 to vector<8x32xf32>
    %1057 = arith.addf %1055, %1056 : vector<8x32xf32>
    %1058 = arith.mulf %1054, %1057 : vector<8x32xf32>
    %1059 = arith.select %1049, %1047, %1058 : vector<8x32xi1>, vector<8x32xf32>
    %c1_530 = arith.constant 1 : index
    %c0_531 = arith.constant 0 : index
    %c0_532 = arith.constant 0 : index
    %1060 = vector.load %arg1[%c1_530, %c0_531, %c0_532] : memref<6x32x32xf32, #tpu.memory_space<vmem>>, vector<1x32x32xf32>
    %1061 = vector.shape_cast %1060 : vector<1x32x32xf32> to vector<32x32xf32>
    %cst_533 = arith.constant dense<0.000000e+00> : vector<8x32xf32>
    %1062 = tpu.matmul %1059, %1061, %cst_533 {dimension_numbers = #tpu.dot_dimension_numbers<[1], [0], [0], [1], [0, 0, 1, 1], [], []>} : vector<8x32xf32>, vector<32x32xf32>, vector<8x32xf32> -> vector<8x32xf32>
    %1063 = arith.addf %1062, %10 : vector<8x32xf32>
    %cst_534 = arith.constant 0.000000e+00 : f32
    %1064 = vector.broadcast %cst_534 : f32 to vector<8x32xf32>
    %1065 = arith.cmpf ogt, %1063, %1064 : vector<8x32xf32>
    %cst_535 = arith.constant 0.000000e+00 : f32
    %1066 = vector.broadcast %cst_535 : f32 to vector<8x32xf32>
    %1067 = arith.minimumf %1063, %1066 : vector<8x32xf32>
    %cst_536 = arith.constant 5.000000e-01 : f32
    %1068 = vector.broadcast %cst_536 : f32 to vector<8x32xf32>
    %1069 = arith.mulf %1068, %1067 : vector<8x32xf32>
    %1070 = math.tanh %1069 : vector<8x32xf32>
    %1071 = math.exp %1067 : vector<8x32xf32>
    %cst_537 = arith.constant 1.000000e+00 : f32
    %1072 = vector.broadcast %cst_537 : f32 to vector<8x32xf32>
    %1073 = arith.addf %1071, %1072 : vector<8x32xf32>
    %1074 = arith.mulf %1070, %1073 : vector<8x32xf32>
    %1075 = arith.select %1065, %1063, %1074 : vector<8x32xi1>, vector<8x32xf32>
    %c2_538 = arith.constant 2 : index
    %c0_539 = arith.constant 0 : index
    %c0_540 = arith.constant 0 : index
    %1076 = vector.load %arg1[%c2_538, %c0_539, %c0_540] : memref<6x32x32xf32, #tpu.memory_space<vmem>>, vector<1x32x32xf32>
    %1077 = vector.shape_cast %1076 : vector<1x32x32xf32> to vector<32x32xf32>
    %cst_541 = arith.constant dense<0.000000e+00> : vector<8x32xf32>
    %1078 = tpu.matmul %1075, %1077, %cst_541 {dimension_numbers = #tpu.dot_dimension_numbers<[1], [0], [0], [1], [0, 0, 1, 1], [], []>} : vector<8x32xf32>, vector<32x32xf32>, vector<8x32xf32> -> vector<8x32xf32>
    %1079 = arith.addf %1078, %14 : vector<8x32xf32>
    %cst_542 = arith.constant 0.333333343 : f32
    %1080 = vector.broadcast %cst_542 : f32 to vector<8x32xf32>
    %1081 = arith.mulf %1079, %1080 : vector<8x32xf32>
    %1082 = vector.broadcast %1043 : f32 to vector<8x32xf32>
    %1083 = arith.mulf %1082, %1081 : vector<8x32xf32>
    %1084 = arith.addf %1042, %1083 : vector<8x32xf32>
    %c0_543 = arith.constant 0 : index
    %c0_544 = arith.constant 0 : index
    %c0_545 = arith.constant 0 : index
    %1085 = vector.load %arg1[%c0_543, %c0_544, %c0_545] : memref<6x32x32xf32, #tpu.memory_space<vmem>>, vector<1x32x32xf32>
    %1086 = vector.shape_cast %1085 : vector<1x32x32xf32> to vector<32x32xf32>
    %cst_546 = arith.constant dense<0.000000e+00> : vector<8x32xf32>
    %1087 = tpu.matmul %1084, %1086, %cst_546 {dimension_numbers = #tpu.dot_dimension_numbers<[1], [0], [0], [1], [0, 0, 1, 1], [], []>} : vector<8x32xf32>, vector<32x32xf32>, vector<8x32xf32> -> vector<8x32xf32>
    %1088 = arith.addf %1087, %6 : vector<8x32xf32>
    %cst_547 = arith.constant 0.000000e+00 : f32
    %1089 = vector.broadcast %cst_547 : f32 to vector<8x32xf32>
    %1090 = arith.cmpf ogt, %1088, %1089 : vector<8x32xf32>
    %cst_548 = arith.constant 0.000000e+00 : f32
    %1091 = vector.broadcast %cst_548 : f32 to vector<8x32xf32>
    %1092 = arith.minimumf %1088, %1091 : vector<8x32xf32>
    %cst_549 = arith.constant 5.000000e-01 : f32
    %1093 = vector.broadcast %cst_549 : f32 to vector<8x32xf32>
    %1094 = arith.mulf %1093, %1092 : vector<8x32xf32>
    %1095 = math.tanh %1094 : vector<8x32xf32>
    %1096 = math.exp %1092 : vector<8x32xf32>
    %cst_550 = arith.constant 1.000000e+00 : f32
    %1097 = vector.broadcast %cst_550 : f32 to vector<8x32xf32>
    %1098 = arith.addf %1096, %1097 : vector<8x32xf32>
    %1099 = arith.mulf %1095, %1098 : vector<8x32xf32>
    %1100 = arith.select %1090, %1088, %1099 : vector<8x32xi1>, vector<8x32xf32>
    %c1_551 = arith.constant 1 : index
    %c0_552 = arith.constant 0 : index
    %c0_553 = arith.constant 0 : index
    %1101 = vector.load %arg1[%c1_551, %c0_552, %c0_553] : memref<6x32x32xf32, #tpu.memory_space<vmem>>, vector<1x32x32xf32>
    %1102 = vector.shape_cast %1101 : vector<1x32x32xf32> to vector<32x32xf32>
    %cst_554 = arith.constant dense<0.000000e+00> : vector<8x32xf32>
    %1103 = tpu.matmul %1100, %1102, %cst_554 {dimension_numbers = #tpu.dot_dimension_numbers<[1], [0], [0], [1], [0, 0, 1, 1], [], []>} : vector<8x32xf32>, vector<32x32xf32>, vector<8x32xf32> -> vector<8x32xf32>
    %1104 = arith.addf %1103, %10 : vector<8x32xf32>
    %cst_555 = arith.constant 0.000000e+00 : f32
    %1105 = vector.broadcast %cst_555 : f32 to vector<8x32xf32>
    %1106 = arith.cmpf ogt, %1104, %1105 : vector<8x32xf32>
    %cst_556 = arith.constant 0.000000e+00 : f32
    %1107 = vector.broadcast %cst_556 : f32 to vector<8x32xf32>
    %1108 = arith.minimumf %1104, %1107 : vector<8x32xf32>
    %cst_557 = arith.constant 5.000000e-01 : f32
    %1109 = vector.broadcast %cst_557 : f32 to vector<8x32xf32>
    %1110 = arith.mulf %1109, %1108 : vector<8x32xf32>
    %1111 = math.tanh %1110 : vector<8x32xf32>
    %1112 = math.exp %1108 : vector<8x32xf32>
    %cst_558 = arith.constant 1.000000e+00 : f32
    %1113 = vector.broadcast %cst_558 : f32 to vector<8x32xf32>
    %1114 = arith.addf %1112, %1113 : vector<8x32xf32>
    %1115 = arith.mulf %1111, %1114 : vector<8x32xf32>
    %1116 = arith.select %1106, %1104, %1115 : vector<8x32xi1>, vector<8x32xf32>
    %c2_559 = arith.constant 2 : index
    %c0_560 = arith.constant 0 : index
    %c0_561 = arith.constant 0 : index
    %1117 = vector.load %arg1[%c2_559, %c0_560, %c0_561] : memref<6x32x32xf32, #tpu.memory_space<vmem>>, vector<1x32x32xf32>
    %1118 = vector.shape_cast %1117 : vector<1x32x32xf32> to vector<32x32xf32>
    %cst_562 = arith.constant dense<0.000000e+00> : vector<8x32xf32>
    %1119 = tpu.matmul %1116, %1118, %cst_562 {dimension_numbers = #tpu.dot_dimension_numbers<[1], [0], [0], [1], [0, 0, 1, 1], [], []>} : vector<8x32xf32>, vector<32x32xf32>, vector<8x32xf32> -> vector<8x32xf32>
    %1120 = arith.addf %1119, %14 : vector<8x32xf32>
    %cst_563 = arith.constant 0.333333343 : f32
    %1121 = vector.broadcast %cst_563 : f32 to vector<8x32xf32>
    %1122 = arith.mulf %1079, %1121 : vector<8x32xf32>
    %1123 = arith.subf %1120, %1122 : vector<8x32xf32>
    %1124 = vector.broadcast %1043 : f32 to vector<8x32xf32>
    %1125 = arith.mulf %1124, %1123 : vector<8x32xf32>
    %1126 = arith.addf %1042, %1125 : vector<8x32xf32>
    %c0_564 = arith.constant 0 : index
    %c0_565 = arith.constant 0 : index
    %c0_566 = arith.constant 0 : index
    %1127 = vector.load %arg1[%c0_564, %c0_565, %c0_566] : memref<6x32x32xf32, #tpu.memory_space<vmem>>, vector<1x32x32xf32>
    %1128 = vector.shape_cast %1127 : vector<1x32x32xf32> to vector<32x32xf32>
    %cst_567 = arith.constant dense<0.000000e+00> : vector<8x32xf32>
    %1129 = tpu.matmul %1126, %1128, %cst_567 {dimension_numbers = #tpu.dot_dimension_numbers<[1], [0], [0], [1], [0, 0, 1, 1], [], []>} : vector<8x32xf32>, vector<32x32xf32>, vector<8x32xf32> -> vector<8x32xf32>
    %1130 = arith.addf %1129, %6 : vector<8x32xf32>
    %cst_568 = arith.constant 0.000000e+00 : f32
    %1131 = vector.broadcast %cst_568 : f32 to vector<8x32xf32>
    %1132 = arith.cmpf ogt, %1130, %1131 : vector<8x32xf32>
    %cst_569 = arith.constant 0.000000e+00 : f32
    %1133 = vector.broadcast %cst_569 : f32 to vector<8x32xf32>
    %1134 = arith.minimumf %1130, %1133 : vector<8x32xf32>
    %cst_570 = arith.constant 5.000000e-01 : f32
    %1135 = vector.broadcast %cst_570 : f32 to vector<8x32xf32>
    %1136 = arith.mulf %1135, %1134 : vector<8x32xf32>
    %1137 = math.tanh %1136 : vector<8x32xf32>
    %1138 = math.exp %1134 : vector<8x32xf32>
    %cst_571 = arith.constant 1.000000e+00 : f32
    %1139 = vector.broadcast %cst_571 : f32 to vector<8x32xf32>
    %1140 = arith.addf %1138, %1139 : vector<8x32xf32>
    %1141 = arith.mulf %1137, %1140 : vector<8x32xf32>
    %1142 = arith.select %1132, %1130, %1141 : vector<8x32xi1>, vector<8x32xf32>
    %c1_572 = arith.constant 1 : index
    %c0_573 = arith.constant 0 : index
    %c0_574 = arith.constant 0 : index
    %1143 = vector.load %arg1[%c1_572, %c0_573, %c0_574] : memref<6x32x32xf32, #tpu.memory_space<vmem>>, vector<1x32x32xf32>
    %1144 = vector.shape_cast %1143 : vector<1x32x32xf32> to vector<32x32xf32>
    %cst_575 = arith.constant dense<0.000000e+00> : vector<8x32xf32>
    %1145 = tpu.matmul %1142, %1144, %cst_575 {dimension_numbers = #tpu.dot_dimension_numbers<[1], [0], [0], [1], [0, 0, 1, 1], [], []>} : vector<8x32xf32>, vector<32x32xf32>, vector<8x32xf32> -> vector<8x32xf32>
    %1146 = arith.addf %1145, %10 : vector<8x32xf32>
    %cst_576 = arith.constant 0.000000e+00 : f32
    %1147 = vector.broadcast %cst_576 : f32 to vector<8x32xf32>
    %1148 = arith.cmpf ogt, %1146, %1147 : vector<8x32xf32>
    %cst_577 = arith.constant 0.000000e+00 : f32
    %1149 = vector.broadcast %cst_577 : f32 to vector<8x32xf32>
    %1150 = arith.minimumf %1146, %1149 : vector<8x32xf32>
    %cst_578 = arith.constant 5.000000e-01 : f32
    %1151 = vector.broadcast %cst_578 : f32 to vector<8x32xf32>
    %1152 = arith.mulf %1151, %1150 : vector<8x32xf32>
    %1153 = math.tanh %1152 : vector<8x32xf32>
    %1154 = math.exp %1150 : vector<8x32xf32>
    %cst_579 = arith.constant 1.000000e+00 : f32
    %1155 = vector.broadcast %cst_579 : f32 to vector<8x32xf32>
    %1156 = arith.addf %1154, %1155 : vector<8x32xf32>
    %1157 = arith.mulf %1153, %1156 : vector<8x32xf32>
    %1158 = arith.select %1148, %1146, %1157 : vector<8x32xi1>, vector<8x32xf32>
    %c2_580 = arith.constant 2 : index
    %c0_581 = arith.constant 0 : index
    %c0_582 = arith.constant 0 : index
    %1159 = vector.load %arg1[%c2_580, %c0_581, %c0_582] : memref<6x32x32xf32, #tpu.memory_space<vmem>>, vector<1x32x32xf32>
    %1160 = vector.shape_cast %1159 : vector<1x32x32xf32> to vector<32x32xf32>
    %cst_583 = arith.constant dense<0.000000e+00> : vector<8x32xf32>
    %1161 = tpu.matmul %1158, %1160, %cst_583 {dimension_numbers = #tpu.dot_dimension_numbers<[1], [0], [0], [1], [0, 0, 1, 1], [], []>} : vector<8x32xf32>, vector<32x32xf32>, vector<8x32xf32> -> vector<8x32xf32>
    %1162 = arith.addf %1161, %14 : vector<8x32xf32>
    %1163 = arith.subf %1079, %1120 : vector<8x32xf32>
    %1164 = arith.addf %1163, %1162 : vector<8x32xf32>
    %1165 = vector.broadcast %1043 : f32 to vector<8x32xf32>
    %1166 = arith.mulf %1165, %1164 : vector<8x32xf32>
    %1167 = arith.addf %1042, %1166 : vector<8x32xf32>
    %c0_584 = arith.constant 0 : index
    %c0_585 = arith.constant 0 : index
    %c0_586 = arith.constant 0 : index
    %1168 = vector.load %arg1[%c0_584, %c0_585, %c0_586] : memref<6x32x32xf32, #tpu.memory_space<vmem>>, vector<1x32x32xf32>
    %1169 = vector.shape_cast %1168 : vector<1x32x32xf32> to vector<32x32xf32>
    %cst_587 = arith.constant dense<0.000000e+00> : vector<8x32xf32>
    %1170 = tpu.matmul %1167, %1169, %cst_587 {dimension_numbers = #tpu.dot_dimension_numbers<[1], [0], [0], [1], [0, 0, 1, 1], [], []>} : vector<8x32xf32>, vector<32x32xf32>, vector<8x32xf32> -> vector<8x32xf32>
    %1171 = arith.addf %1170, %6 : vector<8x32xf32>
    %cst_588 = arith.constant 0.000000e+00 : f32
    %1172 = vector.broadcast %cst_588 : f32 to vector<8x32xf32>
    %1173 = arith.cmpf ogt, %1171, %1172 : vector<8x32xf32>
    %cst_589 = arith.constant 0.000000e+00 : f32
    %1174 = vector.broadcast %cst_589 : f32 to vector<8x32xf32>
    %1175 = arith.minimumf %1171, %1174 : vector<8x32xf32>
    %cst_590 = arith.constant 5.000000e-01 : f32
    %1176 = vector.broadcast %cst_590 : f32 to vector<8x32xf32>
    %1177 = arith.mulf %1176, %1175 : vector<8x32xf32>
    %1178 = math.tanh %1177 : vector<8x32xf32>
    %1179 = math.exp %1175 : vector<8x32xf32>
    %cst_591 = arith.constant 1.000000e+00 : f32
    %1180 = vector.broadcast %cst_591 : f32 to vector<8x32xf32>
    %1181 = arith.addf %1179, %1180 : vector<8x32xf32>
    %1182 = arith.mulf %1178, %1181 : vector<8x32xf32>
    %1183 = arith.select %1173, %1171, %1182 : vector<8x32xi1>, vector<8x32xf32>
    %c1_592 = arith.constant 1 : index
    %c0_593 = arith.constant 0 : index
    %c0_594 = arith.constant 0 : index
    %1184 = vector.load %arg1[%c1_592, %c0_593, %c0_594] : memref<6x32x32xf32, #tpu.memory_space<vmem>>, vector<1x32x32xf32>
    %1185 = vector.shape_cast %1184 : vector<1x32x32xf32> to vector<32x32xf32>
    %cst_595 = arith.constant dense<0.000000e+00> : vector<8x32xf32>
    %1186 = tpu.matmul %1183, %1185, %cst_595 {dimension_numbers = #tpu.dot_dimension_numbers<[1], [0], [0], [1], [0, 0, 1, 1], [], []>} : vector<8x32xf32>, vector<32x32xf32>, vector<8x32xf32> -> vector<8x32xf32>
    %1187 = arith.addf %1186, %10 : vector<8x32xf32>
    %cst_596 = arith.constant 0.000000e+00 : f32
    %1188 = vector.broadcast %cst_596 : f32 to vector<8x32xf32>
    %1189 = arith.cmpf ogt, %1187, %1188 : vector<8x32xf32>
    %cst_597 = arith.constant 0.000000e+00 : f32
    %1190 = vector.broadcast %cst_597 : f32 to vector<8x32xf32>
    %1191 = arith.minimumf %1187, %1190 : vector<8x32xf32>
    %cst_598 = arith.constant 5.000000e-01 : f32
    %1192 = vector.broadcast %cst_598 : f32 to vector<8x32xf32>
    %1193 = arith.mulf %1192, %1191 : vector<8x32xf32>
    %1194 = math.tanh %1193 : vector<8x32xf32>
    %1195 = math.exp %1191 : vector<8x32xf32>
    %cst_599 = arith.constant 1.000000e+00 : f32
    %1196 = vector.broadcast %cst_599 : f32 to vector<8x32xf32>
    %1197 = arith.addf %1195, %1196 : vector<8x32xf32>
    %1198 = arith.mulf %1194, %1197 : vector<8x32xf32>
    %1199 = arith.select %1189, %1187, %1198 : vector<8x32xi1>, vector<8x32xf32>
    %c2_600 = arith.constant 2 : index
    %c0_601 = arith.constant 0 : index
    %c0_602 = arith.constant 0 : index
    %1200 = vector.load %arg1[%c2_600, %c0_601, %c0_602] : memref<6x32x32xf32, #tpu.memory_space<vmem>>, vector<1x32x32xf32>
    %1201 = vector.shape_cast %1200 : vector<1x32x32xf32> to vector<32x32xf32>
    %cst_603 = arith.constant dense<0.000000e+00> : vector<8x32xf32>
    %1202 = tpu.matmul %1199, %1201, %cst_603 {dimension_numbers = #tpu.dot_dimension_numbers<[1], [0], [0], [1], [0, 0, 1, 1], [], []>} : vector<8x32xf32>, vector<32x32xf32>, vector<8x32xf32> -> vector<8x32xf32>
    %1203 = arith.addf %1202, %14 : vector<8x32xf32>
    %cst_604 = arith.constant 1.250000e-01 : f32
    %1204 = arith.mulf %1043, %cst_604 : f32
    %1205 = arith.addf %1120, %1162 : vector<8x32xf32>
    %cst_605 = arith.constant 3.000000e+00 : f32
    %1206 = vector.broadcast %cst_605 : f32 to vector<8x32xf32>
    %1207 = arith.mulf %1206, %1205 : vector<8x32xf32>
    %1208 = arith.addf %1079, %1207 : vector<8x32xf32>
    %1209 = arith.addf %1208, %1203 : vector<8x32xf32>
    %1210 = vector.broadcast %1204 : f32 to vector<8x32xf32>
    %1211 = arith.mulf %1210, %1209 : vector<8x32xf32>
    %1212 = arith.addf %1042, %1211 : vector<8x32xf32>
    %c3_606 = arith.constant 3 : index
    %c0_607 = arith.constant 0 : index
    %c0_608 = arith.constant 0 : index
    %1213 = vector.load %arg1[%c3_606, %c0_607, %c0_608] : memref<6x32x32xf32, #tpu.memory_space<vmem>>, vector<1x32x32xf32>
    %1214 = vector.shape_cast %1213 : vector<1x32x32xf32> to vector<32x32xf32>
    %cst_609 = arith.constant dense<0.000000e+00> : vector<8x32xf32>
    %1215 = tpu.matmul %0, %1214, %cst_609 {dimension_numbers = #tpu.dot_dimension_numbers<[1], [0], [0], [1], [0, 0, 1, 1], [], []>} : vector<8x32xf32>, vector<32x32xf32>, vector<8x32xf32> -> vector<8x32xf32>
    %c4_610 = arith.constant 4 : index
    %c0_611 = arith.constant 0 : index
    %c0_612 = arith.constant 0 : index
    %1216 = vector.load %arg1[%c4_610, %c0_611, %c0_612] : memref<6x32x32xf32, #tpu.memory_space<vmem>>, vector<1x32x32xf32>
    %1217 = vector.shape_cast %1216 : vector<1x32x32xf32> to vector<32x32xf32>
    %cst_613 = arith.constant dense<0.000000e+00> : vector<8x32xf32>
    %1218 = tpu.matmul %1212, %1217, %cst_613 {dimension_numbers = #tpu.dot_dimension_numbers<[1], [0], [0], [1], [0, 0, 1, 1], [], []>} : vector<8x32xf32>, vector<32x32xf32>, vector<8x32xf32> -> vector<8x32xf32>
    %1219 = arith.addf %1215, %1218 : vector<8x32xf32>
    %1220 = arith.addf %1219, %18 : vector<8x32xf32>
    %cst_614 = arith.constant 5.000000e-01 : f32
    %1221 = vector.broadcast %cst_614 : f32 to vector<8x32xf32>
    %1222 = arith.mulf %1221, %1220 : vector<8x32xf32>
    %1223 = math.tanh %1222 : vector<8x32xf32>
    %cst_615 = arith.constant 1.000000e+00 : f32
    %1224 = vector.broadcast %cst_615 : f32 to vector<8x32xf32>
    %1225 = arith.addf %1223, %1224 : vector<8x32xf32>
    %cst_616 = arith.constant 5.000000e-01 : f32
    %1226 = vector.broadcast %cst_616 : f32 to vector<8x32xf32>
    %1227 = arith.mulf %1226, %1225 : vector<8x32xf32>
    %1228 = arith.mulf %1227, %2 : vector<8x32xf32>
    %1229 = arith.mulf %1227, %1227 : vector<8x32xf32>
    %1230 = arith.addf %1228, %1229 : vector<8x32xf32>
    %1231 = math.tanh %1230 : vector<8x32xf32>
    %1232 = arith.mulf %1227, %1231 : vector<8x32xf32>
    %c5_617 = arith.constant 5 : index
    %c0_618 = arith.constant 0 : index
    %c0_619 = arith.constant 0 : index
    %1233 = vector.load %arg1[%c5_617, %c0_618, %c0_619] : memref<6x32x32xf32, #tpu.memory_space<vmem>>, vector<1x32x32xf32>
    %1234 = vector.shape_cast %1233 : vector<1x32x32xf32> to vector<32x32xf32>
    %cst_620 = arith.constant dense<0.000000e+00> : vector<8x32xf32>
    %1235 = tpu.matmul %1232, %1234, %cst_620 {dimension_numbers = #tpu.dot_dimension_numbers<[1], [0], [0], [1], [0, 0, 1, 1], [], []>} : vector<8x32xf32>, vector<32x32xf32>, vector<8x32xf32> -> vector<8x32xf32>
    %1236 = arith.addf %1235, %22 : vector<8x32xf32>
    %1237 = tpu.iota {dimensions = array<i32: 1>} : vector<8x32xi32>
    %c25_i32 = arith.constant 25 : i32
    %1238 = vector.broadcast %c25_i32 : i32 to vector<8x32xi32>
    %1239 = arith.cmpi slt, %1237, %1238 : vector<8x32xi32>
    %cst_621 = arith.constant 0.000000e+00 : f32
    %1240 = vector.broadcast %cst_621 : f32 to vector<8x32xf32>
    %1241 = arith.select %1239, %1232, %1240 : vector<8x32xi1>, vector<8x32xf32>
    %cst_622 = arith.constant 0.000000e+00 : f32
    %1242 = vector.broadcast %cst_622 : f32 to vector<8x32xf32>
    %1243 = arith.select %1239, %1230, %1242 : vector<8x32xi1>, vector<8x32xf32>
    %cst_623 = arith.constant 0.000000e+00 : f32
    %1244 = vector.broadcast %cst_623 : f32 to vector<8x32xf32>
    %1245 = tpu.concatenate %1236, %1241, %1243, %1244 in 1 : vector<8x32xf32>, vector<8x32xf32>, vector<8x32xf32>, vector<8x32xf32> -> vector<8x128xf32>
    %c0_624 = arith.constant 0 : index
    %c0_625 = arith.constant 0 : index
    %1246 = vector.load %arg4[%c0_624, %c0_625] : memref<8x128xf32, #tpu.memory_space<vmem>>, vector<8x128xf32>
    tpu.vector_store %arg4[%c0_624, %c0_625], %1245 {strides = array<i32>} : memref<8x128xf32, #tpu.memory_space<vmem>>, vector<8x128xf32>,
    return
  }
}

</mosaic_0001>

<bundles_post_ra>
// kernel: recognition_odelstm_forward.1
= control target key start
LH: loop header
LB: loop body
LE: loop exit
PB: predicated region body
PF: predicated region fallthrough
CT: control target
= control target key end

     0   :  { %9 = vsyncpa [#allocation3], 0  ;;  %s3335_s18 = smov [#allocation2]   ;;  %s4393_s0 = inlined_call_operand.vmem [shape: f32[8,128], index: 0, kind: input, shape index: {}]   ;;  %s4394_s1 = inlined_call_operand.vmem [shape: f32[6,32,32], index: 1, kind: input, shape index: {}]   ;;  %s4395_s2 = inlined_call_operand.vmem [shape: f32[5,1,32], index: 2, kind: input, shape index: {}]   ;;  %s4396_s3 = inlined_call_operand.vmem [shape: f32[7], index: 3, kind: input, shape index: {}]   ;;  %s4397_s4 = inlined_call_operand.vmem [shape: f32[8,128], index: 4, kind: output, shape index: {}]  }
   0x1   :  { %s21_s17 = sshll.u32 %s4396_s3, 4  ;;  %s22_s17 = int_to_ptr.vmem [resolvable:$true] %s21_s17 }
   0x2   :  { %24 = dma.vmem_to_smem %s22_s17, 16, %s3335_s18, [#allocation3]  }
   0x3   :  { %3333 = dma.done.wait [#allocation3], 16  }
   0x4   :  { %3334 = vsyncadd [#allocation3], 4294967280 }
   0x5   :  { %29 = sfence }
   0x6   :  { %v3370_v0 = vld [vmem:[%s4393_s0] sm:$0xff]  ;;  %v3375_v1 = vld [vmem:[%s4394_s1 + $0x18] sm:$0xff]  ;;  %v3380_v2 = vld [vmem:[%s4394_s1 + $0x10] sm:$0xff]  ;;  %s3336_s3 = smov 96   ;;  %vm63_vm0 = vcmask 261120   ;;  %s3493_s23 = sld [smem:[#allocation2]] }
   0x7   :  { %61 = vrot.lane.b32.xlu0 %v3370_v0, %s3336_s3  ;;  %78 = vmatpush.msra.mxu0 %v3375_v1  ;;  %v3388_v3 = vld [vmem:[%s4394_s1 + $0x8] sm:$0xff]  ;;  %v3395_v4 = vld [vmem:[%s4394_s1] sm:$0xff]  ;;  %v3406_v6 = vld [vmem:[%s4394_s1 + $0x38] sm:$0xff]  ;;  %s3337_s26 = smov 32   ;;  %s3604_s28 = sld [smem:[#allocation2 + $0x1]] }
   0x8   :  { %185 = vmatpush.msra.mxu3 %v3375_v1  ;;  %v3411_v7 = vld [vmem:[%s4394_s1 + $0x30] sm:$0xff]  ;;  %115 = vmatpush.msra.mxu1 %v3406_v6  ;;  %v3418_v8 = vld [vmem:[%s4394_s1 + $0x28] sm:$0xff]  ;;  %v3426_v9 = vld [vmem:[%s4394_s1 + $0x20] sm:$0xff]  ;;  %s3710_s30 = sld [smem:[#allocation2 + $0x2]] }
   0x9   :  { %79 = vmatpush.msra.mxu0 %v3380_v2  ;;  %v3438_v10 = vld [vmem:[%s4395_s2] ss:$0 sm:$0xff]  ;;  %v3445_v21 = vld [vmem:[%s4394_s1 + $0x58] sm:$0xff]  ;;  %v3450_v22 = vld [vmem:[%s4394_s1 + $0x50] sm:$0xff]  ;;  %s3997_s13 = sld [smem:[#allocation2 + $0x4]] }
   0xa   :  { %186 = vmatpush.msra.mxu3 %v3380_v2  ;;  %116 = vmatpush.msra.mxu1 %v3411_v7  ;;  %v3457_v23 = vld [vmem:[%s4394_s1 + $0x48] sm:$0xff]  ;;  %v3465_v24 = vld [vmem:[%s4394_s1 + $0x40] sm:$0xff]  ;;  %s4173_s18 = sld [smem:[#allocation2 + $0x5]] }
   0xb   :  { %80 = vmatpush.msra.mxu0 %v3388_v3  ;;  %152 = vmatpush.msra.mxu2 %v3445_v21  ;;  %v3485_v25 = vld [vmem:[%s4395_s2 + $0x1] ss:$0 sm:$0xff]  ;;  %v3498_v36 = vld [vmem:[%s4395_s2 + $0x2] ss:$0 sm:$0xff]  ;;  %s4284_s22 = sld [smem:[#allocation2 + $0x6]] }
   0xc   :  { %187 = vmatpush.msra.mxu3 %v3388_v3  ;;  %117 = vmatpush.msra.mxu1 %v3418_v8  ;;  %v3504_v39 = vstv %s3493_s23  ;;  %s450_s27 = smul.f32 0.125, %s3493_s23 }
   0xd   :  { %81 = vmatpush.msra.mxu0 %v3395_v4  ;;  %153 = vmatpush.msra.mxu2 %v3450_v22  ;;  %s842_s29 = smul.f32 0.125, %s3604_s28 }
   0xe   :  { %188 = vmatpush.msra.mxu3 %v3395_v4  ;;  %118 = vmatpush.msra.mxu1 %v3426_v9  ;;  %s1234_s11 = smul.f32 0.125, %s3710_s30 }
   0xf   :  { %217 = vmatpush.msrb.mxu0 %v3406_v6  ;;  %154 = vmatpush.msra.mxu2 %v3457_v23  ;;  %s2018_s6 = smul.f32 0.125, %s3997_s13 }
  0x10   :  { %313 = vmatpush.msrb.mxu3 %v3406_v6  ;;  %249 = vmatpush.msrb.mxu1 %v3445_v21  ;;  %s2410_s21 = smul.f32 0.125, %s4173_s18 }
  0x11   :  { %218 = vmatpush.msrb.mxu0 %v3411_v7  ;;  %155 = vmatpush.msra.mxu2 %v3465_v24  ;;  %s2802_s23 = smul.f32 0.125, %s4284_s22 }
  0x12   :  { %314 = vmatpush.msrb.mxu3 %v3411_v7  ;;  %250 = vmatpush.msrb.mxu1 %v3450_v22 }
  0x13   :  { %219 = vmatpush.msrb.mxu0 %v3418_v8  ;;  %281 = vmatpush.msrb.mxu2 %v3375_v1 }
  0x14   :  { %315 = vmatpush.msrb.mxu3 %v3418_v8  ;;  %251 = vmatpush.msrb.mxu1 %v3457_v23 }
  0x15   :  { %220 = vmatpush.msrb.mxu0 %v3426_v9  ;;  %282 = vmatpush.msrb.mxu2 %v3380_v2 }
  0x16   :  { %316 = vmatpush.msrb.mxu3 %v3426_v9  ;;  %252 = vmatpush.msrb.mxu1 %v3465_v24 }
  0x17   :  { %283 = vmatpush.msrb.mxu2 %v3388_v3 }
  0x19   :  { %284 = vmatpush.msrb.mxu2 %v3395_v4 }
  0x79   :  { %v62_v5 = vpop.permute.xlu0 %61 }
  0x7a   :  { %2940 = vmatmul.msk.f32.vlgmr.msra.gmra.mxu0 %vm63_vm0, %v62_v5 }
  0x7b   :  { %345 = vmatpush.msra.mxu0 %v3445_v21 }
  0x7d   :  { %346 = vmatpush.msra.mxu0 %v3450_v22 }
  0x7f   :  { %347 = vmatpush.msra.mxu0 %v3457_v23 }
  0x81   :  { %348 = vmatpush.msra.mxu0 %v3465_v24 }
  0xf7   :  { %v83_v11 = vpop.f32.mrf.mxu0 }
  0xf8   :  { %v84_v12 = vadd.f32 %v3438_v10, %v83_v11 }
  0xfa   :  { %v87_v13 = vmin.f32 %v84_v12, 0.0  ;;  %vm86_vm1 = vcmp.gt.f32.partialorder %v84_v12, 0.0 }
  0xfc   :  { %v90_v14 = vmul.f32 1.442695, %v87_v13  ;;  %v88_v15 = vmul.f32 0.5, %v87_v13 }
  0xfe   :  { %3062 = vpow2.f32 %v90_v14 }
  0xff   :  { %3064 = vtanh.f32 %v88_v15 }
 0x104   :  { %v3063_v16 = vpop.eup %3062 }
 0x105   :  { %v92_v17 = vadd.f32 1.0, %v3063_v16  ;;  %v3065_v18 = vpop.eup %3064 }
 0x107   :  { %v93_v19 = vmul.f32 %v3065_v18, %v92_v17 }
 0x109   :  { %v94_v20 = vsel %vm86_vm1, %v84_v12, %v93_v19 }
 0x10a   :  { %2945 = vmatmul.msk.f32.vlgmr.msra.gmra.mxu1 %vm63_vm0, %v94_v20 }
 0x10b   :  { %378 = vmatpush.msra.mxu1 %v3375_v1 }
 0x10d   :  { %379 = vmatpush.msra.mxu1 %v3380_v2 }
 0x10f   :  { %380 = vmatpush.msra.mxu1 %v3388_v3 }
 0x111   :  { %381 = vmatpush.msra.mxu1 %v3395_v4 }
 0x187   :  { %v120_v26 = vpop.f32.mrf.mxu1 }
 0x188   :  { %v121_v27 = vadd.f32 %v3485_v25, %v120_v26 }
 0x18a   :  { %v124_v28 = vmin.f32 %v121_v27, 0.0  ;;  %vm123_vm2 = vcmp.gt.f32.partialorder %v121_v27, 0.0 }
 0x18c   :  { %v127_v29 = vmul.f32 1.442695, %v124_v28  ;;  %v125_v30 = vmul.f32 0.5, %v124_v28 }
 0x18e   :  { %3066 = vpow2.f32 %v127_v29 }
 0x18f   :  { %3068 = vtanh.f32 %v125_v30 }
 0x194   :  { %v3067_v31 = vpop.eup %3066 }
 0x195   :  { %v129_v32 = vadd.f32 1.0, %v3067_v31  ;;  %v3069_v33 = vpop.eup %3068 }
 0x197   :  { %v130_v34 = vmul.f32 %v3069_v33, %v129_v32 }
 0x199   :  { %v131_v35 = vsel %vm123_vm2, %v121_v27, %v130_v34 }
 0x19a   :  { %2950 = vmatmul.msk.f32.vlgmr.msra.gmra.mxu2 %vm63_vm0, %v131_v35 }
 0x19b   :  { %410 = vmatpush.msra.mxu2 %v3406_v6 }
 0x19d   :  { %411 = vmatpush.msra.mxu2 %v3411_v7 }
 0x19f   :  { %412 = vmatpush.msra.mxu2 %v3418_v8 }
 0x1a1   :  { %413 = vmatpush.msra.mxu2 %v3426_v9 }
 0x21d   :  { %v157_v37 = vpop.f32.mrf.mxu2 }
 0x21e   :  { %v3501_v38 = vadd.f32 %v3498_v36, %v157_v37 }
 0x220   :  { %v160_v40 = vmul.f32 0.33333334, %v3501_v38 }
 0x222   :  { %v162_v41 = vmul.f32 %v3504_v39, %v160_v40 }
 0x224   :  { %164 = vrot.lane.b32.xlu0 %v162_v41, %s3337_s26 }
 0x296   :  { %v165_v42 = vpop.permute.xlu0 %164 }
 0x297   :  { %v167_v43 = vadd.f32 %v165_v42, %v3370_v0 }
 0x299   :  { %169 = vrot.lane.b32.xlu1 %v167_v43, %s3336_s3 }
 0x30b   :  { %v170_v44 = vpop.permute.xlu1 %169 }
 0x30c   :  { %2951 = vmatmul.msk.f32.vlgmr.msra.gmra.mxu3 %vm63_vm0, %v170_v44 }
 0x30d   :  { %442 = vmatpush.msra.mxu3 %v3445_v21 }
 0x30f   :  { %443 = vmatpush.msra.mxu3 %v3450_v22 }
 0x311   :  { %444 = vmatpush.msra.mxu3 %v3457_v23 }
 0x313   :  { %445 = vmatpush.msra.mxu3 %v3465_v24 }
 0x38f   :  { %v190_v45 = vpop.f32.mrf.mxu3 }
 0x390   :  { %v191_v46 = vadd.f32 %v3438_v10, %v190_v45 }
 0x392   :  { %v194_v47 = vmin.f32 %v191_v46, 0.0  ;;  %vm193_vm3 = vcmp.gt.f32.partialorder %v191_v46, 0.0 }
 0x394   :  { %v197_v48 = vmul.f32 1.442695, %v194_v47  ;;  %v195_v49 = vmul.f32 0.5, %v194_v47 }
 0x396   :  { %3070 = vpow2.f32 %v197_v48 }
 0x397   :  { %3072 = vtanh.f32 %v195_v49 }
 0x39c   :  { %v3071_v50 = vpop.eup %3070 }
 0x39d   :  { %v199_v51 = vadd.f32 1.0, %v3071_v50  ;;  %v3073_v52 = vpop.eup %3072 }
 0x39f   :  { %v200_v53 = vmul.f32 %v3073_v52, %v199_v51 }
 0x3a1   :  { %v201_v54 = vsel %vm193_vm3, %v191_v46, %v200_v53 }
 0x3a2   :  { %2952 = vmatmul.msk.f32.vlgmr.msrb.gmra.mxu0 %vm63_vm0, %v201_v54 }
 0x3a3   :  { %480 = vmatpush.msrb.mxu0 %v3375_v1 }
 0x3a5   :  { %481 = vmatpush.msrb.mxu0 %v3380_v2 }
 0x3a7   :  { %482 = vmatpush.msrb.mxu0 %v3388_v3 }
 0x3a9   :  { %483 = vmatpush.msrb.mxu0 %v3395_v4 }
 0x41f   :  { %v222_v55 = vpop.f32.mrf.mxu0 }
 0x420   :  { %v223_v56 = vadd.f32 %v3485_v25, %v222_v55 }
 0x422   :  { %v226_v57 = vmin.f32 %v223_v56, 0.0  ;;  %vm225_vm4 = vcmp.gt.f32.partialorder %v223_v56, 0.0 }
 0x424   :  { %v229_v58 = vmul.f32 1.442695, %v226_v57  ;;  %v227_v59 = vmul.f32 0.5, %v226_v57 }
 0x426   :  { %3074 = vpow2.f32 %v229_v58 }
 0x427   :  { %3076 = vtanh.f32 %v227_v59 }
 0x42c   :  { %v3075_v60 = vpop.eup %3074 }
 0x42d   :  { %v231_v61 = vadd.f32 1.0, %v3075_v60  ;;  %v3077_v62 = vpop.eup %3076 }
 0x42f   :  { %v232_v63 = vmul.f32 %v3077_v62, %v231_v61 }
 0x431   :  { %v233_v5 = vsel %vm225_vm4, %v223_v56, %v232_v63 }
 0x432   :  { %2953 = vmatmul.msk.f32.vlgmr.msrb.gmra.mxu1 %vm63_vm0, %v233_v5 }
 0x433   :  { %512 = vmatpush.msrb.mxu1 %v3406_v6 }
 0x435   :  { %513 = vmatpush.msrb.mxu1 %v3411_v7 }
 0x437   :  { %514 = vmatpush.msrb.mxu1 %v3418_v8 }
 0x439   :  { %515 = vmatpush.msrb.mxu1 %v3426_v9 }
 0x4af   :  { %v254_v11 = vpop.f32.mrf.mxu1 }
 0x4b0   :  { %v3529_v12 = vadd.f32 %v3498_v36, %v254_v11 }
 0x4b2   :  { %v257_v13 = vsub.f32 %v3529_v12, %v160_v40  ;;  %v353_v48 = vsub.f32 %v3501_v38, %v3529_v12 }
 0x4b4   :  { %v258_v14 = vmul.f32 %v257_v13, %v3504_v39 }
 0x4b6   :  { %260 = vrot.lane.b32.xlu1 %v258_v14, %s3337_s26 }
 0x528   :  { %v261_v15 = vpop.permute.xlu1 %260 }
 0x529   :  { %v263_v16 = vadd.f32 %v261_v15, %v3370_v0 }
 0x52b   :  { %265 = vrot.lane.b32.xlu2 %v263_v16, %s3336_s3 }
 0x585   :  { %v266_v17 = vpop.permute.xlu2 %265 }
 0x586   :  { %2954 = vmatmul.msk.f32.vlgmr.msrb.gmra.mxu2 %vm63_vm0, %v266_v17 }
 0x587   :  { %544 = vmatpush.msrb.mxu2 %v3445_v21 }
 0x589   :  { %545 = vmatpush.msrb.mxu2 %v3450_v22 }
 0x58b   :  { %546 = vmatpush.msrb.mxu2 %v3457_v23 }
 0x58d   :  { %547 = vmatpush.msrb.mxu2 %v3465_v24 }
 0x609   :  { %v286_v18 = vpop.f32.mrf.mxu2 }
 0x60a   :  { %v287_v19 = vadd.f32 %v3438_v10, %v286_v18 }
 0x60c   :  { %v290_v20 = vmin.f32 %v287_v19, 0.0  ;;  %vm289_vm5 = vcmp.gt.f32.partialorder %v287_v19, 0.0 }
 0x60e   :  { %v293_v26 = vmul.f32 1.442695, %v290_v20  ;;  %v291_v27 = vmul.f32 0.5, %v290_v20 }
 0x610   :  { %3078 = vpow2.f32 %v293_v26 }
 0x611   :  { %3080 = vtanh.f32 %v291_v27 }
 0x616   :  { %v3079_v28 = vpop.eup %3078 }
 0x617   :  { %v295_v29 = vadd.f32 1.0, %v3079_v28  ;;  %v3081_v30 = vpop.eup %3080 }
 0x619   :  { %v296_v31 = vmul.f32 %v3081_v30, %v295_v29  ;;  %v455_v30 = vstv %s450_s27  ;;  %s3338_s27 = smov 64  }
 0x61b   :  { %v297_v32 = vsel %vm289_vm5, %v287_v19, %v296_v31 }
 0x61c   :  { %2955 = vmatmul.msk.f32.vlgmr.msrb.gmra.mxu3 %vm63_vm0, %v297_v32 }
 0x61d   :  { %577 = vmatpush.msrb.mxu3 %v3375_v1 }
 0x61f   :  { %578 = vmatpush.msrb.mxu3 %v3380_v2 }
 0x621   :  { %579 = vmatpush.msrb.mxu3 %v3388_v3 }
 0x623   :  { %580 = vmatpush.msrb.mxu3 %v3395_v4 }
 0x69f   :  { %v318_v33 = vpop.f32.mrf.mxu3 }
 0x6a0   :  { %v319_v34 = vadd.f32 %v3485_v25, %v318_v33 }
 0x6a2   :  { %v322_v35 = vmin.f32 %v319_v34, 0.0  ;;  %vm321_vm6 = vcmp.gt.f32.partialorder %v319_v34, 0.0 }
 0x6a4   :  { %v325_v37 = vmul.f32 1.442695, %v322_v35  ;;  %v323_v40 = vmul.f32 0.5, %v322_v35 }
 0x6a6   :  { %3082 = vpow2.f32 %v325_v37 }
 0x6a7   :  { %3084 = vtanh.f32 %v323_v40 }
 0x6ac   :  { %v3083_v41 = vpop.eup %3082 }
 0x6ad   :  { %v327_v42 = vadd.f32 1.0, %v3083_v41  ;;  %v3085_v43 = vpop.eup %3084 }
 0x6af   :  { %v328_v44 = vmul.f32 %v3085_v43, %v327_v42 }
 0x6b1   :  { %v329_v45 = vsel %vm321_vm6, %v319_v34, %v328_v44 }
 0x6b2   :  { %2956 = vmatmul.msk.f32.vlgmr.msra.gmra.mxu0 %vm63_vm0, %v329_v45 }
 0x6b3   :  { %609 = vmatpush.msra.mxu0 %v3406_v6 }
 0x6b5   :  { %610 = vmatpush.msra.mxu0 %v3411_v7 }
 0x6b7   :  { %611 = vmatpush.msra.mxu0 %v3418_v8 }
 0x6b9   :  { %612 = vmatpush.msra.mxu0 %v3426_v9 }
 0x72f   :  { %v350_v46 = vpop.f32.mrf.mxu0 }
 0x730   :  { %v351_v47 = vadd.f32 %v3498_v36, %v350_v46 }
 0x732   :  { %v354_v49 = vadd.f32 %v353_v48, %v351_v47  ;;  %v451_v20 = vadd.f32 %v351_v47, %v3529_v12 }
 0x734   :  { %v355_v50 = vmul.f32 %v354_v49, %v3504_v39  ;;  %v452_v26 = vmul.f32 3.0, %v451_v20 }
 0x736   :  { %357 = vrot.lane.b32.xlu2 %v355_v50, %s3337_s26  ;;  %v453_v29 = vadd.f32 %v452_v26, %v3501_v38 }
 0x790   :  { %v358_v51 = vpop.permute.xlu2 %357 }
 0x791   :  { %v360_v52 = vadd.f32 %v358_v51, %v3370_v0 }
 0x793   :  { %362 = vrot.lane.b32.xlu0 %v360_v52, %s3336_s3 }
 0x805   :  { %v363_v53 = vpop.permute.xlu0 %362 }
 0x806   :  { %2957 = vmatmul.msk.f32.vlgmr.msra.gmra.mxu1 %vm63_vm0, %v363_v53 }
 0x807   :  { %641 = vmatpush.msra.mxu1 %v3445_v21 }
 0x809   :  { %642 = vmatpush.msra.mxu1 %v3450_v22 }
 0x80b   :  { %643 = vmatpush.msra.mxu1 %v3457_v23 }
 0x80d   :  { %644 = vmatpush.msra.mxu1 %v3465_v24 }
 0x883   :  { %v383_v54 = vpop.f32.mrf.mxu1 }
 0x884   :  { %v384_v39 = vadd.f32 %v3438_v10, %v383_v54 }
 0x886   :  { %v387_v55 = vmin.f32 %v384_v39, 0.0  ;;  %vm386_vm7 = vcmp.gt.f32.partialorder %v384_v39, 0.0 }
 0x888   :  { %v390_v56 = vmul.f32 1.442695, %v387_v55  ;;  %v388_v57 = vmul.f32 0.5, %v387_v55 }
 0x88a   :  { %3086 = vpow2.f32 %v390_v56 }
 0x88b   :  { %3088 = vtanh.f32 %v388_v57  ;;  %v3610_v57 = vstv %s3604_s28 }
 0x890   :  { %v3087_v58 = vpop.eup %3086 }
 0x891   :  { %v392_v59 = vadd.f32 1.0, %v3087_v58  ;;  %v3089_v60 = vpop.eup %3088 }
 0x893   :  { %v393_v61 = vmul.f32 %v3089_v60, %v392_v59 }
 0x895   :  { %v394_v62 = vsel %vm386_vm7, %v384_v39, %v393_v61 }
 0x896   :  { %2958 = vmatmul.msk.f32.vlgmr.msra.gmra.mxu2 %vm63_vm0, %v394_v62 }
 0x897   :  { %673 = vmatpush.msra.mxu2 %v3375_v1 }
 0x899   :  { %674 = vmatpush.msra.mxu2 %v3380_v2 }
 0x89b   :  { %675 = vmatpush.msra.mxu2 %v3388_v3 }
 0x89d   :  { %676 = vmatpush.msra.mxu2 %v3395_v4 }
 0x919   :  { %v415_v63 = vpop.f32.mrf.mxu2 }
 0x91a   :  { %v416_v5 = vadd.f32 %v3485_v25, %v415_v63 }
 0x91c   :  { %v419_v11 = vmin.f32 %v416_v5, 0.0  ;;  %vm418_vm8 = vcmp.gt.f32.partialorder %v416_v5, 0.0 }
 0x91e   :  { %v422_v13 = vmul.f32 1.442695, %v419_v11  ;;  %v420_v14 = vmul.f32 0.5, %v419_v11 }
 0x920   :  { %3090 = vpow2.f32 %v422_v13 }
 0x921   :  { %3092 = vtanh.f32 %v420_v14 }
 0x926   :  { %v3091_v15 = vpop.eup %3090 }
 0x927   :  { %v424_v16 = vadd.f32 1.0, %v3091_v15  ;;  %v3093_v17 = vpop.eup %3092 }
 0x929   :  { %v425_v18 = vmul.f32 %v3093_v17, %v424_v16 }
 0x92b   :  { %v426_v19 = vsel %vm418_vm8, %v416_v5, %v425_v18 }
 0x92c   :  { %2959 = vmatmul.msk.f32.vlgmr.msra.gmra.mxu3 %vm63_vm0, %v426_v19 }
 0x92d   :  { %705 = vmatpush.msra.mxu3 %v3406_v6 }
 0x92f   :  { %706 = vmatpush.msra.mxu3 %v3411_v7 }
 0x931   :  { %707 = vmatpush.msra.mxu3 %v3418_v8 }
 0x933   :  { %708 = vmatpush.msra.mxu3 %v3426_v9 }
 0x9af   :  { %v447_v27 = vpop.f32.mrf.mxu3 }
 0x9b0   :  { %v448_v28 = vadd.f32 %v3498_v36, %v447_v27 }
 0x9b2   :  { %v454_v31 = vadd.f32 %v453_v29, %v448_v28 }
 0x9b4   :  { %v456_v32 = vmul.f32 %v455_v30, %v454_v31 }
 0x9b6   :  { %458 = vrot.lane.b32.xlu1 %v456_v32, %s3337_s26 }
 0xa28   :  { %v459_v33 = vpop.permute.xlu1 %458 }
 0xa29   :  { %v3583_v34 = vadd.f32 %v459_v33, %v3370_v0 }
 0xa2b   :  { %464 = vrot.lane.b32.xlu2 %v3583_v34, %s3336_s3 }
 0xa85   :  { %v465_v12 = vpop.permute.xlu2 %464 }
 0xa86   :  { %2961 = vmatmul.msk.f32.vlgmr.msrb.gmra.mxu0 %vm63_vm0, %v465_v12 }
 0xa87   :  { %737 = vmatpush.msrb.mxu0 %v3445_v21 }
 0xa89   :  { %738 = vmatpush.msrb.mxu0 %v3450_v22 }
 0xa8b   :  { %739 = vmatpush.msrb.mxu0 %v3457_v23 }
 0xa8d   :  { %740 = vmatpush.msrb.mxu0 %v3465_v24 }
 0xb03   :  { %v485_v38 = vpop.f32.mrf.mxu0 }
 0xb04   :  { %v486_v35 = vadd.f32 %v3438_v10, %v485_v38 }
 0xb06   :  { %v489_v37 = vmin.f32 %v486_v35, 0.0  ;;  %vm488_vm9 = vcmp.gt.f32.partialorder %v486_v35, 0.0 }
 0xb08   :  { %v492_v0 = vmul.f32 1.442695, %v489_v37  ;;  %v490_v40 = vmul.f32 0.5, %v489_v37 }
 0xb0a   :  { %3094 = vpow2.f32 %v492_v0 }
 0xb0b   :  { %3096 = vtanh.f32 %v490_v40 }
 0xb10   :  { %v3095_v41 = vpop.eup %3094 }
 0xb11   :  { %v494_v42 = vadd.f32 1.0, %v3095_v41  ;;  %v3097_v43 = vpop.eup %3096 }
 0xb13   :  { %v495_v44 = vmul.f32 %v3097_v43, %v494_v42 }
 0xb15   :  { %v496_v45 = vsel %vm488_vm9, %v486_v35, %v495_v44 }
 0xb16   :  { %2962 = vmatmul.msk.f32.vlgmr.msrb.gmra.mxu1 %vm63_vm0, %v496_v45 }
 0xb17   :  { %770 = vmatpush.msrb.mxu1 %v3375_v1 }
 0xb19   :  { %771 = vmatpush.msrb.mxu1 %v3380_v2 }
 0xb1b   :  { %772 = vmatpush.msrb.mxu1 %v3388_v3 }
 0xb1d   :  { %773 = vmatpush.msrb.mxu1 %v3395_v4 }
 0xb93   :  { %v517_v46 = vpop.f32.mrf.mxu1 }
 0xb94   :  { %v518_v47 = vadd.f32 %v3485_v25, %v517_v46 }
 0xb96   :  { %v521_v48 = vmin.f32 %v518_v47, 0.0  ;;  %vm520_vm10 = vcmp.gt.f32.partialorder %v518_v47, 0.0 }
 0xb98   :  { %v524_v49 = vmul.f32 1.442695, %v521_v48  ;;  %v522_v50 = vmul.f32 0.5, %v521_v48 }
 0xb9a   :  { %3098 = vpow2.f32 %v524_v49 }
 0xb9b   :  { %3100 = vtanh.f32 %v522_v50 }
 0xba0   :  { %v3099_v51 = vpop.eup %3098 }
 0xba1   :  { %v526_v52 = vadd.f32 1.0, %v3099_v51  ;;  %v3101_v53 = vpop.eup %3100 }
 0xba3   :  { %v527_v54 = vmul.f32 %v3101_v53, %v526_v52 }
 0xba5   :  { %v528_v39 = vsel %vm520_vm10, %v518_v47, %v527_v54 }
 0xba6   :  { %2963 = vmatmul.msk.f32.vlgmr.msrb.gmra.mxu2 %vm63_vm0, %v528_v39 }
 0xba7   :  { %802 = vmatpush.msrb.mxu2 %v3406_v6 }
 0xba9   :  { %803 = vmatpush.msrb.mxu2 %v3411_v7 }
 0xbab   :  { %804 = vmatpush.msrb.mxu2 %v3418_v8 }
 0xbad   :  { %805 = vmatpush.msrb.mxu2 %v3426_v9 }
 0xc29   :  { %v549_v55 = vpop.f32.mrf.mxu2 }
 0xc2a   :  { %v3607_v56 = vadd.f32 %v3498_v36, %v549_v55 }
 0xc2c   :  { %v552_v58 = vmul.f32 0.33333334, %v3607_v56 }
 0xc2e   :  { %v554_v59 = vmul.f32 %v3610_v57, %v552_v58 }
 0xc30   :  { %556 = vrot.lane.b32.xlu0 %v554_v59, %s3337_s26 }
 0xca2   :  { %v557_v60 = vpop.permute.xlu0 %556 }
 0xca3   :  { %v559_v61 = vadd.f32 %v557_v60, %v3583_v34 }
 0xca5   :  { %561 = vrot.lane.b32.xlu1 %v559_v61, %s3336_s3 }
 0xd17   :  { %v562_v62 = vpop.permute.xlu1 %561 }
 0xd18   :  { %2964 = vmatmul.msk.f32.vlgmr.msrb.gmra.mxu3 %vm63_vm0, %v562_v62 }
 0xd19   :  { %834 = vmatpush.msrb.mxu3 %v3445_v21 }
 0xd1b   :  { %835 = vmatpush.msrb.mxu3 %v3450_v22 }
 0xd1d   :  { %836 = vmatpush.msrb.mxu3 %v3457_v23 }
 0xd1f   :  { %837 = vmatpush.msrb.mxu3 %v3465_v24 }
 0xd9b   :  { %v582_v63 = vpop.f32.mrf.mxu3 }
 0xd9c   :  { %v583_v5 = vadd.f32 %v3438_v10, %v582_v63 }
 0xd9e   :  { %v586_v11 = vmin.f32 %v583_v5, 0.0  ;;  %vm585_vm11 = vcmp.gt.f32.partialorder %v583_v5, 0.0 }
 0xda0   :  { %v589_v13 = vmul.f32 1.442695, %v586_v11  ;;  %v587_v14 = vmul.f32 0.5, %v586_v11 }
 0xda2   :  { %3102 = vpow2.f32 %v589_v13 }
 0xda3   :  { %3104 = vtanh.f32 %v587_v14 }
 0xda8   :  { %v3103_v15 = vpop.eup %3102 }
 0xda9   :  { %v591_v16 = vadd.f32 1.0, %v3103_v15  ;;  %v3105_v17 = vpop.eup %3104 }
 0xdab   :  { %v592_v18 = vmul.f32 %v3105_v17, %v591_v16 }
 0xdad   :  { %v593_v19 = vsel %vm585_vm11, %v583_v5, %v592_v18 }
 0xdae   :  { %2965 = vmatmul.msk.f32.vlgmr.msra.gmra.mxu0 %vm63_vm0, %v593_v19 }
 0xdaf   :  { %872 = vmatpush.msra.mxu0 %v3375_v1 }
 0xdb1   :  { %873 = vmatpush.msra.mxu0 %v3380_v2 }
 0xdb3   :  { %874 = vmatpush.msra.mxu0 %v3388_v3 }
 0xdb5   :  { %875 = vmatpush.msra.mxu0 %v3395_v4 }
 0xe2b   :  { %v614_v20 = vpop.f32.mrf.mxu0 }
 0xe2c   :  { %v615_v26 = vadd.f32 %v3485_v25, %v614_v20 }
 0xe2e   :  { %v618_v27 = vmin.f32 %v615_v26, 0.0  ;;  %vm617_vm12 = vcmp.gt.f32.partialorder %v615_v26, 0.0 }
 0xe30   :  { %v621_v28 = vmul.f32 1.442695, %v618_v27  ;;  %v619_v29 = vmul.f32 0.5, %v618_v27 }
 0xe32   :  { %3106 = vpow2.f32 %v621_v28 }
 0xe33   :  { %3108 = vtanh.f32 %v619_v29 }
 0xe38   :  { %v3107_v30 = vpop.eup %3106 }
 0xe39   :  { %v623_v31 = vadd.f32 1.0, %v3107_v30  ;;  %v3109_v32 = vpop.eup %3108 }
 0xe3b   :  { %v624_v33 = vmul.f32 %v3109_v32, %v623_v31 }
 0xe3d   :  { %v625_v12 = vsel %vm617_vm12, %v615_v26, %v624_v33 }
 0xe3e   :  { %2966 = vmatmul.msk.f32.vlgmr.msra.gmra.mxu1 %vm63_vm0, %v625_v12 }
 0xe3f   :  { %904 = vmatpush.msra.mxu1 %v3406_v6 }
 0xe41   :  { %905 = vmatpush.msra.mxu1 %v3411_v7 }
 0xe43   :  { %906 = vmatpush.msra.mxu1 %v3418_v8 }
 0xe45   :  { %907 = vmatpush.msra.mxu1 %v3426_v9 }
 0xebb   :  { %v646_v38 = vpop.f32.mrf.mxu1 }
 0xebc   :  { %v3635_v35 = vadd.f32 %v3498_v36, %v646_v38 }
 0xebe   :  { %v649_v37 = vsub.f32 %v3635_v35, %v552_v58  ;;  %v745_v13 = vsub.f32 %v3607_v56, %v3635_v35 }
 0xec0   :  { %v650_v0 = vmul.f32 %v649_v37, %v3610_v57 }
 0xec2   :  { %652 = vrot.lane.b32.xlu2 %v650_v0, %s3337_s26 }
 0xf1c   :  { %v653_v40 = vpop.permute.xlu2 %652 }
 0xf1d   :  { %v655_v41 = vadd.f32 %v653_v40, %v3583_v34 }
 0xf1f   :  { %657 = vrot.lane.b32.xlu0 %v655_v41, %s3336_s3 }
 0xf91   :  { %v658_v42 = vpop.permute.xlu0 %657 }
 0xf92   :  { %2967 = vmatmul.msk.f32.vlgmr.msra.gmra.mxu2 %vm63_vm0, %v658_v42 }
 0xf93   :  { %936 = vmatpush.msra.mxu2 %v3445_v21 }
 0xf95   :  { %937 = vmatpush.msra.mxu2 %v3450_v22 }
 0xf97   :  { %938 = vmatpush.msra.mxu2 %v3457_v23 }
 0xf99   :  { %939 = vmatpush.msra.mxu2 %v3465_v24 }
0x1015   :  { %v678_v43 = vpop.f32.mrf.mxu2 }
0x1016   :  { %v679_v44 = vadd.f32 %v3438_v10, %v678_v43 }
0x1018   :  { %v682_v45 = vmin.f32 %v679_v44, 0.0  ;;  %vm681_vm13 = vcmp.gt.f32.partialorder %v679_v44, 0.0 }
0x101a   :  { %v685_v46 = vmul.f32 1.442695, %v682_v45  ;;  %v683_v47 = vmul.f32 0.5, %v682_v45 }
0x101c   :  { %3110 = vpow2.f32 %v685_v46 }
0x101d   :  { %3112 = vtanh.f32 %v683_v47 }
0x1022   :  { %v3111_v48 = vpop.eup %3110 }
0x1023   :  { %v687_v49 = vadd.f32 1.0, %v3111_v48  ;;  %v3113_v50 = vpop.eup %3112 }
0x1025   :  { %v688_v51 = vmul.f32 %v3113_v50, %v687_v49  ;;  %v847_v50 = vstv %s842_s29 }
0x1027   :  { %v689_v52 = vsel %vm681_vm13, %v679_v44, %v688_v51 }
0x1028   :  { %2968 = vmatmul.msk.f32.vlgmr.msra.gmra.mxu3 %vm63_vm0, %v689_v52 }
0x1029   :  { %969 = vmatpush.msra.mxu3 %v3375_v1 }
0x102b   :  { %970 = vmatpush.msra.mxu3 %v3380_v2 }
0x102d   :  { %971 = vmatpush.msra.mxu3 %v3388_v3 }
0x102f   :  { %972 = vmatpush.msra.mxu3 %v3395_v4 }
0x10ab   :  { %v710_v53 = vpop.f32.mrf.mxu3 }
0x10ac   :  { %v711_v54 = vadd.f32 %v3485_v25, %v710_v53 }
0x10ae   :  { %v714_v39 = vmin.f32 %v711_v54, 0.0  ;;  %vm713_vm14 = vcmp.gt.f32.partialorder %v711_v54, 0.0 }
0x10b0   :  { %v717_v55 = vmul.f32 1.442695, %v714_v39  ;;  %v715_v58 = vmul.f32 0.5, %v714_v39 }
0x10b2   :  { %3114 = vpow2.f32 %v717_v55 }
0x10b3   :  { %3116 = vtanh.f32 %v715_v58 }
0x10b8   :  { %v3115_v59 = vpop.eup %3114 }
0x10b9   :  { %v719_v60 = vadd.f32 1.0, %v3115_v59  ;;  %v3117_v61 = vpop.eup %3116 }
0x10bb   :  { %v720_v62 = vmul.f32 %v3117_v61, %v719_v60 }
0x10bd   :  { %v721_v63 = vsel %vm713_vm14, %v711_v54, %v720_v62 }
0x10be   :  { %2969 = vmatmul.msk.f32.vlgmr.msrb.gmra.mxu0 %vm63_vm0, %v721_v63 }
0x10bf   :  { %1001 = vmatpush.msrb.mxu0 %v3406_v6 }
0x10c1   :  { %1002 = vmatpush.msrb.mxu0 %v3411_v7 }
0x10c3   :  { %1003 = vmatpush.msrb.mxu0 %v3418_v8 }
0x10c5   :  { %1004 = vmatpush.msrb.mxu0 %v3426_v9 }
0x113b   :  { %v742_v5 = vpop.f32.mrf.mxu0 }
0x113c   :  { %v743_v11 = vadd.f32 %v3498_v36, %v742_v5 }
0x113e   :  { %v746_v14 = vadd.f32 %v745_v13, %v743_v11  ;;  %v843_v45 = vadd.f32 %v743_v11, %v3635_v35 }
0x1140   :  { %v747_v15 = vmul.f32 %v746_v14, %v3610_v57  ;;  %v844_v46 = vmul.f32 3.0, %v843_v45 }
0x1142   :  { %749 = vrot.lane.b32.xlu1 %v747_v15, %s3337_s26  ;;  %v845_v49 = vadd.f32 %v844_v46, %v3607_v56  ;;  %v3759_v46 = vld [vmem:[%s4394_s1 + $0x38] sm:$0xff] }
0x11b4   :  { %v750_v16 = vpop.permute.xlu1 %749 }
0x11b5   :  { %v752_v17 = vadd.f32 %v750_v16, %v3583_v34 }
0x11b7   :  { %754 = vrot.lane.b32.xlu2 %v752_v17, %s3336_s3 }
0x1211   :  { %v755_v18 = vpop.permute.xlu2 %754 }
0x1212   :  { %2970 = vmatmul.msk.f32.vlgmr.msrb.gmra.mxu1 %vm63_vm0, %v755_v18 }
0x1213   :  { %1033 = vmatpush.msrb.mxu1 %v3445_v21 }
0x1215   :  { %1034 = vmatpush.msrb.mxu1 %v3450_v22 }
0x1217   :  { %1035 = vmatpush.msrb.mxu1 %v3457_v23 }
0x1219   :  { %1036 = vmatpush.msrb.mxu1 %v3465_v24 }
0x128f   :  { %v775_v19 = vpop.f32.mrf.mxu1 }
0x1290   :  { %v776_v57 = vadd.f32 %v3438_v10, %v775_v19 }
0x1292   :  { %v779_v20 = vmin.f32 %v776_v57, 0.0  ;;  %vm778_vm15 = vcmp.gt.f32.partialorder %v776_v57, 0.0 }
0x1294   :  { %v782_v26 = vmul.f32 1.442695, %v779_v20  ;;  %v780_v27 = vmul.f32 0.5, %v779_v20 }
0x1296   :  { %3118 = vpow2.f32 %v782_v26 }
0x1297   :  { %3120 = vtanh.f32 %v780_v27 }
0x129c   :  { %v3119_v28 = vpop.eup %3118 }
0x129d   :  { %v784_v29 = vadd.f32 1.0, %v3119_v28  ;;  %v3121_v30 = vpop.eup %3120 }
0x129f   :  { %v785_v31 = vmul.f32 %v3121_v30, %v784_v29 }
0x12a1   :  { %v786_v32 = vsel %vm778_vm15, %v776_v57, %v785_v31 }
0x12a2   :  { %2971 = vmatmul.msk.f32.vlgmr.msrb.gmra.mxu2 %vm63_vm0, %v786_v32 }
0x12a3   :  { %1065 = vmatpush.msrb.mxu2 %v3375_v1 }
0x12a5   :  { %1066 = vmatpush.msrb.mxu2 %v3380_v2 }
0x12a7   :  { %1067 = vmatpush.msrb.mxu2 %v3388_v3 }
0x12a9   :  { %1068 = vmatpush.msrb.mxu2 %v3395_v4 }
0x1325   :  { %v807_v33 = vpop.f32.mrf.mxu2 }
0x1326   :  { %v808_v12 = vadd.f32 %v3485_v25, %v807_v33 }
0x1328   :  { %v811_v38 = vmin.f32 %v808_v12, 0.0  ;;  %vm810_vm1 = vcmp.gt.f32.partialorder %v808_v12, 0.0 }
0x132a   :  { %v814_v37 = vmul.f32 1.442695, %v811_v38  ;;  %v812_v0 = vmul.f32 0.5, %v811_v38 }
0x132c   :  { %3122 = vpow2.f32 %v814_v37 }
0x132d   :  { %3124 = vtanh.f32 %v812_v0 }
0x1332   :  { %v3123_v40 = vpop.eup %3122 }
0x1333   :  { %v816_v41 = vadd.f32 1.0, %v3123_v40  ;;  %v3125_v42 = vpop.eup %3124 }
0x1335   :  { %v817_v43 = vmul.f32 %v3125_v42, %v816_v41 }
0x1337   :  { %v818_v44 = vsel %vm810_vm1, %v808_v12, %v817_v43 }
0x1338   :  { %2972 = vmatmul.msk.f32.vlgmr.msrb.gmra.mxu3 %vm63_vm0, %v818_v44 }
0x1339   :  { %1097 = vmatpush.msrb.mxu3 %v3406_v6 }
0x133b   :  { %1098 = vmatpush.msrb.mxu3 %v3411_v7 }
0x133d   :  { %1099 = vmatpush.msrb.mxu3 %v3418_v8 }
0x133f   :  { %1100 = vmatpush.msrb.mxu3 %v3426_v9 }
0x13bb   :  { %v839_v47 = vpop.f32.mrf.mxu3 }
0x13bc   :  { %v840_v48 = vadd.f32 %v3498_v36, %v839_v47  ;;  %v3771_v47 = vld [vmem:[%s4394_s1 + $0x28] sm:$0xff] }
0x13be   :  { %v846_v51 = vadd.f32 %v845_v49, %v840_v48  ;;  %v3777_v48 = vld [vmem:[%s4394_s1 + $0x20] sm:$0xff] }
0x13c0   :  { %v848_v52 = vmul.f32 %v847_v50, %v846_v51 }
0x13c2   :  { %850 = vrot.lane.b32.xlu0 %v848_v52, %s3337_s26 }
0x1434   :  { %v851_v53 = vpop.permute.xlu0 %850 }
0x1435   :  { %v3689_v54 = vadd.f32 %v851_v53, %v3583_v34 }
0x1437   :  { %856 = vrot.lane.b32.xlu1 %v3689_v54, %s3336_s3 }
0x14a9   :  { %v857_v35 = vpop.permute.xlu1 %856 }
0x14aa   :  { %2974 = vmatmul.msk.f32.vlgmr.msra.gmra.mxu0 %vm63_vm0, %v857_v35 }
0x14ab   :  { %1129 = vmatpush.msra.mxu0 %v3445_v21 }
0x14ad   :  { %1130 = vmatpush.msra.mxu0 %v3450_v22 }
0x14af   :  { %1131 = vmatpush.msra.mxu0 %v3457_v23 }
0x14b1   :  { %1132 = vmatpush.msra.mxu0 %v3465_v24 }
0x1527   :  { %v877_v56 = vpop.f32.mrf.mxu0 }
0x1528   :  { %v878_v39 = vadd.f32 %v3438_v10, %v877_v56 }
0x152a   :  { %v881_v55 = vmin.f32 %v878_v39, 0.0  ;;  %vm880_vm2 = vcmp.gt.f32.partialorder %v878_v39, 0.0 }
0x152c   :  { %v884_v34 = vmul.f32 1.442695, %v881_v55  ;;  %v882_v58 = vmul.f32 0.5, %v881_v55  ;;  %v3804_v55 = vld [vmem:[%s4394_s1 + $0x48] sm:$0xff] }
0x152e   :  { %3126 = vpow2.f32 %v884_v34  ;;  %v3810_v34 = vld [vmem:[%s4394_s1 + $0x40] sm:$0xff] }
0x152f   :  { %3128 = vtanh.f32 %v882_v58 }
0x1534   :  { %v3127_v59 = vpop.eup %3126 }
0x1535   :  { %v886_v60 = vadd.f32 1.0, %v3127_v59  ;;  %v3129_v61 = vpop.eup %3128  ;;  %v3816_v59 = vld [vmem:[%s4395_s2] ss:$0 sm:$0xff] }
0x1537   :  { %v887_v62 = vmul.f32 %v3129_v61, %v886_v60 }
0x1539   :  { %v888_v63 = vsel %vm880_vm2, %v878_v39, %v887_v62  ;;  %v3792_v39 = vld [vmem:[%s4394_s1 + $0x58] sm:$0xff] }
0x153a   :  { %2975 = vmatmul.msk.f32.vlgmr.msra.gmra.mxu1 %vm63_vm0, %v888_v63 }
0x153b   :  { %1162 = vmatpush.msra.mxu1 %v3375_v1 }
0x153d   :  { %1163 = vmatpush.msra.mxu1 %v3380_v2 }
0x153f   :  { %1164 = vmatpush.msra.mxu1 %v3388_v3 }
0x1541   :  { %1165 = vmatpush.msra.mxu1 %v3395_v4  ;;  %v3716_v4 = vstv %s3710_s30  ;;  %s3891_s30 = sld [smem:[#allocation2 + $0x3]] }
0x1547   :  { %s1626_s12 = smul.f32 0.125, %s3891_s30 }
0x15b7   :  { %v909_v5 = vpop.f32.mrf.mxu1 }
0x15b8   :  { %v910_v11 = vadd.f32 %v3485_v25, %v909_v5 }
0x15ba   :  { %v913_v13 = vmin.f32 %v910_v11, 0.0  ;;  %vm912_vm3 = vcmp.gt.f32.partialorder %v910_v11, 0.0 }
0x15bc   :  { %v916_v14 = vmul.f32 1.442695, %v913_v13  ;;  %v914_v15 = vmul.f32 0.5, %v913_v13 }
0x15be   :  { %3130 = vpow2.f32 %v916_v14 }
0x15bf   :  { %3132 = vtanh.f32 %v914_v15 }
0x15c4   :  { %v3131_v16 = vpop.eup %3130 }
0x15c5   :  { %v918_v17 = vadd.f32 1.0, %v3131_v16  ;;  %v3133_v18 = vpop.eup %3132 }
0x15c7   :  { %v919_v19 = vmul.f32 %v3133_v18, %v918_v17  ;;  %v3827_v17 = vld [vmem:[%s4395_s2 + $0x1] ss:$0 sm:$0xff] }
0x15c9   :  { %v920_v1 = vsel %vm912_vm3, %v910_v11, %v919_v19 }
0x15ca   :  { %2976 = vmatmul.msk.f32.vlgmr.msra.gmra.mxu2 %vm63_vm0, %v920_v1 }
0x15cb   :  { %1194 = vmatpush.msra.mxu2 %v3406_v6 }
0x15cd   :  { %1195 = vmatpush.msra.mxu2 %v3411_v7 }
0x15cf   :  { %1196 = vmatpush.msra.mxu2 %v3418_v8 }
0x15d1   :  { %1197 = vmatpush.msra.mxu2 %v3426_v9 }
0x164d   :  { %v941_v2 = vpop.f32.mrf.mxu2 }
0x164e   :  { %v3713_v3 = vadd.f32 %v3498_v36, %v941_v2 }
0x1650   :  { %v944_v57 = vmul.f32 0.33333334, %v3713_v3 }
0x1652   :  { %v946_v20 = vmul.f32 %v3716_v4, %v944_v57 }
0x1654   :  { %948 = vrot.lane.b32.xlu2 %v946_v20, %s3337_s26 }
0x16ae   :  { %v949_v6 = vpop.permute.xlu2 %948 }
0x16af   :  { %v951_v7 = vadd.f32 %v949_v6, %v3689_v54 }
0x16b1   :  { %953 = vrot.lane.b32.xlu0 %v951_v7, %s3336_s3 }
0x1723   :  { %v954_v8 = vpop.permute.xlu0 %953 }
0x1724   :  { %2977 = vmatmul.msk.f32.vlgmr.msra.gmra.mxu3 %vm63_vm0, %v954_v8 }
0x1725   :  { %1226 = vmatpush.msra.mxu3 %v3445_v21 }
0x1727   :  { %1227 = vmatpush.msra.mxu3 %v3450_v22  ;;  %v3733_v22 = vld [vmem:[%s4394_s1 + $0x18] sm:$0xff] }
0x1729   :  { %1228 = vmatpush.msra.mxu3 %v3457_v23  ;;  %v3745_v23 = vld [vmem:[%s4394_s1 + $0x8] sm:$0xff] }
0x172b   :  { %1229 = vmatpush.msra.mxu3 %v3465_v24  ;;  %v3751_v24 = vld [vmem:[%s4394_s1] sm:$0xff] }
0x17a7   :  { %v974_v9 = vpop.f32.mrf.mxu3 }
0x17a8   :  { %v975_v26 = vadd.f32 %v3438_v10, %v974_v9  ;;  %v3739_v10 = vld [vmem:[%s4394_s1 + $0x10] sm:$0xff] }
0x17aa   :  { %v978_v27 = vmin.f32 %v975_v26, 0.0  ;;  %vm977_vm4 = vcmp.gt.f32.partialorder %v975_v26, 0.0 }
0x17ac   :  { %v981_v28 = vmul.f32 1.442695, %v978_v27  ;;  %v979_v29 = vmul.f32 0.5, %v978_v27 }
0x17ae   :  { %3134 = vpow2.f32 %v981_v28 }
0x17af   :  { %3136 = vtanh.f32 %v979_v29 }
0x17b4   :  { %v3135_v30 = vpop.eup %3134 }
0x17b5   :  { %v983_v31 = vadd.f32 1.0, %v3135_v30  ;;  %v3137_v32 = vpop.eup %3136 }
0x17b7   :  { %v984_v33 = vmul.f32 %v3137_v32, %v983_v31 }
0x17b9   :  { %v985_v21 = vsel %vm977_vm4, %v975_v26, %v984_v33  ;;  %v3838_v26 = vld [vmem:[%s4395_s2 + $0x2] ss:$0 sm:$0xff] }
0x17ba   :  { %2978 = vmatmul.msk.f32.vlgmr.msrb.gmra.mxu0 %vm63_vm0, %v985_v21 }
0x17bb   :  { %1264 = vmatpush.msrb.mxu0 %v3733_v22 }
0x17bd   :  { %1265 = vmatpush.msrb.mxu0 %v3739_v10 }
0x17bf   :  { %1266 = vmatpush.msrb.mxu0 %v3745_v23 }
0x17c1   :  { %1267 = vmatpush.msrb.mxu0 %v3751_v24 }
0x1837   :  { %v1006_v12 = vpop.f32.mrf.mxu0 }
0x1838   :  { %v1007_v38 = vadd.f32 %v3485_v25, %v1006_v12  ;;  %v3765_v25 = vld [vmem:[%s4394_s1 + $0x30] sm:$0xff] }
0x183a   :  { %v1010_v37 = vmin.f32 %v1007_v38, 0.0  ;;  %vm1009_vm5 = vcmp.gt.f32.partialorder %v1007_v38, 0.0 }
0x183c   :  { %v1013_v0 = vmul.f32 1.442695, %v1010_v37  ;;  %v1011_v40 = vmul.f32 0.5, %v1010_v37 }
0x183e   :  { %3138 = vpow2.f32 %v1013_v0 }
0x183f   :  { %3140 = vtanh.f32 %v1011_v40 }
0x1844   :  { %v3139_v41 = vpop.eup %3138 }
0x1845   :  { %v1015_v42 = vadd.f32 1.0, %v3139_v41  ;;  %v3141_v43 = vpop.eup %3140 }
0x1847   :  { %v1016_v44 = vmul.f32 %v3141_v43, %v1015_v42 }
0x1849   :  { %v1017_v45 = vsel %vm1009_vm5, %v1007_v38, %v1016_v44 }
0x184a   :  { %2979 = vmatmul.msk.f32.vlgmr.msrb.gmra.mxu1 %vm63_vm0, %v1017_v45 }
0x184b   :  { %1296 = vmatpush.msrb.mxu1 %v3759_v46 }
0x184d   :  { %1297 = vmatpush.msrb.mxu1 %v3765_v25 }
0x184f   :  { %1298 = vmatpush.msrb.mxu1 %v3771_v47 }
0x1851   :  { %1299 = vmatpush.msrb.mxu1 %v3777_v48 }
0x18c7   :  { %v1038_v49 = vpop.f32.mrf.mxu1 }
0x18c8   :  { %v3781_v50 = vadd.f32 %v3498_v36, %v1038_v49  ;;  %v3798_v36 = vld [vmem:[%s4394_s1 + $0x50] sm:$0xff] }
0x18ca   :  { %v1041_v51 = vsub.f32 %v3781_v50, %v944_v57  ;;  %v1137_v28 = vsub.f32 %v3713_v3, %v3781_v50 }
0x18cc   :  { %v1042_v52 = vmul.f32 %v1041_v51, %v3716_v4 }
0x18ce   :  { %1044 = vrot.lane.b32.xlu1 %v1042_v52, %s3337_s26 }
0x1940   :  { %v1045_v53 = vpop.permute.xlu1 %1044 }
0x1941   :  { %v1047_v35 = vadd.f32 %v1045_v53, %v3689_v54 }
0x1943   :  { %1049 = vrot.lane.b32.xlu2 %v1047_v35, %s3336_s3 }
0x199d   :  { %v1050_v56 = vpop.permute.xlu2 %1049 }
0x199e   :  { %2980 = vmatmul.msk.f32.vlgmr.msrb.gmra.mxu2 %vm63_vm0, %v1050_v56 }
0x199f   :  { %1328 = vmatpush.msrb.mxu2 %v3792_v39 }
0x19a1   :  { %1329 = vmatpush.msrb.mxu2 %v3798_v36 }
0x19a3   :  { %1330 = vmatpush.msrb.mxu2 %v3804_v55 }
0x19a5   :  { %1331 = vmatpush.msrb.mxu2 %v3810_v34 }
0x1a21   :  { %v1070_v58 = vpop.f32.mrf.mxu2 }
0x1a22   :  { %v1071_v60 = vadd.f32 %v3816_v59, %v1070_v58 }
0x1a24   :  { %v1074_v61 = vmin.f32 %v1071_v60, 0.0  ;;  %vm1073_vm6 = vcmp.gt.f32.partialorder %v1071_v60, 0.0 }
0x1a26   :  { %v1077_v62 = vmul.f32 1.442695, %v1074_v61  ;;  %v1075_v63 = vmul.f32 0.5, %v1074_v61 }
0x1a28   :  { %3142 = vpow2.f32 %v1077_v62 }
0x1a29   :  { %3144 = vtanh.f32 %v1075_v63 }
0x1a2e   :  { %v3143_v5 = vpop.eup %3142 }
0x1a2f   :  { %v1079_v11 = vadd.f32 1.0, %v3143_v5  ;;  %v3145_v13 = vpop.eup %3144 }
0x1a31   :  { %v1080_v14 = vmul.f32 %v3145_v13, %v1079_v11  ;;  %v1239_v13 = vstv %s1234_s11 }
0x1a33   :  { %v1081_v15 = vsel %vm1073_vm6, %v1071_v60, %v1080_v14 }
0x1a34   :  { %2981 = vmatmul.msk.f32.vlgmr.msrb.gmra.mxu3 %vm63_vm0, %v1081_v15 }
0x1a35   :  { %1361 = vmatpush.msrb.mxu3 %v3733_v22 }
0x1a37   :  { %1362 = vmatpush.msrb.mxu3 %v3739_v10 }
0x1a39   :  { %1363 = vmatpush.msrb.mxu3 %v3745_v23 }
0x1a3b   :  { %1364 = vmatpush.msrb.mxu3 %v3751_v24 }
0x1ab7   :  { %v1102_v16 = vpop.f32.mrf.mxu3 }
0x1ab8   :  { %v1103_v18 = vadd.f32 %v3827_v17, %v1102_v16 }
0x1aba   :  { %v1106_v19 = vmin.f32 %v1103_v18, 0.0  ;;  %vm1105_vm7 = vcmp.gt.f32.partialorder %v1103_v18, 0.0 }
0x1abc   :  { %v1109_v1 = vmul.f32 1.442695, %v1106_v19  ;;  %v1107_v2 = vmul.f32 0.5, %v1106_v19 }
0x1abe   :  { %3146 = vpow2.f32 %v1109_v1 }
0x1abf   :  { %3148 = vtanh.f32 %v1107_v2 }
0x1ac4   :  { %v3147_v57 = vpop.eup %3146 }
0x1ac5   :  { %v1111_v20 = vadd.f32 1.0, %v3147_v57  ;;  %v3149_v6 = vpop.eup %3148 }
0x1ac7   :  { %v1112_v7 = vmul.f32 %v3149_v6, %v1111_v20 }
0x1ac9   :  { %v1113_v8 = vsel %vm1105_vm7, %v1103_v18, %v1112_v7 }
0x1aca   :  { %2982 = vmatmul.msk.f32.vlgmr.msra.gmra.mxu0 %vm63_vm0, %v1113_v8 }
0x1acb   :  { %1393 = vmatpush.msra.mxu0 %v3759_v46 }
0x1acd   :  { %1394 = vmatpush.msra.mxu0 %v3765_v25 }
0x1acf   :  { %1395 = vmatpush.msra.mxu0 %v3771_v47 }
0x1ad1   :  { %1396 = vmatpush.msra.mxu0 %v3777_v48 }
0x1b47   :  { %v1134_v9 = vpop.f32.mrf.mxu0 }
0x1b48   :  { %v1135_v27 = vadd.f32 %v3838_v26, %v1134_v9 }
0x1b4a   :  { %v1138_v29 = vadd.f32 %v1137_v28, %v1135_v27  ;;  %v1235_v61 = vadd.f32 %v1135_v27, %v3781_v50 }
0x1b4c   :  { %v1139_v30 = vmul.f32 %v1138_v29, %v3716_v4  ;;  %v1236_v62 = vmul.f32 3.0, %v1235_v61 }
0x1b4e   :  { %1141 = vrot.lane.b32.xlu0 %v1139_v30, %s3337_s26  ;;  %v1237_v11 = vadd.f32 %v1236_v62, %v3713_v3 }
0x1bc0   :  { %v1142_v31 = vpop.permute.xlu0 %1141 }
0x1bc1   :  { %v1144_v32 = vadd.f32 %v1142_v31, %v3689_v54 }
0x1bc3   :  { %1146 = vrot.lane.b32.xlu1 %v1144_v32, %s3336_s3 }
0x1c35   :  { %v1147_v33 = vpop.permute.xlu1 %1146 }
0x1c36   :  { %2983 = vmatmul.msk.f32.vlgmr.msra.gmra.mxu1 %vm63_vm0, %v1147_v33 }
0x1c37   :  { %1425 = vmatpush.msra.mxu1 %v3792_v39 }
0x1c39   :  { %1426 = vmatpush.msra.mxu1 %v3798_v36 }
0x1c3b   :  { %1427 = vmatpush.msra.mxu1 %v3804_v55 }
0x1c3d   :  { %1428 = vmatpush.msra.mxu1 %v3810_v34 }
0x1cb3   :  { %v1167_v21 = vpop.f32.mrf.mxu1 }
0x1cb4   :  { %v1168_v4 = vadd.f32 %v3816_v59, %v1167_v21 }
0x1cb6   :  { %v1171_v12 = vmin.f32 %v1168_v4, 0.0  ;;  %vm1170_vm8 = vcmp.gt.f32.partialorder %v1168_v4, 0.0 }
0x1cb8   :  { %v1174_v38 = vmul.f32 1.442695, %v1171_v12  ;;  %v1172_v37 = vmul.f32 0.5, %v1171_v12 }
0x1cba   :  { %3150 = vpow2.f32 %v1174_v38 }
0x1cbb   :  { %3152 = vtanh.f32 %v1172_v37  ;;  %v3897_v37 = vstv %s3891_s30 }
0x1cc0   :  { %v3151_v0 = vpop.eup %3150 }
0x1cc1   :  { %v1176_v40 = vadd.f32 1.0, %v3151_v0  ;;  %v3153_v41 = vpop.eup %3152 }
0x1cc3   :  { %v1177_v42 = vmul.f32 %v3153_v41, %v1176_v40 }
0x1cc5   :  { %v1178_v43 = vsel %vm1170_vm8, %v1168_v4, %v1177_v42 }
0x1cc6   :  { %2984 = vmatmul.msk.f32.vlgmr.msra.gmra.mxu2 %vm63_vm0, %v1178_v43 }
0x1cc7   :  { %1457 = vmatpush.msra.mxu2 %v3733_v22 }
0x1cc9   :  { %1458 = vmatpush.msra.mxu2 %v3739_v10 }
0x1ccb   :  { %1459 = vmatpush.msra.mxu2 %v3745_v23 }
0x1ccd   :  { %1460 = vmatpush.msra.mxu2 %v3751_v24 }
0x1d49   :  { %v1199_v44 = vpop.f32.mrf.mxu2 }
0x1d4a   :  { %v1200_v45 = vadd.f32 %v3827_v17, %v1199_v44 }
0x1d4c   :  { %v1203_v49 = vmin.f32 %v1200_v45, 0.0  ;;  %vm1202_vm9 = vcmp.gt.f32.partialorder %v1200_v45, 0.0 }
0x1d4e   :  { %v1206_v51 = vmul.f32 1.442695, %v1203_v49  ;;  %v1204_v52 = vmul.f32 0.5, %v1203_v49 }
0x1d50   :  { %3154 = vpow2.f32 %v1206_v51 }
0x1d51   :  { %3156 = vtanh.f32 %v1204_v52 }
0x1d56   :  { %v3155_v53 = vpop.eup %3154 }
0x1d57   :  { %v1208_v35 = vadd.f32 1.0, %v3155_v53  ;;  %v3157_v56 = vpop.eup %3156 }
0x1d59   :  { %v1209_v58 = vmul.f32 %v3157_v56, %v1208_v35 }
0x1d5b   :  { %v1210_v60 = vsel %vm1202_vm9, %v1200_v45, %v1209_v58 }
0x1d5c   :  { %2985 = vmatmul.msk.f32.vlgmr.msra.gmra.mxu3 %vm63_vm0, %v1210_v60 }
0x1d5d   :  { %1489 = vmatpush.msra.mxu3 %v3759_v46 }
0x1d5f   :  { %1490 = vmatpush.msra.mxu3 %v3765_v25 }
0x1d61   :  { %1491 = vmatpush.msra.mxu3 %v3771_v47 }
0x1d63   :  { %1492 = vmatpush.msra.mxu3 %v3777_v48 }
0x1ddf   :  { %v1231_v63 = vpop.f32.mrf.mxu3 }
0x1de0   :  { %v1232_v5 = vadd.f32 %v3838_v26, %v1231_v63 }
0x1de2   :  { %v1238_v14 = vadd.f32 %v1237_v11, %v1232_v5 }
0x1de4   :  { %v1240_v15 = vmul.f32 %v1239_v13, %v1238_v14 }
0x1de6   :  { %1242 = vrot.lane.b32.xlu2 %v1240_v15, %s3337_s26 }
0x1e40   :  { %v1243_v16 = vpop.permute.xlu2 %1242 }
0x1e41   :  { %v3870_v18 = vadd.f32 %v1243_v16, %v3689_v54 }
0x1e43   :  { %1248 = vrot.lane.b32.xlu0 %v3870_v18, %s3336_s3 }
0x1eb5   :  { %v1249_v50 = vpop.permute.xlu0 %1248 }
0x1eb6   :  { %2987 = vmatmul.msk.f32.vlgmr.msrb.gmra.mxu0 %vm63_vm0, %v1249_v50 }
0x1eb7   :  { %1521 = vmatpush.msrb.mxu0 %v3792_v39 }
0x1eb9   :  { %1522 = vmatpush.msrb.mxu0 %v3798_v36 }
0x1ebb   :  { %1523 = vmatpush.msrb.mxu0 %v3804_v55 }
0x1ebd   :  { %1524 = vmatpush.msrb.mxu0 %v3810_v34 }
0x1f33   :  { %v1269_v3 = vpop.f32.mrf.mxu0 }
0x1f34   :  { %v1270_v19 = vadd.f32 %v3816_v59, %v1269_v3 }
0x1f36   :  { %v1273_v1 = vmin.f32 %v1270_v19, 0.0  ;;  %vm1272_vm10 = vcmp.gt.f32.partialorder %v1270_v19, 0.0 }
0x1f38   :  { %v1276_v54 = vmul.f32 1.442695, %v1273_v1  ;;  %v1274_v2 = vmul.f32 0.5, %v1273_v1 }
0x1f3a   :  { %3158 = vpow2.f32 %v1276_v54 }
0x1f3b   :  { %3160 = vtanh.f32 %v1274_v2 }
0x1f40   :  { %v3159_v57 = vpop.eup %3158 }
0x1f41   :  { %v1278_v20 = vadd.f32 1.0, %v3159_v57  ;;  %v3161_v6 = vpop.eup %3160 }
0x1f43   :  { %v1279_v7 = vmul.f32 %v3161_v6, %v1278_v20 }
0x1f45   :  { %v1280_v8 = vsel %vm1272_vm10, %v1270_v19, %v1279_v7 }
0x1f46   :  { %2988 = vmatmul.msk.f32.vlgmr.msrb.gmra.mxu1 %vm63_vm0, %v1280_v8 }
0x1f47   :  { %1554 = vmatpush.msrb.mxu1 %v3733_v22 }
0x1f49   :  { %1555 = vmatpush.msrb.mxu1 %v3739_v10 }
0x1f4b   :  { %1556 = vmatpush.msrb.mxu1 %v3745_v23 }
0x1f4d   :  { %1557 = vmatpush.msrb.mxu1 %v3751_v24 }
0x1fc3   :  { %v1301_v9 = vpop.f32.mrf.mxu1 }
0x1fc4   :  { %v1302_v27 = vadd.f32 %v3827_v17, %v1301_v9 }
0x1fc6   :  { %v1305_v28 = vmin.f32 %v1302_v27, 0.0  ;;  %vm1304_vm11 = vcmp.gt.f32.partialorder %v1302_v27, 0.0 }
0x1fc8   :  { %v1308_v29 = vmul.f32 1.442695, %v1305_v28  ;;  %v1306_v30 = vmul.f32 0.5, %v1305_v28 }
0x1fca   :  { %3162 = vpow2.f32 %v1308_v29 }
0x1fcb   :  { %3164 = vtanh.f32 %v1306_v30 }
0x1fd0   :  { %v3163_v31 = vpop.eup %3162 }
0x1fd1   :  { %v1310_v32 = vadd.f32 1.0, %v3163_v31  ;;  %v3165_v33 = vpop.eup %3164 }
0x1fd3   :  { %v1311_v21 = vmul.f32 %v3165_v33, %v1310_v32 }
0x1fd5   :  { %v1312_v4 = vsel %vm1304_vm11, %v1302_v27, %v1311_v21 }
0x1fd6   :  { %2989 = vmatmul.msk.f32.vlgmr.msrb.gmra.mxu2 %vm63_vm0, %v1312_v4 }
0x1fd7   :  { %1586 = vmatpush.msrb.mxu2 %v3759_v46 }
0x1fd9   :  { %1587 = vmatpush.msrb.mxu2 %v3765_v25 }
0x1fdb   :  { %1588 = vmatpush.msrb.mxu2 %v3771_v47 }
0x1fdd   :  { %1589 = vmatpush.msrb.mxu2 %v3777_v48 }
0x2059   :  { %v1333_v12 = vpop.f32.mrf.mxu2 }
0x205a   :  { %v3894_v38 = vadd.f32 %v3838_v26, %v1333_v12 }
0x205c   :  { %v1336_v0 = vmul.f32 0.33333334, %v3894_v38 }
0x205e   :  { %v1338_v40 = vmul.f32 %v3897_v37, %v1336_v0 }
0x2060   :  { %1340 = vrot.lane.b32.xlu1 %v1338_v40, %s3337_s26 }
0x20d2   :  { %v1341_v41 = vpop.permute.xlu1 %1340 }
0x20d3   :  { %v1343_v42 = vadd.f32 %v1341_v41, %v3870_v18 }
0x20d5   :  { %1345 = vrot.lane.b32.xlu2 %v1343_v42, %s3336_s3 }
0x212f   :  { %v1346_v43 = vpop.permute.xlu2 %1345 }
0x2130   :  { %2990 = vmatmul.msk.f32.vlgmr.msrb.gmra.mxu3 %vm63_vm0, %v1346_v43 }
0x2131   :  { %1618 = vmatpush.msrb.mxu3 %v3792_v39 }
0x2133   :  { %1619 = vmatpush.msrb.mxu3 %v3798_v36 }
0x2135   :  { %1620 = vmatpush.msrb.mxu3 %v3804_v55 }
0x2137   :  { %1621 = vmatpush.msrb.mxu3 %v3810_v34 }
0x21b3   :  { %v1366_v44 = vpop.f32.mrf.mxu3 }
0x21b4   :  { %v1367_v45 = vadd.f32 %v3816_v59, %v1366_v44 }
0x21b6   :  { %v1370_v49 = vmin.f32 %v1367_v45, 0.0  ;;  %vm1369_vm12 = vcmp.gt.f32.partialorder %v1367_v45, 0.0 }
0x21b8   :  { %v1373_v51 = vmul.f32 1.442695, %v1370_v49  ;;  %v1371_v52 = vmul.f32 0.5, %v1370_v49 }
0x21ba   :  { %3166 = vpow2.f32 %v1373_v51 }
0x21bb   :  { %3168 = vtanh.f32 %v1371_v52 }
0x21c0   :  { %v3167_v53 = vpop.eup %3166 }
0x21c1   :  { %v1375_v35 = vadd.f32 1.0, %v3167_v53  ;;  %v3169_v56 = vpop.eup %3168 }
0x21c3   :  { %v1376_v58 = vmul.f32 %v3169_v56, %v1375_v35 }
0x21c5   :  { %v1377_v60 = vsel %vm1369_vm12, %v1367_v45, %v1376_v58 }
0x21c6   :  { %2991 = vmatmul.msk.f32.vlgmr.msra.gmra.mxu0 %vm63_vm0, %v1377_v60 }
0x21c7   :  { %1656 = vmatpush.msra.mxu0 %v3733_v22 }
0x21c9   :  { %1657 = vmatpush.msra.mxu0 %v3739_v10 }
0x21cb   :  { %1658 = vmatpush.msra.mxu0 %v3745_v23 }
0x21cd   :  { %1659 = vmatpush.msra.mxu0 %v3751_v24 }
0x2243   :  { %v1398_v61 = vpop.f32.mrf.mxu0 }
0x2244   :  { %v1399_v62 = vadd.f32 %v3827_v17, %v1398_v61 }
0x2246   :  { %v1402_v63 = vmin.f32 %v1399_v62, 0.0  ;;  %vm1401_vm13 = vcmp.gt.f32.partialorder %v1399_v62, 0.0 }
0x2248   :  { %v1405_v5 = vmul.f32 1.442695, %v1402_v63  ;;  %v1403_v11 = vmul.f32 0.5, %v1402_v63 }
0x224a   :  { %3170 = vpow2.f32 %v1405_v5 }
0x224b   :  { %3172 = vtanh.f32 %v1403_v11 }
0x2250   :  { %v3171_v13 = vpop.eup %3170 }
0x2251   :  { %v1407_v14 = vadd.f32 1.0, %v3171_v13  ;;  %v3173_v15 = vpop.eup %3172 }
0x2253   :  { %v1408_v16 = vmul.f32 %v3173_v15, %v1407_v14 }
0x2255   :  { %v1409_v50 = vsel %vm1401_vm13, %v1399_v62, %v1408_v16 }
0x2256   :  { %2992 = vmatmul.msk.f32.vlgmr.msra.gmra.mxu1 %vm63_vm0, %v1409_v50 }
0x2257   :  { %1688 = vmatpush.msra.mxu1 %v3759_v46 }
0x2259   :  { %1689 = vmatpush.msra.mxu1 %v3765_v25 }
0x225b   :  { %1690 = vmatpush.msra.mxu1 %v3771_v47 }
0x225d   :  { %1691 = vmatpush.msra.mxu1 %v3777_v48 }
0x22d3   :  { %v1430_v3 = vpop.f32.mrf.mxu1 }
0x22d4   :  { %v3922_v19 = vadd.f32 %v3838_v26, %v1430_v3 }
0x22d6   :  { %v1433_v1 = vsub.f32 %v3922_v19, %v1336_v0  ;;  %v1529_v51 = vsub.f32 %v3894_v38, %v3922_v19 }
0x22d8   :  { %v1434_v54 = vmul.f32 %v1433_v1, %v3897_v37 }
0x22da   :  { %1436 = vrot.lane.b32.xlu0 %v1434_v54, %s3337_s26 }
0x234c   :  { %v1437_v2 = vpop.permute.xlu0 %1436 }
0x234d   :  { %v1439_v57 = vadd.f32 %v1437_v2, %v3870_v18 }
0x234f   :  { %1441 = vrot.lane.b32.xlu1 %v1439_v57, %s3336_s3 }
0x23c1   :  { %v1442_v20 = vpop.permute.xlu1 %1441 }
0x23c2   :  { %2993 = vmatmul.msk.f32.vlgmr.msra.gmra.mxu2 %vm63_vm0, %v1442_v20 }
0x23c3   :  { %1720 = vmatpush.msra.mxu2 %v3792_v39 }
0x23c5   :  { %1721 = vmatpush.msra.mxu2 %v3798_v36 }
0x23c7   :  { %1722 = vmatpush.msra.mxu2 %v3804_v55 }
0x23c9   :  { %1723 = vmatpush.msra.mxu2 %v3810_v34 }
0x2445   :  { %v1462_v6 = vpop.f32.mrf.mxu2 }
0x2446   :  { %v1463_v7 = vadd.f32 %v3816_v59, %v1462_v6 }
0x2448   :  { %v1466_v8 = vmin.f32 %v1463_v7, 0.0  ;;  %vm1465_vm14 = vcmp.gt.f32.partialorder %v1463_v7, 0.0 }
0x244a   :  { %v1469_v9 = vmul.f32 1.442695, %v1466_v8  ;;  %v1467_v27 = vmul.f32 0.5, %v1466_v8 }
0x244c   :  { %3174 = vpow2.f32 %v1469_v9 }
0x244d   :  { %3176 = vtanh.f32 %v1467_v27 }
0x2452   :  { %v3175_v28 = vpop.eup %3174 }
0x2453   :  { %v1471_v29 = vadd.f32 1.0, %v3175_v28  ;;  %v3177_v30 = vpop.eup %3176 }
0x2455   :  { %v1472_v31 = vmul.f32 %v3177_v30, %v1471_v29  ;;  %v1631_v30 = vstv %s1626_s12 }
0x2457   :  { %v1473_v32 = vsel %vm1465_vm14, %v1463_v7, %v1472_v31 }
0x2458   :  { %2994 = vmatmul.msk.f32.vlgmr.msra.gmra.mxu3 %vm63_vm0, %v1473_v32 }
0x2459   :  { %1753 = vmatpush.msra.mxu3 %v3733_v22 }
0x245b   :  { %1754 = vmatpush.msra.mxu3 %v3739_v10 }
0x245d   :  { %1755 = vmatpush.msra.mxu3 %v3745_v23 }
0x245f   :  { %1756 = vmatpush.msra.mxu3 %v3751_v24 }
0x24db   :  { %v1494_v33 = vpop.f32.mrf.mxu3 }
0x24dc   :  { %v1495_v21 = vadd.f32 %v3827_v17, %v1494_v33 }
0x24de   :  { %v1498_v4 = vmin.f32 %v1495_v21, 0.0  ;;  %vm1497_vm15 = vcmp.gt.f32.partialorder %v1495_v21, 0.0 }
0x24e0   :  { %v1501_v12 = vmul.f32 1.442695, %v1498_v4  ;;  %v1499_v0 = vmul.f32 0.5, %v1498_v4 }
0x24e2   :  { %3178 = vpow2.f32 %v1501_v12 }
0x24e3   :  { %3180 = vtanh.f32 %v1499_v0 }
0x24e8   :  { %v3179_v40 = vpop.eup %3178 }
0x24e9   :  { %v1503_v41 = vadd.f32 1.0, %v3179_v40  ;;  %v3181_v42 = vpop.eup %3180 }
0x24eb   :  { %v1504_v43 = vmul.f32 %v3181_v42, %v1503_v41 }
0x24ed   :  { %v1505_v44 = vsel %vm1497_vm15, %v1495_v21, %v1504_v43 }
0x24ee   :  { %2995 = vmatmul.msk.f32.vlgmr.msrb.gmra.mxu0 %vm63_vm0, %v1505_v44 }
0x24ef   :  { %1785 = vmatpush.msrb.mxu0 %v3759_v46 }
0x24f1   :  { %1786 = vmatpush.msrb.mxu0 %v3765_v25 }
0x24f3   :  { %1787 = vmatpush.msrb.mxu0 %v3771_v47 }
0x24f5   :  { %1788 = vmatpush.msrb.mxu0 %v3777_v48 }
0x256b   :  { %v1526_v45 = vpop.f32.mrf.mxu0 }
0x256c   :  { %v1527_v49 = vadd.f32 %v3838_v26, %v1526_v45 }
0x256e   :  { %v1530_v52 = vadd.f32 %v1529_v51, %v1527_v49  ;;  %v1627_v8 = vadd.f32 %v1527_v49, %v3922_v19 }
0x2570   :  { %v1531_v53 = vmul.f32 %v1530_v52, %v3897_v37  ;;  %v1628_v9 = vmul.f32 3.0, %v1627_v8 }
0x2572   :  { %1533 = vrot.lane.b32.xlu2 %v1531_v53, %s3337_s26  ;;  %v1629_v29 = vadd.f32 %v1628_v9, %v3894_v38 }
0x25cc   :  { %v1534_v35 = vpop.permute.xlu2 %1533 }
0x25cd   :  { %v1536_v56 = vadd.f32 %v1534_v35, %v3870_v18 }
0x25cf   :  { %1538 = vrot.lane.b32.xlu0 %v1536_v56, %s3336_s3 }
0x2641   :  { %v1539_v58 = vpop.permute.xlu0 %1538 }
0x2642   :  { %2996 = vmatmul.msk.f32.vlgmr.msrb.gmra.mxu1 %vm63_vm0, %v1539_v58 }
0x2643   :  { %1817 = vmatpush.msrb.mxu1 %v3792_v39 }
0x2645   :  { %1818 = vmatpush.msrb.mxu1 %v3798_v36 }
0x2647   :  { %1819 = vmatpush.msrb.mxu1 %v3804_v55 }
0x2649   :  { %1820 = vmatpush.msrb.mxu1 %v3810_v34 }
0x26bf   :  { %v1559_v60 = vpop.f32.mrf.mxu1 }
0x26c0   :  { %v1560_v37 = vadd.f32 %v3816_v59, %v1559_v60 }
0x26c2   :  { %v1563_v61 = vmin.f32 %v1560_v37, 0.0  ;;  %vm1562_vm1 = vcmp.gt.f32.partialorder %v1560_v37, 0.0 }
0x26c4   :  { %v1566_v62 = vmul.f32 1.442695, %v1563_v61  ;;  %v1564_v63 = vmul.f32 0.5, %v1563_v61 }
0x26c6   :  { %3182 = vpow2.f32 %v1566_v62 }
0x26c7   :  { %3184 = vtanh.f32 %v1564_v63  ;;  %v4003_v63 = vstv %s3997_s13 }
0x26cc   :  { %v3183_v5 = vpop.eup %3182 }
0x26cd   :  { %v1568_v11 = vadd.f32 1.0, %v3183_v5  ;;  %v3185_v13 = vpop.eup %3184 }
0x26cf   :  { %v1569_v14 = vmul.f32 %v3185_v13, %v1568_v11 }
0x26d1   :  { %v1570_v15 = vsel %vm1562_vm1, %v1560_v37, %v1569_v14 }
0x26d2   :  { %2997 = vmatmul.msk.f32.vlgmr.msrb.gmra.mxu2 %vm63_vm0, %v1570_v15 }
0x26d3   :  { %1849 = vmatpush.msrb.mxu2 %v3733_v22 }
0x26d5   :  { %1850 = vmatpush.msrb.mxu2 %v3739_v10 }
0x26d7   :  { %1851 = vmatpush.msrb.mxu2 %v3745_v23 }
0x26d9   :  { %1852 = vmatpush.msrb.mxu2 %v3751_v24 }
0x2755   :  { %v1591_v16 = vpop.f32.mrf.mxu2 }
0x2756   :  { %v1592_v50 = vadd.f32 %v3827_v17, %v1591_v16 }
0x2758   :  { %v1595_v3 = vmin.f32 %v1592_v50, 0.0  ;;  %vm1594_vm2 = vcmp.gt.f32.partialorder %v1592_v50, 0.0 }
0x275a   :  { %v1598_v1 = vmul.f32 1.442695, %v1595_v3  ;;  %v1596_v54 = vmul.f32 0.5, %v1595_v3 }
0x275c   :  { %3186 = vpow2.f32 %v1598_v1 }
0x275d   :  { %3188 = vtanh.f32 %v1596_v54 }
0x2762   :  { %v3187_v2 = vpop.eup %3186 }
0x2763   :  { %v1600_v57 = vadd.f32 1.0, %v3187_v2  ;;  %v3189_v20 = vpop.eup %3188 }
0x2765   :  { %v1601_v6 = vmul.f32 %v3189_v20, %v1600_v57 }
0x2767   :  { %v1602_v7 = vsel %vm1594_vm2, %v1592_v50, %v1601_v6 }
0x2768   :  { %2998 = vmatmul.msk.f32.vlgmr.msrb.gmra.mxu3 %vm63_vm0, %v1602_v7 }
0x2769   :  { %1881 = vmatpush.msrb.mxu3 %v3759_v46 }
0x276b   :  { %1882 = vmatpush.msrb.mxu3 %v3765_v25 }
0x276d   :  { %1883 = vmatpush.msrb.mxu3 %v3771_v47 }
0x276f   :  { %1884 = vmatpush.msrb.mxu3 %v3777_v48 }
0x27eb   :  { %v1623_v27 = vpop.f32.mrf.mxu3 }
0x27ec   :  { %v1624_v28 = vadd.f32 %v3838_v26, %v1623_v27 }
0x27ee   :  { %v1630_v31 = vadd.f32 %v1629_v29, %v1624_v28 }
0x27f0   :  { %v1632_v32 = vmul.f32 %v1631_v30, %v1630_v31 }
0x27f2   :  { %1634 = vrot.lane.b32.xlu1 %v1632_v32, %s3337_s26 }
0x2864   :  { %v1635_v33 = vpop.permute.xlu1 %1634 }
0x2865   :  { %v3976_v21 = vadd.f32 %v1635_v33, %v3870_v18 }
0x2867   :  { %1640 = vrot.lane.b32.xlu2 %v3976_v21, %s3336_s3 }
0x28c1   :  { %v1641_v19 = vpop.permute.xlu2 %1640 }
0x28c2   :  { %3000 = vmatmul.msk.f32.vlgmr.msra.gmra.mxu0 %vm63_vm0, %v1641_v19 }
0x28c3   :  { %1913 = vmatpush.msra.mxu0 %v3792_v39 }
0x28c5   :  { %1914 = vmatpush.msra.mxu0 %v3798_v36 }
0x28c7   :  { %1915 = vmatpush.msra.mxu0 %v3804_v55 }
0x28c9   :  { %1916 = vmatpush.msra.mxu0 %v3810_v34 }
0x293f   :  { %v1661_v38 = vpop.f32.mrf.mxu0 }
0x2940   :  { %v1662_v4 = vadd.f32 %v3816_v59, %v1661_v38 }
0x2942   :  { %v1665_v12 = vmin.f32 %v1662_v4, 0.0  ;;  %vm1664_vm3 = vcmp.gt.f32.partialorder %v1662_v4, 0.0 }
0x2944   :  { %v1668_v18 = vmul.f32 1.442695, %v1665_v12  ;;  %v1666_v0 = vmul.f32 0.5, %v1665_v12 }
0x2946   :  { %3190 = vpow2.f32 %v1668_v18 }
0x2947   :  { %3192 = vtanh.f32 %v1666_v0 }
0x294c   :  { %v3191_v40 = vpop.eup %3190 }
0x294d   :  { %v1670_v41 = vadd.f32 1.0, %v3191_v40  ;;  %v3193_v42 = vpop.eup %3192 }
0x294f   :  { %v1671_v43 = vmul.f32 %v3193_v42, %v1670_v41 }
0x2951   :  { %v1672_v44 = vsel %vm1664_vm3, %v1662_v4, %v1671_v43 }
0x2952   :  { %3001 = vmatmul.msk.f32.vlgmr.msra.gmra.mxu1 %vm63_vm0, %v1672_v44 }
0x2953   :  { %1946 = vmatpush.msra.mxu1 %v3733_v22 }
0x2955   :  { %1947 = vmatpush.msra.mxu1 %v3739_v10 }
0x2957   :  { %1948 = vmatpush.msra.mxu1 %v3745_v23 }
0x2959   :  { %1949 = vmatpush.msra.mxu1 %v3751_v24 }
0x29cf   :  { %v1693_v45 = vpop.f32.mrf.mxu1 }
0x29d0   :  { %v1694_v49 = vadd.f32 %v3827_v17, %v1693_v45 }
0x29d2   :  { %v1697_v51 = vmin.f32 %v1694_v49, 0.0  ;;  %vm1696_vm4 = vcmp.gt.f32.partialorder %v1694_v49, 0.0 }
0x29d4   :  { %v1700_v52 = vmul.f32 1.442695, %v1697_v51  ;;  %v1698_v53 = vmul.f32 0.5, %v1697_v51 }
0x29d6   :  { %3194 = vpow2.f32 %v1700_v52 }
0x29d7   :  { %3196 = vtanh.f32 %v1698_v53 }
0x29dc   :  { %v3195_v35 = vpop.eup %3194 }
0x29dd   :  { %v1702_v56 = vadd.f32 1.0, %v3195_v35  ;;  %v3197_v58 = vpop.eup %3196 }
0x29df   :  { %v1703_v60 = vmul.f32 %v3197_v58, %v1702_v56 }
0x29e1   :  { %v1704_v37 = vsel %vm1696_vm4, %v1694_v49, %v1703_v60 }
0x29e2   :  { %3002 = vmatmul.msk.f32.vlgmr.msra.gmra.mxu2 %vm63_vm0, %v1704_v37 }
0x29e3   :  { %1978 = vmatpush.msra.mxu2 %v3759_v46 }
0x29e5   :  { %1979 = vmatpush.msra.mxu2 %v3765_v25 }
0x29e7   :  { %1980 = vmatpush.msra.mxu2 %v3771_v47 }
0x29e9   :  { %1981 = vmatpush.msra.mxu2 %v3777_v48 }
0x2a65   :  { %v1725_v61 = vpop.f32.mrf.mxu2 }
0x2a66   :  { %v4000_v62 = vadd.f32 %v3838_v26, %v1725_v61 }
0x2a68   :  { %v1728_v5 = vmul.f32 0.33333334, %v4000_v62 }
0x2a6a   :  { %v1730_v11 = vmul.f32 %v4003_v63, %v1728_v5 }
0x2a6c   :  { %1732 = vrot.lane.b32.xlu0 %v1730_v11, %s3337_s26 }
0x2ade   :  { %v1733_v13 = vpop.permute.xlu0 %1732 }
0x2adf   :  { %v1735_v14 = vadd.f32 %v1733_v13, %v3976_v21 }
0x2ae1   :  { %1737 = vrot.lane.b32.xlu1 %v1735_v14, %s3336_s3 }
0x2b53   :  { %v1738_v15 = vpop.permute.xlu1 %1737 }
0x2b54   :  { %3003 = vmatmul.msk.f32.vlgmr.msra.gmra.mxu3 %vm63_vm0, %v1738_v15 }
0x2b55   :  { %2010 = vmatpush.msra.mxu3 %v3792_v39 }
0x2b57   :  { %2011 = vmatpush.msra.mxu3 %v3798_v36 }
0x2b59   :  { %2012 = vmatpush.msra.mxu3 %v3804_v55 }
0x2b5b   :  { %2013 = vmatpush.msra.mxu3 %v3810_v34 }
0x2bd7   :  { %v1758_v16 = vpop.f32.mrf.mxu3 }
0x2bd8   :  { %v1759_v50 = vadd.f32 %v3816_v59, %v1758_v16 }
0x2bda   :  { %v1762_v3 = vmin.f32 %v1759_v50, 0.0  ;;  %vm1761_vm5 = vcmp.gt.f32.partialorder %v1759_v50, 0.0 }
0x2bdc   :  { %v1765_v1 = vmul.f32 1.442695, %v1762_v3  ;;  %v1763_v54 = vmul.f32 0.5, %v1762_v3 }
0x2bde   :  { %3198 = vpow2.f32 %v1765_v1 }
0x2bdf   :  { %3200 = vtanh.f32 %v1763_v54 }
0x2be4   :  { %v3199_v2 = vpop.eup %3198 }
0x2be5   :  { %v1767_v57 = vadd.f32 1.0, %v3199_v2  ;;  %v3201_v20 = vpop.eup %3200 }
0x2be7   :  { %v1768_v6 = vmul.f32 %v3201_v20, %v1767_v57 }
0x2be9   :  { %v1769_v7 = vsel %vm1761_vm5, %v1759_v50, %v1768_v6 }
0x2bea   :  { %3004 = vmatmul.msk.f32.vlgmr.msrb.gmra.mxu0 %vm63_vm0, %v1769_v7 }
0x2beb   :  { %2048 = vmatpush.msrb.mxu0 %v3733_v22 }
0x2bed   :  { %2049 = vmatpush.msrb.mxu0 %v3739_v10 }
0x2bef   :  { %2050 = vmatpush.msrb.mxu0 %v3745_v23 }
0x2bf1   :  { %2051 = vmatpush.msrb.mxu0 %v3751_v24 }
0x2c67   :  { %v1790_v8 = vpop.f32.mrf.mxu0 }
0x2c68   :  { %v1791_v9 = vadd.f32 %v3827_v17, %v1790_v8 }
0x2c6a   :  { %v1794_v27 = vmin.f32 %v1791_v9, 0.0  ;;  %vm1793_vm6 = vcmp.gt.f32.partialorder %v1791_v9, 0.0 }
0x2c6c   :  { %v1797_v28 = vmul.f32 1.442695, %v1794_v27  ;;  %v1795_v29 = vmul.f32 0.5, %v1794_v27 }
0x2c6e   :  { %3202 = vpow2.f32 %v1797_v28 }
0x2c6f   :  { %3204 = vtanh.f32 %v1795_v29 }
0x2c74   :  { %v3203_v30 = vpop.eup %3202 }
0x2c75   :  { %v1799_v31 = vadd.f32 1.0, %v3203_v30  ;;  %v3205_v32 = vpop.eup %3204 }
0x2c77   :  { %v1800_v33 = vmul.f32 %v3205_v32, %v1799_v31 }
0x2c79   :  { %v1801_v19 = vsel %vm1793_vm6, %v1791_v9, %v1800_v33 }
0x2c7a   :  { %3005 = vmatmul.msk.f32.vlgmr.msrb.gmra.mxu1 %vm63_vm0, %v1801_v19  ;;  %v4095_v19 = vld [vmem:[%s4394_s1 + $0x38] sm:$0xff] }
0x2c7b   :  { %2080 = vmatpush.msrb.mxu1 %v3759_v46 }
0x2c7d   :  { %2081 = vmatpush.msrb.mxu1 %v3765_v25 }
0x2c7f   :  { %2082 = vmatpush.msrb.mxu1 %v3771_v47 }
0x2c81   :  { %2083 = vmatpush.msrb.mxu1 %v3777_v48 }
0x2cf7   :  { %v1822_v38 = vpop.f32.mrf.mxu1 }
0x2cf8   :  { %v4028_v4 = vadd.f32 %v3838_v26, %v1822_v38  ;;  %v4107_v38 = vld [vmem:[%s4394_s1 + $0x28] sm:$0xff] }
0x2cfa   :  { %v1825_v12 = vsub.f32 %v4028_v4, %v1728_v5 }
0x2cfc   :  { %v1826_v18 = vmul.f32 %v1825_v12, %v4003_v63  ;;  %v4113_v12 = vld [vmem:[%s4394_s1 + $0x20] sm:$0xff] }
0x2cfe   :  { %1828 = vrot.lane.b32.xlu2 %v1826_v18, %s3337_s26 }
0x2d58   :  { %v1829_v0 = vpop.permute.xlu2 %1828 }
0x2d59   :  { %v1831_v40 = vadd.f32 %v1829_v0, %v3976_v21 }
0x2d5b   :  { %1833 = vrot.lane.b32.xlu0 %v1831_v40, %s3336_s3 }
0x2dcd   :  { %v1834_v41 = vpop.permute.xlu0 %1833 }
0x2dce   :  { %3006 = vmatmul.msk.f32.vlgmr.msrb.gmra.mxu2 %vm63_vm0, %v1834_v41 }
0x2dcf   :  { %2112 = vmatpush.msrb.mxu2 %v3792_v39 }
0x2dd1   :  { %2113 = vmatpush.msrb.mxu2 %v3798_v36 }
0x2dd3   :  { %2114 = vmatpush.msrb.mxu2 %v3804_v55 }
0x2dd5   :  { %2115 = vmatpush.msrb.mxu2 %v3810_v34 }
0x2e51   :  { %v1854_v42 = vpop.f32.mrf.mxu2 }
0x2e52   :  { %v1855_v43 = vadd.f32 %v3816_v59, %v1854_v42 }
0x2e54   :  { %v1858_v44 = vmin.f32 %v1855_v43, 0.0  ;;  %vm1857_vm7 = vcmp.gt.f32.partialorder %v1855_v43, 0.0 }
0x2e56   :  { %v1861_v45 = vmul.f32 1.442695, %v1858_v44  ;;  %v1859_v49 = vmul.f32 0.5, %v1858_v44 }
0x2e58   :  { %3206 = vpow2.f32 %v1861_v45 }
0x2e59   :  { %3208 = vtanh.f32 %v1859_v49 }
0x2e5e   :  { %v3207_v51 = vpop.eup %3206 }
0x2e5f   :  { %v1863_v52 = vadd.f32 1.0, %v3207_v51  ;;  %v3209_v53 = vpop.eup %3208 }
0x2e61   :  { %v1864_v35 = vmul.f32 %v3209_v53, %v1863_v52  ;;  %v4148_v52 = vld [vmem:[%s4394_s1 + $0x40] sm:$0xff] }
0x2e63   :  { %v1865_v56 = vsel %vm1857_vm7, %v1855_v43, %v1864_v35  ;;  %v2023_v43 = vstv %s2018_s6  ;;  %v4154_v35 = vld [vmem:[%s4395_s2] ss:$0 sm:$0xff] }
0x2e64   :  { %3007 = vmatmul.msk.f32.vlgmr.msrb.gmra.mxu3 %vm63_vm0, %v1865_v56 }
0x2e65   :  { %2145 = vmatpush.msrb.mxu3 %v3733_v22 }
0x2e67   :  { %2146 = vmatpush.msrb.mxu3 %v3739_v10 }
0x2e69   :  { %2147 = vmatpush.msrb.mxu3 %v3745_v23 }
0x2e6b   :  { %2148 = vmatpush.msrb.mxu3 %v3751_v24  ;;  %v1921_v24 = vsub.f32 %v4000_v62, %v4028_v4 }
0x2ee7   :  { %v1886_v58 = vpop.f32.mrf.mxu3 }
0x2ee8   :  { %v1887_v60 = vadd.f32 %v3827_v17, %v1886_v58 }
0x2eea   :  { %v1890_v37 = vmin.f32 %v1887_v60, 0.0  ;;  %vm1889_vm8 = vcmp.gt.f32.partialorder %v1887_v60, 0.0 }
0x2eec   :  { %v1893_v61 = vmul.f32 1.442695, %v1890_v37  ;;  %v1891_v5 = vmul.f32 0.5, %v1890_v37 }
0x2eee   :  { %3210 = vpow2.f32 %v1893_v61 }
0x2eef   :  { %3212 = vtanh.f32 %v1891_v5 }
0x2ef4   :  { %v3211_v11 = vpop.eup %3210 }
0x2ef5   :  { %v1895_v13 = vadd.f32 1.0, %v3211_v11  ;;  %v3213_v14 = vpop.eup %3212 }
0x2ef7   :  { %v1896_v15 = vmul.f32 %v3213_v14, %v1895_v13 }
0x2ef9   :  { %v1897_v22 = vsel %vm1889_vm8, %v1887_v60, %v1896_v15 }
0x2efa   :  { %3008 = vmatmul.msk.f32.vlgmr.msra.gmra.mxu0 %vm63_vm0, %v1897_v22  ;;  %v4165_v22 = vld [vmem:[%s4395_s2 + $0x1] ss:$0 sm:$0xff] }
0x2efb   :  { %2177 = vmatpush.msra.mxu0 %v3759_v46 }
0x2efd   :  { %2178 = vmatpush.msra.mxu0 %v3765_v25 }
0x2eff   :  { %2179 = vmatpush.msra.mxu0 %v3771_v47 }
0x2f01   :  { %2180 = vmatpush.msra.mxu0 %v3777_v48 }
0x2f77   :  { %v1918_v10 = vpop.f32.mrf.mxu0 }
0x2f78   :  { %v1919_v23 = vadd.f32 %v3838_v26, %v1918_v10 }
0x2f7a   :  { %v1922_v16 = vadd.f32 %v1921_v24, %v1919_v23  ;;  %v2019_v18 = vadd.f32 %v1919_v23, %v4028_v4 }
0x2f7c   :  { %v1923_v50 = vmul.f32 %v1922_v16, %v4003_v63  ;;  %v2020_v0 = vmul.f32 3.0, %v2019_v18 }
0x2f7e   :  { %1925 = vrot.lane.b32.xlu1 %v1923_v50, %s3337_s26  ;;  %v2021_v42 = vadd.f32 %v2020_v0, %v4000_v62  ;;  %v4136_v62 = vld [vmem:[%s4394_s1 + $0x50] sm:$0xff] }
0x2ff0   :  { %v1926_v3 = vpop.permute.xlu1 %1925 }
0x2ff1   :  { %v1928_v46 = vadd.f32 %v1926_v3, %v3976_v21 }
0x2ff3   :  { %1930 = vrot.lane.b32.xlu2 %v1928_v46, %s3336_s3 }
0x304d   :  { %v1931_v25 = vpop.permute.xlu2 %1930 }
0x304e   :  { %3009 = vmatmul.msk.f32.vlgmr.msra.gmra.mxu1 %vm63_vm0, %v1931_v25 }
0x304f   :  { %2209 = vmatpush.msra.mxu1 %v3792_v39 }
0x3051   :  { %2210 = vmatpush.msra.mxu1 %v3798_v36  ;;  %v4069_v36 = vld [vmem:[%s4394_s1 + $0x18] sm:$0xff] }
0x3053   :  { %2211 = vmatpush.msra.mxu1 %v3804_v55  ;;  %v4075_v55 = vld [vmem:[%s4394_s1 + $0x10] sm:$0xff] }
0x3055   :  { %2212 = vmatpush.msra.mxu1 %v3810_v34  ;;  %v4081_v34 = vld [vmem:[%s4394_s1 + $0x8] sm:$0xff] }
0x30cb   :  { %v1951_v47 = vpop.f32.mrf.mxu1 }
0x30cc   :  { %v1952_v48 = vadd.f32 %v3816_v59, %v1951_v47  ;;  %v4087_v59 = vld [vmem:[%s4394_s1] sm:$0xff] }
0x30ce   :  { %v1955_v63 = vmin.f32 %v1952_v48, 0.0  ;;  %vm1954_vm9 = vcmp.gt.f32.partialorder %v1952_v48, 0.0 }
0x30d0   :  { %v1958_v1 = vmul.f32 1.442695, %v1955_v63  ;;  %v1956_v54 = vmul.f32 0.5, %v1955_v63  ;;  %v4178_v63 = vld [vmem:[%s4395_s2 + $0x2] ss:$0 sm:$0xff] }
0x30d2   :  { %3214 = vpow2.f32 %v1958_v1 }
0x30d3   :  { %3216 = vtanh.f32 %v1956_v54  ;;  %v4184_v54 = vstv %s4173_s18 }
0x30d8   :  { %v3215_v2 = vpop.eup %3214 }
0x30d9   :  { %v1960_v57 = vadd.f32 1.0, %v3215_v2  ;;  %v3217_v20 = vpop.eup %3216 }
0x30db   :  { %v1961_v6 = vmul.f32 %v3217_v20, %v1960_v57 }
0x30dd   :  { %v1962_v39 = vsel %vm1954_vm9, %v1952_v48, %v1961_v6 }
0x30de   :  { %3010 = vmatmul.msk.f32.vlgmr.msra.gmra.mxu2 %vm63_vm0, %v1962_v39 }
0x30df   :  { %2241 = vmatpush.msra.mxu2 %v4069_v36 }
0x30e1   :  { %2242 = vmatpush.msra.mxu2 %v4075_v55 }
0x30e3   :  { %2243 = vmatpush.msra.mxu2 %v4081_v34 }
0x30e5   :  { %2244 = vmatpush.msra.mxu2 %v4087_v59 }
0x3161   :  { %v1983_v7 = vpop.f32.mrf.mxu2 }
0x3162   :  { %v1984_v8 = vadd.f32 %v3827_v17, %v1983_v7  ;;  %v4101_v17 = vld [vmem:[%s4394_s1 + $0x30] sm:$0xff] }
0x3164   :  { %v1987_v9 = vmin.f32 %v1984_v8, 0.0  ;;  %vm1986_vm10 = vcmp.gt.f32.partialorder %v1984_v8, 0.0 }
0x3166   :  { %v1990_v27 = vmul.f32 1.442695, %v1987_v9  ;;  %v1988_v28 = vmul.f32 0.5, %v1987_v9 }
0x3168   :  { %3218 = vpow2.f32 %v1990_v27 }
0x3169   :  { %3220 = vtanh.f32 %v1988_v28 }
0x316e   :  { %v3219_v29 = vpop.eup %3218 }
0x316f   :  { %v1992_v30 = vadd.f32 1.0, %v3219_v29  ;;  %v3221_v31 = vpop.eup %3220 }
0x3171   :  { %v1993_v32 = vmul.f32 %v3221_v31, %v1992_v30 }
0x3173   :  { %v1994_v33 = vsel %vm1986_vm10, %v1984_v8, %v1993_v32 }
0x3174   :  { %3011 = vmatmul.msk.f32.vlgmr.msra.gmra.mxu3 %vm63_vm0, %v1994_v33 }
0x3175   :  { %2273 = vmatpush.msra.mxu3 %v4095_v19 }
0x3177   :  { %2274 = vmatpush.msra.mxu3 %v4101_v17 }
0x3179   :  { %2275 = vmatpush.msra.mxu3 %v4107_v38 }
0x317b   :  { %2276 = vmatpush.msra.mxu3 %v4113_v12 }
0x31f7   :  { %v2015_v40 = vpop.f32.mrf.mxu3 }
0x31f8   :  { %v2016_v41 = vadd.f32 %v3838_v26, %v2015_v40  ;;  %v4130_v26 = vld [vmem:[%s4394_s1 + $0x58] sm:$0xff] }
0x31fa   :  { %v2022_v44 = vadd.f32 %v2021_v42, %v2016_v41 }
0x31fc   :  { %v2024_v45 = vmul.f32 %v2023_v43, %v2022_v44 }
0x31fe   :  { %2026 = vrot.lane.b32.xlu0 %v2024_v45, %s3337_s26 }
0x3270   :  { %v2027_v49 = vpop.permute.xlu0 %2026 }
0x3271   :  { %v4122_v51 = vadd.f32 %v2027_v49, %v3976_v21  ;;  %v4142_v21 = vld [vmem:[%s4394_s1 + $0x48] sm:$0xff] }
0x3273   :  { %2032 = vrot.lane.b32.xlu1 %v4122_v51, %s3336_s3 }
0x32e5   :  { %v2033_v4 = vpop.permute.xlu1 %2032 }
0x32e6   :  { %3013 = vmatmul.msk.f32.vlgmr.msrb.gmra.mxu0 %vm63_vm0, %v2033_v4 }
0x32e7   :  { %2305 = vmatpush.msrb.mxu0 %v4130_v26 }
0x32e9   :  { %2306 = vmatpush.msrb.mxu0 %v4136_v62 }
0x32eb   :  { %2307 = vmatpush.msrb.mxu0 %v4142_v21 }
0x32ed   :  { %2308 = vmatpush.msrb.mxu0 %v4148_v52 }
0x3363   :  { %v2053_v53 = vpop.f32.mrf.mxu0 }
0x3364   :  { %v2054_v56 = vadd.f32 %v4154_v35, %v2053_v53 }
0x3366   :  { %v2057_v58 = vmin.f32 %v2054_v56, 0.0  ;;  %vm2056_vm11 = vcmp.gt.f32.partialorder %v2054_v56, 0.0 }
0x3368   :  { %v2060_v60 = vmul.f32 1.442695, %v2057_v58  ;;  %v2058_v37 = vmul.f32 0.5, %v2057_v58 }
0x336a   :  { %3222 = vpow2.f32 %v2060_v60 }
0x336b   :  { %3224 = vtanh.f32 %v2058_v37 }
0x3370   :  { %v3223_v61 = vpop.eup %3222 }
0x3371   :  { %v2062_v5 = vadd.f32 1.0, %v3223_v61  ;;  %v3225_v11 = vpop.eup %3224 }
0x3373   :  { %v2063_v13 = vmul.f32 %v3225_v11, %v2062_v5 }
0x3375   :  { %v2064_v14 = vsel %vm2056_vm11, %v2054_v56, %v2063_v13 }
0x3376   :  { %3014 = vmatmul.msk.f32.vlgmr.msrb.gmra.mxu1 %vm63_vm0, %v2064_v14 }
0x3377   :  { %2338 = vmatpush.msrb.mxu1 %v4069_v36 }
0x3379   :  { %2339 = vmatpush.msrb.mxu1 %v4075_v55 }
0x337b   :  { %2340 = vmatpush.msrb.mxu1 %v4081_v34 }
0x337d   :  { %2341 = vmatpush.msrb.mxu1 %v4087_v59 }
0x33f3   :  { %v2085_v15 = vpop.f32.mrf.mxu1 }
0x33f4   :  { %v2086_v10 = vadd.f32 %v4165_v22, %v2085_v15 }
0x33f6   :  { %v2089_v23 = vmin.f32 %v2086_v10, 0.0  ;;  %vm2088_vm12 = vcmp.gt.f32.partialorder %v2086_v10, 0.0 }
0x33f8   :  { %v2092_v24 = vmul.f32 1.442695, %v2089_v23  ;;  %v2090_v16 = vmul.f32 0.5, %v2089_v23 }
0x33fa   :  { %3226 = vpow2.f32 %v2092_v24 }
0x33fb   :  { %3228 = vtanh.f32 %v2090_v16 }
0x3400   :  { %v3227_v50 = vpop.eup %3226 }
0x3401   :  { %v2094_v3 = vadd.f32 1.0, %v3227_v50  ;;  %v3229_v46 = vpop.eup %3228 }
0x3403   :  { %v2095_v25 = vmul.f32 %v3229_v46, %v2094_v3 }
0x3405   :  { %v2096_v47 = vsel %vm2088_vm12, %v2086_v10, %v2095_v25 }
0x3406   :  { %3015 = vmatmul.msk.f32.vlgmr.msrb.gmra.mxu2 %vm63_vm0, %v2096_v47 }
0x3407   :  { %2370 = vmatpush.msrb.mxu2 %v4095_v19 }
0x3409   :  { %2371 = vmatpush.msrb.mxu2 %v4101_v17 }
0x340b   :  { %2372 = vmatpush.msrb.mxu2 %v4107_v38 }
0x340d   :  { %2373 = vmatpush.msrb.mxu2 %v4113_v12 }
0x3489   :  { %v2117_v48 = vpop.f32.mrf.mxu2 }
0x348a   :  { %v4181_v1 = vadd.f32 %v4178_v63, %v2117_v48 }
0x348c   :  { %v2120_v2 = vmul.f32 0.33333334, %v4181_v1 }
0x348e   :  { %v2122_v57 = vmul.f32 %v4184_v54, %v2120_v2 }
0x3490   :  { %2124 = vrot.lane.b32.xlu2 %v2122_v57, %s3337_s26 }
0x34ea   :  { %v2125_v20 = vpop.permute.xlu2 %2124 }
0x34eb   :  { %v2127_v6 = vadd.f32 %v2125_v20, %v4122_v51 }
0x34ed   :  { %2129 = vrot.lane.b32.xlu0 %v2127_v6, %s3336_s3 }
0x355f   :  { %v2130_v39 = vpop.permute.xlu0 %2129 }
0x3560   :  { %3016 = vmatmul.msk.f32.vlgmr.msrb.gmra.mxu3 %vm63_vm0, %v2130_v39 }
0x3561   :  { %2402 = vmatpush.msrb.mxu3 %v4130_v26 }
0x3563   :  { %2403 = vmatpush.msrb.mxu3 %v4136_v62 }
0x3565   :  { %2404 = vmatpush.msrb.mxu3 %v4142_v21 }
0x3567   :  { %2405 = vmatpush.msrb.mxu3 %v4148_v52 }
0x35e3   :  { %v2150_v7 = vpop.f32.mrf.mxu3 }
0x35e4   :  { %v2151_v8 = vadd.f32 %v4154_v35, %v2150_v7 }
0x35e6   :  { %v2154_v9 = vmin.f32 %v2151_v8, 0.0  ;;  %vm2153_vm13 = vcmp.gt.f32.partialorder %v2151_v8, 0.0 }
0x35e8   :  { %v2157_v27 = vmul.f32 1.442695, %v2154_v9  ;;  %v2155_v28 = vmul.f32 0.5, %v2154_v9 }
0x35ea   :  { %3230 = vpow2.f32 %v2157_v27 }
0x35eb   :  { %3232 = vtanh.f32 %v2155_v28 }
0x35f0   :  { %v3231_v29 = vpop.eup %3230 }
0x35f1   :  { %v2159_v30 = vadd.f32 1.0, %v3231_v29  ;;  %v3233_v31 = vpop.eup %3232 }
0x35f3   :  { %v2160_v32 = vmul.f32 %v3233_v31, %v2159_v30 }
0x35f5   :  { %v2161_v33 = vsel %vm2153_vm13, %v2151_v8, %v2160_v32  ;;  %vm2926_vm13 = vcmask 523264  }
0x35f6   :  { %3017 = vmatmul.msk.f32.vlgmr.msra.gmra.mxu0 %vm63_vm0, %v2161_v33 }
0x35f7   :  { %2440 = vmatpush.msra.mxu0 %v4069_v36 }
0x35f9   :  { %2441 = vmatpush.msra.mxu0 %v4075_v55 }
0x35fb   :  { %2442 = vmatpush.msra.mxu0 %v4081_v34 }
0x35fd   :  { %2443 = vmatpush.msra.mxu0 %v4087_v59 }
0x3673   :  { %v2182_v18 = vpop.f32.mrf.mxu0 }
0x3674   :  { %v2183_v0 = vadd.f32 %v4165_v22, %v2182_v18 }
0x3676   :  { %v2186_v40 = vmin.f32 %v2183_v0, 0.0  ;;  %vm2185_vm14 = vcmp.gt.f32.partialorder %v2183_v0, 0.0 }
0x3678   :  { %v2189_v41 = vmul.f32 1.442695, %v2186_v40  ;;  %v2187_v42 = vmul.f32 0.5, %v2186_v40 }
0x367a   :  { %3234 = vpow2.f32 %v2189_v41 }
0x367b   :  { %3236 = vtanh.f32 %v2187_v42 }
0x3680   :  { %v3235_v43 = vpop.eup %3234 }
0x3681   :  { %v2191_v44 = vadd.f32 1.0, %v3235_v43  ;;  %v3237_v45 = vpop.eup %3236 }
0x3683   :  { %v2192_v49 = vmul.f32 %v3237_v45, %v2191_v44 }
0x3685   :  { %v2193_v4 = vsel %vm2185_vm14, %v2183_v0, %v2192_v49  ;;  %vm2928_vm14 = vcmask 785408  }
0x3686   :  { %3018 = vmatmul.msk.f32.vlgmr.msra.gmra.mxu1 %vm63_vm0, %v2193_v4 }
0x3687   :  { %2472 = vmatpush.msra.mxu1 %v4095_v19 }
0x3689   :  { %2473 = vmatpush.msra.mxu1 %v4101_v17 }
0x368b   :  { %2474 = vmatpush.msra.mxu1 %v4107_v38 }
0x368d   :  { %2475 = vmatpush.msra.mxu1 %v4113_v12 }
0x3703   :  { %v2214_v53 = vpop.f32.mrf.mxu1 }
0x3704   :  { %v4209_v56 = vadd.f32 %v4178_v63, %v2214_v53 }
0x3706   :  { %v2217_v58 = vsub.f32 %v4209_v56, %v2120_v2  ;;  %v2313_v27 = vsub.f32 %v4181_v1, %v4209_v56 }
0x3708   :  { %v2218_v60 = vmul.f32 %v2217_v58, %v4184_v54 }
0x370a   :  { %2220 = vrot.lane.b32.xlu1 %v2218_v60, %s3337_s26 }
0x377c   :  { %v2221_v37 = vpop.permute.xlu1 %2220 }
0x377d   :  { %v2223_v61 = vadd.f32 %v2221_v37, %v4122_v51 }
0x377f   :  { %2225 = vrot.lane.b32.xlu2 %v2223_v61, %s3336_s3 }
0x37d9   :  { %v2226_v5 = vpop.permute.xlu2 %2225 }
0x37da   :  { %3019 = vmatmul.msk.f32.vlgmr.msra.gmra.mxu2 %vm63_vm0, %v2226_v5 }
0x37db   :  { %2504 = vmatpush.msra.mxu2 %v4130_v26 }
0x37dd   :  { %2505 = vmatpush.msra.mxu2 %v4136_v62 }
0x37df   :  { %2506 = vmatpush.msra.mxu2 %v4142_v21 }
0x37e1   :  { %2507 = vmatpush.msra.mxu2 %v4148_v52 }
0x385d   :  { %v2246_v11 = vpop.f32.mrf.mxu2 }
0x385e   :  { %v2247_v13 = vadd.f32 %v4154_v35, %v2246_v11 }
0x3860   :  { %v2250_v14 = vmin.f32 %v2247_v13, 0.0  ;;  %vm2249_vm15 = vcmp.gt.f32.partialorder %v2247_v13, 0.0 }
0x3862   :  { %v2253_v15 = vmul.f32 1.442695, %v2250_v14  ;;  %v2251_v10 = vmul.f32 0.5, %v2250_v14 }
0x3864   :  { %3238 = vpow2.f32 %v2253_v15 }
0x3865   :  { %3240 = vtanh.f32 %v2251_v10 }
0x386a   :  { %v3239_v23 = vpop.eup %3238 }
0x386b   :  { %v2255_v24 = vadd.f32 1.0, %v3239_v23  ;;  %v3241_v16 = vpop.eup %3240 }
0x386d   :  { %v2256_v50 = vmul.f32 %v3241_v16, %v2255_v24  ;;  %v2415_v16 = vstv %s2410_s21 }
0x386f   :  { %v2257_v3 = vsel %vm2249_vm15, %v2247_v13, %v2256_v50 }
0x3870   :  { %3020 = vmatmul.msk.f32.vlgmr.msra.gmra.mxu3 %vm63_vm0, %v2257_v3 }
0x3871   :  { %2537 = vmatpush.msra.mxu3 %v4069_v36 }
0x3873   :  { %2538 = vmatpush.msra.mxu3 %v4075_v55 }
0x3875   :  { %2539 = vmatpush.msra.mxu3 %v4081_v34 }
0x3877   :  { %2540 = vmatpush.msra.mxu3 %v4087_v59 }
0x38f3   :  { %v2278_v46 = vpop.f32.mrf.mxu3 }
0x38f4   :  { %v2279_v25 = vadd.f32 %v4165_v22, %v2278_v46 }
0x38f6   :  { %v2282_v47 = vmin.f32 %v2279_v25, 0.0  ;;  %vm2281_vm1 = vcmp.gt.f32.partialorder %v2279_v25, 0.0 }
0x38f8   :  { %v2285_v48 = vmul.f32 1.442695, %v2282_v47  ;;  %v2283_v2 = vmul.f32 0.5, %v2282_v47 }
0x38fa   :  { %3242 = vpow2.f32 %v2285_v48 }
0x38fb   :  { %3244 = vtanh.f32 %v2283_v2 }
0x3900   :  { %v3243_v57 = vpop.eup %3242 }
0x3901   :  { %v2287_v20 = vadd.f32 1.0, %v3243_v57  ;;  %v3245_v6 = vpop.eup %3244 }
0x3903   :  { %v2288_v39 = vmul.f32 %v3245_v6, %v2287_v20 }
0x3905   :  { %v2289_v7 = vsel %vm2281_vm1, %v2279_v25, %v2288_v39 }
0x3906   :  { %3021 = vmatmul.msk.f32.vlgmr.msrb.gmra.mxu0 %vm63_vm0, %v2289_v7 }
0x3907   :  { %2569 = vmatpush.msrb.mxu0 %v4095_v19 }
0x3909   :  { %2570 = vmatpush.msrb.mxu0 %v4101_v17 }
0x390b   :  { %2571 = vmatpush.msrb.mxu0 %v4107_v38 }
0x390d   :  { %2572 = vmatpush.msrb.mxu0 %v4113_v12 }
0x3983   :  { %v2310_v8 = vpop.f32.mrf.mxu0 }
0x3984   :  { %v2311_v9 = vadd.f32 %v4178_v63, %v2310_v8 }
0x3986   :  { %v2314_v28 = vadd.f32 %v2313_v27, %v2311_v9  ;;  %v2411_v14 = vadd.f32 %v2311_v9, %v4209_v56 }
0x3988   :  { %v2315_v29 = vmul.f32 %v2314_v28, %v4184_v54  ;;  %v2412_v15 = vmul.f32 3.0, %v2411_v14 }
0x398a   :  { %2317 = vrot.lane.b32.xlu0 %v2315_v29, %s3337_s26  ;;  %v2413_v24 = vadd.f32 %v2412_v15, %v4181_v1 }
0x39fc   :  { %v2318_v30 = vpop.permute.xlu0 %2317 }
0x39fd   :  { %v2320_v31 = vadd.f32 %v2318_v30, %v4122_v51 }
0x39ff   :  { %2322 = vrot.lane.b32.xlu1 %v2320_v31, %s3336_s3 }
0x3a71   :  { %v2323_v32 = vpop.permute.xlu1 %2322 }
0x3a72   :  { %3022 = vmatmul.msk.f32.vlgmr.msrb.gmra.mxu1 %vm63_vm0, %v2323_v32 }
0x3a73   :  { %2601 = vmatpush.msrb.mxu1 %v4130_v26 }
0x3a75   :  { %2602 = vmatpush.msrb.mxu1 %v4136_v62 }
0x3a77   :  { %2603 = vmatpush.msrb.mxu1 %v4142_v21 }
0x3a79   :  { %2604 = vmatpush.msrb.mxu1 %v4148_v52 }
0x3aef   :  { %v2343_v33 = vpop.f32.mrf.mxu1 }
0x3af0   :  { %v2344_v54 = vadd.f32 %v4154_v35, %v2343_v33 }
0x3af2   :  { %v2347_v18 = vmin.f32 %v2344_v54, 0.0  ;;  %vm2346_vm2 = vcmp.gt.f32.partialorder %v2344_v54, 0.0 }
0x3af4   :  { %v2350_v0 = vmul.f32 1.442695, %v2347_v18  ;;  %v2348_v40 = vmul.f32 0.5, %v2347_v18 }
0x3af6   :  { %3246 = vpow2.f32 %v2350_v0 }
0x3af7   :  { %3248 = vtanh.f32 %v2348_v40 }
0x3afc   :  { %v3247_v41 = vpop.eup %3246 }
0x3afd   :  { %v2352_v42 = vadd.f32 1.0, %v3247_v41  ;;  %v3249_v43 = vpop.eup %3248 }
0x3aff   :  { %v2353_v44 = vmul.f32 %v3249_v43, %v2352_v42 }
0x3b01   :  { %v2354_v45 = vsel %vm2346_vm2, %v2344_v54, %v2353_v44 }
0x3b02   :  { %3023 = vmatmul.msk.f32.vlgmr.msrb.gmra.mxu2 %vm63_vm0, %v2354_v45 }
0x3b03   :  { %2633 = vmatpush.msrb.mxu2 %v4069_v36 }
0x3b05   :  { %2634 = vmatpush.msrb.mxu2 %v4075_v55 }
0x3b07   :  { %2635 = vmatpush.msrb.mxu2 %v4081_v34 }
0x3b09   :  { %2636 = vmatpush.msrb.mxu2 %v4087_v59 }
0x3b85   :  { %v2375_v49 = vpop.f32.mrf.mxu2 }
0x3b86   :  { %v2376_v4 = vadd.f32 %v4165_v22, %v2375_v49 }
0x3b88   :  { %v2379_v53 = vmin.f32 %v2376_v4, 0.0  ;;  %vm2378_vm3 = vcmp.gt.f32.partialorder %v2376_v4, 0.0 }
0x3b8a   :  { %v2382_v58 = vmul.f32 1.442695, %v2379_v53  ;;  %v2380_v60 = vmul.f32 0.5, %v2379_v53 }
0x3b8c   :  { %3250 = vpow2.f32 %v2382_v58 }
0x3b8d   :  { %3252 = vtanh.f32 %v2380_v60 }
0x3b92   :  { %v3251_v37 = vpop.eup %3250 }
0x3b93   :  { %v2384_v61 = vadd.f32 1.0, %v3251_v37  ;;  %v3253_v5 = vpop.eup %3252 }
0x3b95   :  { %v2385_v11 = vmul.f32 %v3253_v5, %v2384_v61 }
0x3b97   :  { %v2386_v13 = vsel %vm2378_vm3, %v2376_v4, %v2385_v11 }
0x3b98   :  { %3024 = vmatmul.msk.f32.vlgmr.msrb.gmra.mxu3 %vm63_vm0, %v2386_v13 }
0x3b99   :  { %2665 = vmatpush.msrb.mxu3 %v4095_v19 }
0x3b9b   :  { %2666 = vmatpush.msrb.mxu3 %v4101_v17 }
0x3b9d   :  { %2667 = vmatpush.msrb.mxu3 %v4107_v38 }
0x3b9f   :  { %2668 = vmatpush.msrb.mxu3 %v4113_v12 }
0x3c1b   :  { %v2407_v10 = vpop.f32.mrf.mxu3 }
0x3c1c   :  { %v2408_v23 = vadd.f32 %v4178_v63, %v2407_v10 }
0x3c1e   :  { %v2414_v50 = vadd.f32 %v2413_v24, %v2408_v23 }
0x3c20   :  { %v2416_v3 = vmul.f32 %v2415_v16, %v2414_v50 }
0x3c22   :  { %2418 = vrot.lane.b32.xlu2 %v2416_v3, %s3337_s26 }
0x3c7c   :  { %v2419_v46 = vpop.permute.xlu2 %2418 }
0x3c7d   :  { %v4263_v25 = vadd.f32 %v2419_v46, %v4122_v51 }
0x3c7f   :  { %2424 = vrot.lane.b32.xlu0 %v4263_v25, %s3336_s3 }
0x3cf1   :  { %v2425_v56 = vpop.permute.xlu0 %2424 }
0x3cf2   :  { %3026 = vmatmul.msk.f32.vlgmr.msra.gmra.mxu0 %vm63_vm0, %v2425_v56 }
0x3cf3   :  { %2697 = vmatpush.msra.mxu0 %v4130_v26 }
0x3cf5   :  { %2698 = vmatpush.msra.mxu0 %v4136_v62 }
0x3cf7   :  { %2699 = vmatpush.msra.mxu0 %v4142_v21 }
0x3cf9   :  { %2700 = vmatpush.msra.mxu0 %v4148_v52 }
0x3d6f   :  { %v2445_v1 = vpop.f32.mrf.mxu0 }
0x3d70   :  { %v2446_v47 = vadd.f32 %v4154_v35, %v2445_v1 }
0x3d72   :  { %v2449_v48 = vmin.f32 %v2446_v47, 0.0  ;;  %vm2448_vm4 = vcmp.gt.f32.partialorder %v2446_v47, 0.0 }
0x3d74   :  { %v2452_v51 = vmul.f32 1.442695, %v2449_v48  ;;  %v2450_v2 = vmul.f32 0.5, %v2449_v48 }
0x3d76   :  { %3254 = vpow2.f32 %v2452_v51 }
0x3d77   :  { %3256 = vtanh.f32 %v2450_v2 }
0x3d7c   :  { %v3255_v57 = vpop.eup %3254 }
0x3d7d   :  { %v2454_v20 = vadd.f32 1.0, %v3255_v57  ;;  %v3257_v6 = vpop.eup %3256 }
0x3d7f   :  { %v2455_v39 = vmul.f32 %v3257_v6, %v2454_v20 }
0x3d81   :  { %v2456_v7 = vsel %vm2448_vm4, %v2446_v47, %v2455_v39 }
0x3d82   :  { %3027 = vmatmul.msk.f32.vlgmr.msra.gmra.mxu1 %vm63_vm0, %v2456_v7 }
0x3d83   :  { %2730 = vmatpush.msra.mxu1 %v4069_v36 }
0x3d85   :  { %2731 = vmatpush.msra.mxu1 %v4075_v55 }
0x3d87   :  { %2732 = vmatpush.msra.mxu1 %v4081_v34 }
0x3d89   :  { %2733 = vmatpush.msra.mxu1 %v4087_v59  ;;  %v4290_v59 = vstv %s4284_s22 }
0x3dff   :  { %v2477_v8 = vpop.f32.mrf.mxu1 }
0x3e00   :  { %v2478_v9 = vadd.f32 %v4165_v22, %v2477_v8 }
0x3e02   :  { %v2481_v27 = vmin.f32 %v2478_v9, 0.0  ;;  %vm2480_vm5 = vcmp.gt.f32.partialorder %v2478_v9, 0.0 }
0x3e04   :  { %v2484_v28 = vmul.f32 1.442695, %v2481_v27  ;;  %v2482_v29 = vmul.f32 0.5, %v2481_v27 }
0x3e06   :  { %3258 = vpow2.f32 %v2484_v28 }
0x3e07   :  { %3260 = vtanh.f32 %v2482_v29 }
0x3e0c   :  { %v3259_v30 = vpop.eup %3258 }
0x3e0d   :  { %v2486_v31 = vadd.f32 1.0, %v3259_v30  ;;  %v3261_v32 = vpop.eup %3260 }
0x3e0f   :  { %v2487_v33 = vmul.f32 %v3261_v32, %v2486_v31 }
0x3e11   :  { %v2488_v36 = vsel %vm2480_vm5, %v2478_v9, %v2487_v33 }
0x3e12   :  { %3028 = vmatmul.msk.f32.vlgmr.msra.gmra.mxu2 %vm63_vm0, %v2488_v36 }
0x3e13   :  { %2762 = vmatpush.msra.mxu2 %v4095_v19 }
0x3e15   :  { %2763 = vmatpush.msra.mxu2 %v4101_v17 }
0x3e17   :  { %2764 = vmatpush.msra.mxu2 %v4107_v38 }
0x3e19   :  { %2765 = vmatpush.msra.mxu2 %v4113_v12 }
0x3e95   :  { %v2509_v55 = vpop.f32.mrf.mxu2 }
0x3e96   :  { %v4287_v34 = vadd.f32 %v4178_v63, %v2509_v55 }
0x3e98   :  { %v2512_v54 = vmul.f32 0.33333334, %v4287_v34 }
0x3e9a   :  { %v2514_v18 = vmul.f32 %v4290_v59, %v2512_v54 }
0x3e9c   :  { %2516 = vrot.lane.b32.xlu1 %v2514_v18, %s3337_s26 }
0x3f0e   :  { %v2517_v19 = vpop.permute.xlu1 %2516 }
0x3f0f   :  { %v2519_v17 = vadd.f32 %v2517_v19, %v4263_v25 }
0x3f11   :  { %2521 = vrot.lane.b32.xlu2 %v2519_v17, %s3336_s3 }
0x3f6b   :  { %v2522_v38 = vpop.permute.xlu2 %2521 }
0x3f6c   :  { %3029 = vmatmul.msk.f32.vlgmr.msra.gmra.mxu3 %vm63_vm0, %v2522_v38 }
0x3f6d   :  { %2794 = vmatpush.msra.mxu3 %v4130_v26 }
0x3f6f   :  { %2795 = vmatpush.msra.mxu3 %v4136_v62 }
0x3f71   :  { %2796 = vmatpush.msra.mxu3 %v4142_v21 }
0x3f73   :  { %2797 = vmatpush.msra.mxu3 %v4148_v52 }
0x3fef   :  { %v2542_v12 = vpop.f32.mrf.mxu3 }
0x3ff0   :  { %v2543_v0 = vadd.f32 %v4154_v35, %v2542_v12 }
0x3ff2   :  { %v2546_v40 = vmin.f32 %v2543_v0, 0.0  ;;  %vm2545_vm6 = vcmp.gt.f32.partialorder %v2543_v0, 0.0 }
0x3ff4   :  { %v2549_v41 = vmul.f32 1.442695, %v2546_v40  ;;  %v2547_v42 = vmul.f32 0.5, %v2546_v40 }
0x3ff6   :  { %3262 = vpow2.f32 %v2549_v41 }
0x3ff7   :  { %3264 = vtanh.f32 %v2547_v42 }
0x3ffc   :  { %v3263_v43 = vpop.eup %3262 }
0x3ffd   :  { %v2551_v44 = vadd.f32 1.0, %v3263_v43  ;;  %v3265_v45 = vpop.eup %3264 }
0x3fff   :  { %v2552_v49 = vmul.f32 %v3265_v45, %v2551_v44 }
0x4001   :  { %v2553_v26 = vsel %vm2545_vm6, %v2543_v0, %v2552_v49 }
0x4002   :  { %3030 = vmatmul.msk.f32.vlgmr.msrb.gmra.mxu0 %vm63_vm0, %v2553_v26 }
0x407f   :  { %v2574_v62 = vpop.f32.mrf.mxu0 }
0x4080   :  { %v2575_v21 = vadd.f32 %v4165_v22, %v2574_v62 }
0x4082   :  { %v2578_v52 = vmin.f32 %v2575_v21, 0.0  ;;  %vm2577_vm7 = vcmp.gt.f32.partialorder %v2575_v21, 0.0 }
0x4084   :  { %v2581_v4 = vmul.f32 1.442695, %v2578_v52  ;;  %v2579_v53 = vmul.f32 0.5, %v2578_v52 }
0x4086   :  { %3266 = vpow2.f32 %v2581_v4 }
0x4087   :  { %3268 = vtanh.f32 %v2579_v53 }
0x408c   :  { %v3267_v58 = vpop.eup %3266 }
0x408d   :  { %v2583_v60 = vadd.f32 1.0, %v3267_v58  ;;  %v3269_v37 = vpop.eup %3268 }
0x408f   :  { %v2584_v61 = vmul.f32 %v3269_v37, %v2583_v60 }
0x4091   :  { %v2585_v5 = vsel %vm2577_vm7, %v2575_v21, %v2584_v61 }
0x4092   :  { %3031 = vmatmul.msk.f32.vlgmr.msrb.gmra.mxu1 %vm63_vm0, %v2585_v5  ;;  %v2807_v5 = vstv %s2802_s23 }
0x410f   :  { %v2606_v11 = vpop.f32.mrf.mxu1 }
0x4110   :  { %v4307_v13 = vadd.f32 %v4178_v63, %v2606_v11 }
0x4112   :  { %v2609_v14 = vsub.f32 %v4307_v13, %v2512_v54  ;;  %v2705_v32 = vsub.f32 %v4287_v34, %v4307_v13 }
0x4114   :  { %v2610_v15 = vmul.f32 %v2609_v14, %v4290_v59 }
0x4116   :  { %2612 = vrot.lane.b32.xlu0 %v2610_v15, %s3337_s26  ;;  %v3320_v15 = vld [vmem:[%s4393_s0] sm:$0xff] }
0x4188   :  { %v2613_v10 = vpop.permute.xlu0 %2612 }
0x4189   :  { %v2615_v23 = vadd.f32 %v2613_v10, %v4263_v25  ;;  %v3040_v10 = vld [vmem:[%s4394_s1 + $0x70] sm:$0xff] }
0x418b   :  { %2617 = vrot.lane.b32.xlu1 %v2615_v23, %s3336_s3  ;;  %v3043_v23 = vld [vmem:[%s4394_s1 + $0x88] sm:$0xff] }
0x41fd   :  { %v2618_v24 = vpop.permute.xlu1 %2617 }
0x41fe   :  { %3032 = vmatmul.msk.f32.vlgmr.msrb.gmra.mxu2 %vm63_vm0, %v2618_v24  ;;  %v3039_v24 = vld [vmem:[%s4394_s1 + $0x68] sm:$0xff] }
0x4281   :  { %v2638_v16 = vpop.f32.mrf.mxu2 }
0x4282   :  { %v2639_v50 = vadd.f32 %v4154_v35, %v2638_v16  ;;  %v3042_v16 = vld [vmem:[%s4394_s1 + $0x80] sm:$0xff] }
0x4284   :  { %v2642_v3 = vmin.f32 %v2639_v50, 0.0  ;;  %vm2641_vm8 = vcmp.gt.f32.partialorder %v2639_v50, 0.0 }
0x4286   :  { %v2645_v46 = vmul.f32 1.442695, %v2642_v3  ;;  %v2643_v56 = vmul.f32 0.5, %v2642_v3 }
0x4288   :  { %3270 = vpow2.f32 %v2645_v46 }
0x4289   :  { %3272 = vtanh.f32 %v2643_v56 }
0x428e   :  { %v3271_v1 = vpop.eup %3270 }
0x428f   :  { %v2647_v47 = vadd.f32 1.0, %v3271_v1  ;;  %v3273_v48 = vpop.eup %3272  ;;  %v3051_v1 = vld [vmem:[%s4394_s1 + $0xb8] sm:$0xff] }
0x4290   :  { %2904 = vmatpush.msrb.mxu2 %v3051_v1 }
0x4291   :  { %v2648_v51 = vmul.f32 %v3273_v48, %v2647_v47  ;;  %v3050_v47 = vld [vmem:[%s4394_s1 + $0xb0] sm:$0xff]  ;;  %v3049_v48 = vld [vmem:[%s4394_s1 + $0xa8] sm:$0xff] }
0x4292   :  { %2905 = vmatpush.msrb.mxu2 %v3050_v47 }
0x4293   :  { %v2649_v2 = vsel %vm2641_vm8, %v2639_v50, %v2648_v51  ;;  %v3038_v50 = vld [vmem:[%s4394_s1 + $0x60] sm:$0xff] }
0x4294   :  { %3033 = vmatmul.msk.f32.vlgmr.msrb.gmra.mxu3 %vm63_vm0, %v2649_v2  ;;  %2906 = vmatpush.msrb.mxu2 %v3049_v48  ;;  %v3060_v2 = vld [vmem:[%s4395_s2 + $0x3] ss:$0 sm:$0xff] }
0x4317   :  { %v2670_v57 = vpop.f32.mrf.mxu3 }
0x4318   :  { %v2671_v20 = vadd.f32 %v4165_v22, %v2670_v57 }
0x431a   :  { %v2674_v6 = vmin.f32 %v2671_v20, 0.0  ;;  %vm2673_vm9 = vcmp.gt.f32.partialorder %v2671_v20, 0.0 }
0x431c   :  { %v2677_v39 = vmul.f32 1.442695, %v2674_v6  ;;  %v2675_v7 = vmul.f32 0.5, %v2674_v6 }
0x431e   :  { %3274 = vpow2.f32 %v2677_v39 }
0x431f   :  { %3276 = vtanh.f32 %v2675_v7  ;;  %v2912_v7 = vlaneseq }
0x4324   :  { %v3275_v8 = vpop.eup %3274 }
0x4325   :  { %v2679_v9 = vadd.f32 1.0, %v3275_v8  ;;  %v3277_v27 = vpop.eup %3276 }
0x4327   :  { %v2680_v28 = vmul.f32 %v3277_v27, %v2679_v9 }
0x4329   :  { %v2681_v29 = vsel %vm2673_vm9, %v2671_v20, %v2680_v28  ;;  %v2913_v28 = vand.u32 127, %v2912_v7 }
0x432a   :  { %3034 = vmatmul.msk.f32.vlgmr.msra.gmra.mxu0 %vm63_vm0, %v2681_v29 }
0x432b   :  { %vm2914_vm12 = vcmp.lt.s32.totalorder %v2913_v28, 25 }
0x43a7   :  { %v2702_v30 = vpop.f32.mrf.mxu0 }
0x43a8   :  { %v2703_v31 = vadd.f32 %v4178_v63, %v2702_v30 }
0x43aa   :  { %v2706_v33 = vadd.f32 %v2705_v32, %v2703_v31  ;;  %v2803_v58 = vadd.f32 %v2703_v31, %v4307_v13  ;;  %v3045_v13 = vld [vmem:[%s4394_s1 + $0x98] sm:$0xff] }
0x43ab   :  { %2841 = vmatpush.msrb.mxu0 %v3045_v13 }
0x43ac   :  { %v2707_v36 = vmul.f32 %v2706_v33, %v4290_v59  ;;  %v2804_v60 = vmul.f32 3.0, %v2803_v58 }
0x43ae   :  { %2709 = vrot.lane.b32.xlu2 %v2707_v36, %s3337_s26  ;;  %v2805_v61 = vadd.f32 %v2804_v60, %v4287_v34  ;;  %v3044_v34 = vld [vmem:[%s4394_s1 + $0x90] sm:$0xff] }
0x43af   :  { %2842 = vmatpush.msrb.mxu0 %v3044_v34 }
0x43b1   :  { %2843 = vmatpush.msrb.mxu0 %v3043_v23 }
0x43b3   :  { %2844 = vmatpush.msrb.mxu0 %v3042_v16 }
0x4408   :  { %v2710_v55 = vpop.permute.xlu2 %2709 }
0x4409   :  { %v2712_v54 = vadd.f32 %v2710_v55, %v4263_v25 }
0x440b   :  { %2714 = vrot.lane.b32.xlu0 %v2712_v54, %s3336_s3 }
0x4413   :  { %2876 = vrot.lane.b32.xlu0 %v3320_v15, %s3338_s27 }
0x447d   :  { %v2715_v18 = vpop.permute.xlu0 %2714 }
0x447e   :  { %3035 = vmatmul.msk.f32.vlgmr.msra.gmra.mxu1 %vm63_vm0, %v2715_v18  ;;  %v3061_v18 = vld [vmem:[%s4395_s2 + $0x4] ss:$0 sm:$0xff] }
0x4485   :  { %v2877_v27 = vpop.permute.xlu0 %2876 }
0x44fb   :  { %v2735_v19 = vpop.f32.mrf.mxu1 }
0x44fc   :  { %v2736_v17 = vadd.f32 %v4154_v35, %v2735_v19 }
0x44fe   :  { %v2739_v38 = vmin.f32 %v2736_v17, 0.0  ;;  %vm2738_vm10 = vcmp.gt.f32.partialorder %v2736_v17, 0.0 }
0x4500   :  { %v2742_v12 = vmul.f32 1.442695, %v2739_v38  ;;  %v2740_v0 = vmul.f32 0.5, %v2739_v38 }
0x4502   :  { %3278 = vpow2.f32 %v2742_v12 }
0x4503   :  { %3280 = vtanh.f32 %v2740_v0 }
0x4508   :  { %v3279_v40 = vpop.eup %3278 }
0x4509   :  { %v2744_v59 = vadd.f32 1.0, %v3279_v40  ;;  %v3281_v41 = vpop.eup %3280 }
0x450b   :  { %v2745_v42 = vmul.f32 %v3281_v41, %v2744_v59 }
0x450d   :  { %v2746_v43 = vsel %vm2738_vm10, %v2736_v17, %v2745_v42 }
0x450e   :  { %3036 = vmatmul.msk.f32.vlgmr.msra.gmra.mxu2 %vm63_vm0, %v2746_v43 }
0x4591   :  { %v2767_v44 = vpop.f32.mrf.mxu2 }
0x4592   :  { %v2768_v45 = vadd.f32 %v4165_v22, %v2767_v44 }
0x4594   :  { %v2771_v49 = vmin.f32 %v2768_v45, 0.0  ;;  %vm2770_vm11 = vcmp.gt.f32.partialorder %v2768_v45, 0.0 }
0x4596   :  { %v2774_v26 = vmul.f32 1.442695, %v2771_v49  ;;  %v2772_v35 = vmul.f32 0.5, %v2771_v49 }
0x4598   :  { %3282 = vpow2.f32 %v2774_v26 }
0x4599   :  { %3284 = vtanh.f32 %v2772_v35 }
0x459e   :  { %v3283_v62 = vpop.eup %3282 }
0x459f   :  { %v2776_v21 = vadd.f32 1.0, %v3283_v62  ;;  %v3285_v52 = vpop.eup %3284 }
0x45a1   :  { %v2777_v4 = vmul.f32 %v3285_v52, %v2776_v21 }
0x45a3   :  { %v2778_v53 = vsel %vm2770_vm11, %v2768_v45, %v2777_v4 }
0x45a4   :  { %3037 = vmatmul.msk.f32.vlgmr.msra.gmra.mxu3 %vm63_vm0, %v2778_v53 }
0x4627   :  { %v2799_v37 = vpop.f32.mrf.mxu3 }
0x4628   :  { %v2800_v22 = vadd.f32 %v4178_v63, %v2799_v37  ;;  %v3041_v63 = vld [vmem:[%s4394_s1 + $0x78] sm:$0xff] }
0x4629   :  { %2863 = vmatpush.msrb.mxu1 %v3041_v63 }
0x462a   :  { %v2806_v11 = vadd.f32 %v2805_v61, %v2800_v22 }
0x462b   :  { %2864 = vmatpush.msrb.mxu1 %v3040_v10 }
0x462c   :  { %v2808_v14 = vmul.f32 %v2807_v5, %v2806_v11 }
0x462d   :  { %2865 = vmatpush.msrb.mxu1 %v3039_v24 }
0x462e   :  { %2810 = vrot.lane.b32.xlu1 %v2808_v14, %s3337_s26 }
0x462f   :  { %2866 = vmatpush.msrb.mxu1 %v3038_v50 }
0x4630   :  { %3047 = vmatmul.msk.f32.vlgmr.msrb.gmra.mxu1 %vm63_vm0, %v3320_v15 }
0x46a0   :  { %v2811_v3 = vpop.permute.xlu1 %2810 }
0x46a1   :  { %v2813_v46 = vadd.f32 %v2811_v3, %v4263_v25  ;;  %v3048_v25 = vld [vmem:[%s4394_s1 + $0xa0] sm:$0xff] }
0x46a2   :  { %2907 = vmatpush.msrb.mxu2 %v3048_v25 }
0x46a3   :  { %2825 = vrot.lane.b32.xlu2 %v2813_v46, %s3336_s3 }
0x46ad   :  { %v2868_v51 = vpop.f32.mrf.mxu1 }
0x46fd   :  { %v2826_v56 = vpop.permute.xlu2 %2825 }
0x46fe   :  { %3046 = vmatmul.msk.f32.vlgmr.msrb.gmra.mxu0 %vm63_vm0, %v2826_v56 }
0x477b   :  { %v2846_v57 = vpop.f32.mrf.mxu0 }
0x477c   :  { %v2869_v20 = vadd.f32 %v2868_v51, %v2846_v57 }
0x477e   :  { %v2871_v6 = vadd.f32 %v3060_v2, %v2869_v20 }
0x4780   :  { %v2872_v39 = vmul.f32 0.5, %v2871_v6 }
0x4782   :  { %3286 = vtanh.f32 %v2872_v39 }
0x4788   :  { %v3287_v8 = vpop.eup %3286 }
0x4789   :  { %v2874_v9 = vadd.f32 1.0, %v3287_v8 }
0x478b   :  { %v2875_v29 = vmul.f32 0.5, %v2874_v9 }
0x478d   :  { %v2880_v30 = vmul.f32 %v2875_v29, %v2875_v29  ;;  %v2879_v31 = vmul.f32 %v2877_v27, %v2875_v29 }
0x478f   :  { %v2881_v32 = vadd.f32 %v2880_v30, %v2879_v31 }
0x4791   :  { %3288 = vtanh.f32 %v2881_v32  ;;  %v2916_v33 = vsel %vm2914_vm12, %v2881_v32, 0.0 }
0x4792   :  { %2922 = vrot.lane.b32.xlu2 %v2916_v33, %s3338_s27 }
0x4797   :  { %v3289_v36 = vpop.eup %3288 }
0x4798   :  { %v2883_v55 = vmul.f32 %v3289_v36, %v2875_v29 }
0x479a   :  { %3052 = vmatmul.msk.f32.vlgmr.msrb.gmra.mxu2 %vm63_vm0, %v2883_v55  ;;  %v2915_v54 = vsel %vm2914_vm12, %v2883_v55, 0.0 }
0x479b   :  { %2918 = vrot.lane.b32.xlu1 %v2915_v54, %s3337_s26 }
0x47ec   :  { %v2923_v12 = vpop.permute.xlu2 %2922 }
0x480d   :  { %v2919_v38 = vpop.permute.xlu1 %2918 }
0x481d   :  { %v2909_v19 = vpop.f32.mrf.mxu2 }
0x481e   :  { %v2910_v17 = vadd.f32 %v3061_v18, %v2909_v19 }
0x4820   :  { %v2925_v0 = vsel %vm63_vm0, %v2910_v17, %v2919_v38 }
0x4821   :  { %v2927_v40 = vsel %vm2926_vm13, %v2925_v0, %v2923_v12 }
0x4822   :  { %v2929_v59 = vsel %vm2928_vm14, %v2927_v40, 0.0 }
0x4823   :  { %2930 = vst [vmem:[%s4397_s4] sm:$0xff] %v2929_v59 }
0x4824   :  { %2935 = vsyncpa [#allocation3], 1 }

</bundles_post_ra>
